<compile_context>
chip_gen: v7x
topology: tpu7x:2x2x1
jax: 0.10.0
libtpu: 0.0.40
codegen_flags: <defaults>
</compile_context>

<pallas_src>
import functools

import jax
import jax.numpy as jnp
from jax.experimental import pallas as pl
from jax.experimental.pallas import tpu as pltpu

# (in_features, out_features) of each Linear, in forward-call order:
# layer1..layer5, layer11, layer12, layer6..layer10
LAYER_DIMS = [(2, 8), (8, 16), (16, 32), (32, 64), (64, 128), (128, 256),
              (256, 128), (128, 64), (64, 32), (32, 16), (16, 8), (8, 1)]
NUM_LAYERS = len(LAYER_DIMS)
IN_DIM = LAYER_DIMS[0][0]        # 2
OUT_PAD = 8                      # final Linear(8->1) zero-padded to 8 rows
W_LANES = 256                    # max fan-in among the MXU layers (256->128)
TM_DEFAULT = 2048                # rows per grid step (lane axis)


def _slab_offsets():
    """Static sublane row offsets of each layer inside the packed slabs."""
    w_offs, b_offs = [], []
    w_row, b_row = 0, 0
    for l, (_, dout) in enumerate(LAYER_DIMS):
        dout_p = OUT_PAD if l == NUM_LAYERS - 1 else dout
        b_offs.append(b_row)
        b_row += dout_p
        if l == 0:
            w_offs.append(None)            # layer 1 weight kept separate (f32, VPU)
        else:
            w_offs.append(w_row)
            w_row += dout_p
    return tuple(w_offs), tuple(b_offs), w_row, b_row


W_OFFS, B_OFFS, W_ROWS, B_ROWS = _slab_offsets()   # all offsets multiples of 8


def _round_up(n, m):
    return ((n + m - 1) // m) * m


def _cdiv(a, b):
    return (a + b - 1) // b


def _angle2_kernel(x_ref, w0_ref, wsl_ref, bsl_ref, o_ref):
    """Fused MLP over one row tile.

    x_ref   : (IN_DIM, TM)   x^T tile (rows on lanes), f32
    w0_ref  : (8, 2)         layer-1 weight, f32 (VPU path)
    wsl_ref : (W_ROWS, 256)  layers 2..12 weights, sublane-stacked,
                             lane-padded to 256, compute_dtype
    bsl_ref : (B_ROWS, 1)    all biases, sublane-stacked, f32
    o_ref   : (OUT_PAD, TM)  f32; row 0 = real Linear(8->1) output
    """
    cdt = wsl_ref.dtype

    # ---- layer 1: Linear(2 -> 8).  K=2 -> two broadcast FMAs on the VPU.
    x = x_ref[...]                                            # (2, TM) f32
    w0 = w0_ref[...]                                          # (8, 2)  f32
    b0 = bsl_ref[B_OFFS[0]:B_OFFS[0] + LAYER_DIMS[0][1], :]   # (8, 1)  f32
    h = w0[:, 0:1] * x[0:1, :] + w0[:, 1:2] * x[1:2, :] + b0
    h = jnp.maximum(h, 0.0).astype(cdt)                       # store bf16, not f32

    # ---- layers 2..12: MXU matmuls h^T <- W_l @ h^T, f32 accumulation;
    # bias-add / ReLU in f32, activation stored in compute_dtype.
    # Last layer (8->1, zero-padded to 8 rows) has no ReLU; result = out tile.
    for l in range(1, NUM_LAYERS):                            # static unroll
        din, dout = LAYER_DIMS[l]
        dout_p = OUT_PAD if l == NUM_LAYERS - 1 else dout
        w = wsl_ref[W_OFFS[l]:W_OFFS[l] + dout_p, 0:din]      # (dout_p, din)
        b = bsl_ref[B_OFFS[l]:B_OFFS[l] + dout_p, :]          # (dout_p, 1) f32
        h = jnp.dot(w, h, preferred_element_type=jnp.float32) + b
        if l < NUM_LAYERS - 1:
            h = jnp.maximum(h, 0.0).astype(cdt)

    o_ref[...] = h                                            # (OUT_PAD, TM) f32


@functools.partial(jax.jit, static_argnames=("tm", "compute_dtype"))
def angle2_forward(x, weights, biases, *, tm=TM_DEFAULT,
                   compute_dtype=jnp.bfloat16):
    """x: [..., 2].  weights[l]: (dout, din) in PyTorch nn.Linear layout,
    biases[l]: (dout,).  Returns [..., 1] float32."""
    assert tm % 128 == 0
    lead_shape = x.shape[:-1]
    rows = 1
    for d in lead_shape:
        rows *= d

    # Row tiling: pad rows only to a multiple of 128 (waste <= 127 rows of
    # padding per step) and guarantee >=2 grid steps when rows >= 256 so the
    # "parallel" axis can be sharded across v7x's 2 TensorCores.
    rows128 = _round_up(max(rows, 1), 128)
    n_steps = max(2, _cdiv(rows128, tm)) if rows128 >= 2 * 128 else 1
    tm_eff = _round_up(_cdiv(rows128, n_steps), 128)
    rows_pad = n_steps * tm_eff

    # x^T slab (2, rows_pad): rows on lanes.  Convert+pad+transpose is a
    # single XLA copy fusion under jit (input is only 8 B/row).
    xt = jnp.pad(x.reshape(rows, IN_DIM).astype(jnp.float32),
                 ((0, rows_pad - rows), (0, 0))).T            # (2, rows_pad)

    # Pack parameters into slabs (grid-invariant inputs).
    w_rows, b_rows = [], []
    w0 = None
    for l, (din, dout) in enumerate(LAYER_DIMS):
        w = jnp.asarray(weights[l], jnp.float32)
        b = jnp.asarray(biases[l], jnp.float32).reshape(dout, 1)
        dout_p = OUT_PAD if l == NUM_LAYERS - 1 else dout
        if dout_p != dout:                   # zero-pad Linear(8->1) to 8 rows
            w = jnp.pad(w, ((0, dout_p - dout), (0, 0)))
            b = jnp.pad(b, ((0, dout_p - dout), (0, 0)))
        b_rows.append(b)
        if l == 0:
            w0 = w                           # VPU layer: keep f32, separate
        else:
            w_rows.append(
                jnp.pad(w, ((0, 0), (0, W_LANES - din))).astype(compute_dtype))
    w_slab = jnp.concatenate(w_rows, axis=0)                  # (W_ROWS, 256)
    b_slab = jnp.concatenate(b_rows, axis=0)                  # (B_ROWS, 1) f32

    out_pad = pl.pallas_call(
        _angle2_kernel,
        out_shape=jax.ShapeDtypeStruct((OUT_PAD, rows_pad), jnp.float32),
        grid_spec=pl.GridSpec(
            grid=(n_steps,),
            in_specs=[
                pl.BlockSpec((IN_DIM, tm_eff), lambda i: (0, i)),
                pl.BlockSpec(w0.shape, lambda i: (0, 0)),       # grid-invariant
                pl.BlockSpec(w_slab.shape, lambda i: (0, 0)),   # grid-invariant
                pl.BlockSpec(b_slab.shape, lambda i: (0, 0)),   # grid-invariant
            ],
            out_specs=pl.BlockSpec((OUT_PAD, tm_eff), lambda i: (0, i)),
        ),
        compiler_params=pltpu.CompilerParams(
            dimension_semantics=("parallel",),
            vmem_limit_bytes=32 * 1024 * 1024),
    )(xt, w0, w_slab, b_slab)

    out = out_pad[0, :rows]                  # row 0 = real output, row-major
    return out.reshape(lead_shape + (1,))


def init_params(key):
    """U(-1/sqrt(fan_in)) init matching nn.Linear defaults.
    Weights in PyTorch layout (out_features, in_features), f32."""
    weights, biases = [], []
    for (din, dout) in LAYER_DIMS:
        key, kw, kb = jax.random.split(key, 3)
        bound = 1.0 / (din ** 0.5)
        weights.append(jax.random.uniform(kw, (dout, din), jnp.float32,
                                          -bound, bound))
        biases.append(jax.random.uniform(kb, (dout,), jnp.float32,
                                         -bound, bound))
    return weights, biases


def reference_forward(x, weights, biases, compute_dtype=jnp.bfloat16):
    """Pure-JAX reference with the same precision policy as the kernel
    (layer 1 in f32; other matmuls with compute_dtype operands, f32 accum)."""
    h = x.reshape(-1, IN_DIM).astype(jnp.float32)
    for l, (w, b) in enumerate(zip(weights, biases)):
        w = jnp.asarray(w, jnp.float32)
        b = jnp.asarray(b, jnp.float32)
        if l == 0:
            h = h @ w.T + b
        else:
            h = jnp.dot(h.astype(compute_dtype), w.T.astype(compute_dtype),
                        preferred_element_type=jnp.float32) + b
        if l < NUM_LAYERS - 1:
            h = jnp.maximum(h, 0.0)
    return h.reshape(x.shape[:-1] + (1,))


if __name__ == "__main__":
    key = jax.random.PRNGKey(0)
    key, kx = jax.random.split(key)

    # small example: [2, 4, 128, 2]; the MLP acts on the last dim (=2).
    # rows = 2*4*128 = 1024 -> 2 grid steps of 512 rows ("parallel" axis).
    x = jax.random.normal(kx, (2, 4, 128, 2), jnp.float32)

    weights, biases = init_params(key)

    out = angle2_forward(x, weights, biases)     # bf16 MXU, f32 accumulation
    out = jax.block_until_ready(out)

    ref = reference_forward(x, weights, biases)
    assert out.shape == x.shape[:-1] + (1,), out.shape
    max_err = float(jnp.max(jnp.abs(out - ref)))
    assert jnp.allclose(out, ref, atol=1e-3, rtol=1e-3), max_err

    print("KERNEL_OK")
</pallas_src>

<mosaic_0001>
module attributes {stable_mosaic.version = 11 : i64} {
  func.func @_angle2_kernel(%arg0: i32, %arg1: memref<2x512xf32, #tpu.memory_space<vmem>>, %arg2: memref<8x2xf32, #tpu.memory_space<vmem>>, %arg3: memref<752x256xbf16, #tpu.memory_space<vmem>>, %arg4: memref<760x1xf32, #tpu.memory_space<vmem>>, %arg5: memref<8x512xf32, #tpu.memory_space<vmem>>) attributes {dimension_semantics = [#tpu.dimension_semantics<parallel>], iteration_bounds = array<i64: 2>, scalar_prefetch = 0 : i64, scratch_operands = 0 : i64, tpu.core_type = #tpu.core_type<tc>, window_params = [{transform_indices = @transform_0, window_bounds = array<i64: 2, 512>}, {pipeline_mode = #tpu.pipeline_mode<synchronous>, transform_indices = @transform_1, window_bounds = array<i64: 8, 2>}, {pipeline_mode = #tpu.pipeline_mode<synchronous>, transform_indices = @transform_2, window_bounds = array<i64: 752, 256>}, {pipeline_mode = #tpu.pipeline_mode<synchronous>, transform_indices = @transform_3, window_bounds = array<i64: 760, 1>}, {transform_indices = @transform_4, window_bounds = array<i64: 8, 512>}]} {
    %c0 = arith.constant 0 : index
    %c0_0 = arith.constant 0 : index
    %0 = vector.load %arg1[%c0, %c0_0] : memref<2x512xf32, #tpu.memory_space<vmem>>, vector<2x512xf32>
    %c0_1 = arith.constant 0 : index
    %c0_2 = arith.constant 0 : index
    %1 = vector.load %arg2[%c0_1, %c0_2] : memref<8x2xf32, #tpu.memory_space<vmem>>, vector<8x2xf32>
    %c0_3 = arith.constant 0 : index
    %c0_4 = arith.constant 0 : index
    %2 = vector.load %arg4[%c0_3, %c0_4] : memref<760x1xf32, #tpu.memory_space<vmem>>, vector<8x1xf32>
    %3 = vector.extract_strided_slice %1 {offsets = [0, 0], sizes = [8, 1], strides = [1, 1]} : vector<8x2xf32> to vector<8x1xf32>
    %4 = vector.extract_strided_slice %0 {offsets = [0, 0], sizes = [1, 512], strides = [1, 1]} : vector<2x512xf32> to vector<1x512xf32>
    %5 = vector.broadcast %3 : vector<8x1xf32> to vector<8x512xf32>
    %6 = vector.broadcast %4 : vector<1x512xf32> to vector<8x512xf32>
    %7 = arith.mulf %5, %6 : vector<8x512xf32>
    %8 = vector.extract_strided_slice %1 {offsets = [0, 1], sizes = [8, 1], strides = [1, 1]} : vector<8x2xf32> to vector<8x1xf32>
    %9 = vector.extract_strided_slice %0 {offsets = [1, 0], sizes = [1, 512], strides = [1, 1]} : vector<2x512xf32> to vector<1x512xf32>
    %10 = vector.broadcast %8 : vector<8x1xf32> to vector<8x512xf32>
    %11 = vector.broadcast %9 : vector<1x512xf32> to vector<8x512xf32>
    %12 = arith.mulf %10, %11 : vector<8x512xf32>
    %13 = arith.addf %7, %12 : vector<8x512xf32>
    %14 = vector.broadcast %2 : vector<8x1xf32> to vector<8x512xf32>
    %15 = arith.addf %13, %14 : vector<8x512xf32>
    %cst = arith.constant 0.000000e+00 : f32
    %16 = vector.broadcast %cst : f32 to vector<8x512xf32>
    %17 = arith.maximumf %15, %16 : vector<8x512xf32>
    %18 = arith.truncf %17 : vector<8x512xf32> to vector<8x512xbf16>
    %c0_5 = arith.constant 0 : index
    %c0_6 = arith.constant 0 : index
    %19 = vector.load %arg3[%c0_5, %c0_6] : memref<752x256xbf16, #tpu.memory_space<vmem>>, vector<16x8xbf16>
    %c8 = arith.constant 8 : index
    %c0_7 = arith.constant 0 : index
    %20 = vector.load %arg4[%c8, %c0_7] : memref<760x1xf32, #tpu.memory_space<vmem>>, vector<16x1xf32>
    %cst_8 = arith.constant dense<0.000000e+00> : vector<16x512xf32>
    %21 = tpu.matmul %19, %18, %cst_8 {dimension_numbers = #tpu.dot_dimension_numbers<[1], [0], [0], [1], [0, 0, 1, 1], [], []>} : vector<16x8xbf16>, vector<8x512xbf16>, vector<16x512xf32> -> vector<16x512xf32>
    %22 = vector.broadcast %20 : vector<16x1xf32> to vector<16x512xf32>
    %23 = arith.addf %21, %22 : vector<16x512xf32>
    %cst_9 = arith.constant 0.000000e+00 : f32
    %24 = vector.broadcast %cst_9 : f32 to vector<16x512xf32>
    %25 = arith.maximumf %23, %24 : vector<16x512xf32>
    %26 = arith.truncf %25 : vector<16x512xf32> to vector<16x512xbf16>
    %c16 = arith.constant 16 : index
    %c0_10 = arith.constant 0 : index
    %27 = vector.load %arg3[%c16, %c0_10] : memref<752x256xbf16, #tpu.memory_space<vmem>>, vector<32x16xbf16>
    %c24 = arith.constant 24 : index
    %c0_11 = arith.constant 0 : index
    %28 = vector.load %arg4[%c24, %c0_11] : memref<760x1xf32, #tpu.memory_space<vmem>>, vector<32x1xf32>
    %cst_12 = arith.constant dense<0.000000e+00> : vector<32x512xf32>
    %29 = tpu.matmul %27, %26, %cst_12 {dimension_numbers = #tpu.dot_dimension_numbers<[1], [0], [0], [1], [0, 0, 1, 1], [], []>} : vector<32x16xbf16>, vector<16x512xbf16>, vector<32x512xf32> -> vector<32x512xf32>
    %30 = vector.broadcast %28 : vector<32x1xf32> to vector<32x512xf32>
    %31 = arith.addf %29, %30 : vector<32x512xf32>
    %cst_13 = arith.constant 0.000000e+00 : f32
    %32 = vector.broadcast %cst_13 : f32 to vector<32x512xf32>
    %33 = arith.maximumf %31, %32 : vector<32x512xf32>
    %34 = arith.truncf %33 : vector<32x512xf32> to vector<32x512xbf16>
    %c48 = arith.constant 48 : index
    %c0_14 = arith.constant 0 : index
    %35 = vector.load %arg3[%c48, %c0_14] : memref<752x256xbf16, #tpu.memory_space<vmem>>, vector<64x32xbf16>
    %c56 = arith.constant 56 : index
    %c0_15 = arith.constant 0 : index
    %36 = vector.load %arg4[%c56, %c0_15] : memref<760x1xf32, #tpu.memory_space<vmem>>, vector<64x1xf32>
    %cst_16 = arith.constant dense<0.000000e+00> : vector<64x512xf32>
    %37 = tpu.matmul %35, %34, %cst_16 {dimension_numbers = #tpu.dot_dimension_numbers<[1], [0], [0], [1], [0, 0, 1, 1], [], []>} : vector<64x32xbf16>, vector<32x512xbf16>, vector<64x512xf32> -> vector<64x512xf32>
    %38 = vector.broadcast %36 : vector<64x1xf32> to vector<64x512xf32>
    %39 = arith.addf %37, %38 : vector<64x512xf32>
    %cst_17 = arith.constant 0.000000e+00 : f32
    %40 = vector.broadcast %cst_17 : f32 to vector<64x512xf32>
    %41 = arith.maximumf %39, %40 : vector<64x512xf32>
    %42 = arith.truncf %41 : vector<64x512xf32> to vector<64x512xbf16>
    %c112 = arith.constant 112 : index
    %c0_18 = arith.constant 0 : index
    %43 = vector.load %arg3[%c112, %c0_18] : memref<752x256xbf16, #tpu.memory_space<vmem>>, vector<128x64xbf16>
    %c120 = arith.constant 120 : index
    %c0_19 = arith.constant 0 : index
    %44 = vector.load %arg4[%c120, %c0_19] : memref<760x1xf32, #tpu.memory_space<vmem>>, vector<128x1xf32>
    %cst_20 = arith.constant dense<0.000000e+00> : vector<128x512xf32>
    %45 = tpu.matmul %43, %42, %cst_20 {dimension_numbers = #tpu.dot_dimension_numbers<[1], [0], [0], [1], [0, 0, 1, 1], [], []>} : vector<128x64xbf16>, vector<64x512xbf16>, vector<128x512xf32> -> vector<128x512xf32>
    %46 = vector.broadcast %44 : vector<128x1xf32> to vector<128x512xf32>
    %47 = arith.addf %45, %46 : vector<128x512xf32>
    %cst_21 = arith.constant 0.000000e+00 : f32
    %48 = vector.broadcast %cst_21 : f32 to vector<128x512xf32>
    %49 = arith.maximumf %47, %48 : vector<128x512xf32>
    %50 = arith.truncf %49 : vector<128x512xf32> to vector<128x512xbf16>
    %c240 = arith.constant 240 : index
    %c0_22 = arith.constant 0 : index
    %51 = vector.load %arg3[%c240, %c0_22] : memref<752x256xbf16, #tpu.memory_space<vmem>>, vector<256x128xbf16>
    %c248 = arith.constant 248 : index
    %c0_23 = arith.constant 0 : index
    %52 = vector.load %arg4[%c248, %c0_23] : memref<760x1xf32, #tpu.memory_space<vmem>>, vector<256x1xf32>
    %cst_24 = arith.constant dense<0.000000e+00> : vector<256x512xf32>
    %53 = tpu.matmul %51, %50, %cst_24 {dimension_numbers = #tpu.dot_dimension_numbers<[1], [0], [0], [1], [0, 0, 1, 1], [], []>} : vector<256x128xbf16>, vector<128x512xbf16>, vector<256x512xf32> -> vector<256x512xf32>
    %54 = vector.broadcast %52 : vector<256x1xf32> to vector<256x512xf32>
    %55 = arith.addf %53, %54 : vector<256x512xf32>
    %cst_25 = arith.constant 0.000000e+00 : f32
    %56 = vector.broadcast %cst_25 : f32 to vector<256x512xf32>
    %57 = arith.maximumf %55, %56 : vector<256x512xf32>
    %58 = arith.truncf %57 : vector<256x512xf32> to vector<256x512xbf16>
    %c496 = arith.constant 496 : index
    %c0_26 = arith.constant 0 : index
    %59 = vector.load %arg3[%c496, %c0_26] : memref<752x256xbf16, #tpu.memory_space<vmem>>, vector<128x256xbf16>
    %c504 = arith.constant 504 : index
    %c0_27 = arith.constant 0 : index
    %60 = vector.load %arg4[%c504, %c0_27] : memref<760x1xf32, #tpu.memory_space<vmem>>, vector<128x1xf32>
    %cst_28 = arith.constant dense<0.000000e+00> : vector<128x512xf32>
    %61 = tpu.matmul %59, %58, %cst_28 {dimension_numbers = #tpu.dot_dimension_numbers<[1], [0], [0], [1], [0, 0, 1, 1], [], []>} : vector<128x256xbf16>, vector<256x512xbf16>, vector<128x512xf32> -> vector<128x512xf32>
    %62 = vector.broadcast %60 : vector<128x1xf32> to vector<128x512xf32>
    %63 = arith.addf %61, %62 : vector<128x512xf32>
    %cst_29 = arith.constant 0.000000e+00 : f32
    %64 = vector.broadcast %cst_29 : f32 to vector<128x512xf32>
    %65 = arith.maximumf %63, %64 : vector<128x512xf32>
    %66 = arith.truncf %65 : vector<128x512xf32> to vector<128x512xbf16>
    %c624 = arith.constant 624 : index
    %c0_30 = arith.constant 0 : index
    %67 = vector.load %arg3[%c624, %c0_30] : memref<752x256xbf16, #tpu.memory_space<vmem>>, vector<64x128xbf16>
    %c632 = arith.constant 632 : index
    %c0_31 = arith.constant 0 : index
    %68 = vector.load %arg4[%c632, %c0_31] : memref<760x1xf32, #tpu.memory_space<vmem>>, vector<64x1xf32>
    %cst_32 = arith.constant dense<0.000000e+00> : vector<64x512xf32>
    %69 = tpu.matmul %67, %66, %cst_32 {dimension_numbers = #tpu.dot_dimension_numbers<[1], [0], [0], [1], [0, 0, 1, 1], [], []>} : vector<64x128xbf16>, vector<128x512xbf16>, vector<64x512xf32> -> vector<64x512xf32>
    %70 = vector.broadcast %68 : vector<64x1xf32> to vector<64x512xf32>
    %71 = arith.addf %69, %70 : vector<64x512xf32>
    %cst_33 = arith.constant 0.000000e+00 : f32
    %72 = vector.broadcast %cst_33 : f32 to vector<64x512xf32>
    %73 = arith.maximumf %71, %72 : vector<64x512xf32>
    %74 = arith.truncf %73 : vector<64x512xf32> to vector<64x512xbf16>
    %c688 = arith.constant 688 : index
    %c0_34 = arith.constant 0 : index
    %75 = vector.load %arg3[%c688, %c0_34] : memref<752x256xbf16, #tpu.memory_space<vmem>>, vector<32x64xbf16>
    %c696 = arith.constant 696 : index
    %c0_35 = arith.constant 0 : index
    %76 = vector.load %arg4[%c696, %c0_35] : memref<760x1xf32, #tpu.memory_space<vmem>>, vector<32x1xf32>
    %cst_36 = arith.constant dense<0.000000e+00> : vector<32x512xf32>
    %77 = tpu.matmul %75, %74, %cst_36 {dimension_numbers = #tpu.dot_dimension_numbers<[1], [0], [0], [1], [0, 0, 1, 1], [], []>} : vector<32x64xbf16>, vector<64x512xbf16>, vector<32x512xf32> -> vector<32x512xf32>
    %78 = vector.broadcast %76 : vector<32x1xf32> to vector<32x512xf32>
    %79 = arith.addf %77, %78 : vector<32x512xf32>
    %cst_37 = arith.constant 0.000000e+00 : f32
    %80 = vector.broadcast %cst_37 : f32 to vector<32x512xf32>
    %81 = arith.maximumf %79, %80 : vector<32x512xf32>
    %82 = arith.truncf %81 : vector<32x512xf32> to vector<32x512xbf16>
    %c720 = arith.constant 720 : index
    %c0_38 = arith.constant 0 : index
    %83 = vector.load %arg3[%c720, %c0_38] : memref<752x256xbf16, #tpu.memory_space<vmem>>, vector<16x32xbf16>
    %c728 = arith.constant 728 : index
    %c0_39 = arith.constant 0 : index
    %84 = vector.load %arg4[%c728, %c0_39] : memref<760x1xf32, #tpu.memory_space<vmem>>, vector<16x1xf32>
    %cst_40 = arith.constant dense<0.000000e+00> : vector<16x512xf32>
    %85 = tpu.matmul %83, %82, %cst_40 {dimension_numbers = #tpu.dot_dimension_numbers<[1], [0], [0], [1], [0, 0, 1, 1], [], []>} : vector<16x32xbf16>, vector<32x512xbf16>, vector<16x512xf32> -> vector<16x512xf32>
    %86 = vector.broadcast %84 : vector<16x1xf32> to vector<16x512xf32>
    %87 = arith.addf %85, %86 : vector<16x512xf32>
    %cst_41 = arith.constant 0.000000e+00 : f32
    %88 = vector.broadcast %cst_41 : f32 to vector<16x512xf32>
    %89 = arith.maximumf %87, %88 : vector<16x512xf32>
    %90 = arith.truncf %89 : vector<16x512xf32> to vector<16x512xbf16>
    %c736 = arith.constant 736 : index
    %c0_42 = arith.constant 0 : index
    %91 = vector.load %arg3[%c736, %c0_42] : memref<752x256xbf16, #tpu.memory_space<vmem>>, vector<8x16xbf16>
    %c744 = arith.constant 744 : index
    %c0_43 = arith.constant 0 : index
    %92 = vector.load %arg4[%c744, %c0_43] : memref<760x1xf32, #tpu.memory_space<vmem>>, vector<8x1xf32>
    %cst_44 = arith.constant dense<0.000000e+00> : vector<8x512xf32>
    %93 = tpu.matmul %91, %90, %cst_44 {dimension_numbers = #tpu.dot_dimension_numbers<[1], [0], [0], [1], [0, 0, 1, 1], [], []>} : vector<8x16xbf16>, vector<16x512xbf16>, vector<8x512xf32> -> vector<8x512xf32>
    %94 = vector.broadcast %92 : vector<8x1xf32> to vector<8x512xf32>
    %95 = arith.addf %93, %94 : vector<8x512xf32>
    %cst_45 = arith.constant 0.000000e+00 : f32
    %96 = vector.broadcast %cst_45 : f32 to vector<8x512xf32>
    %97 = arith.maximumf %95, %96 : vector<8x512xf32>
    %98 = arith.truncf %97 : vector<8x512xf32> to vector<8x512xbf16>
    %c744_46 = arith.constant 744 : index
    %c0_47 = arith.constant 0 : index
    %99 = vector.load %arg3[%c744_46, %c0_47] : memref<752x256xbf16, #tpu.memory_space<vmem>>, vector<8x8xbf16>
    %c752 = arith.constant 752 : index
    %c0_48 = arith.constant 0 : index
    %100 = vector.load %arg4[%c752, %c0_48] : memref<760x1xf32, #tpu.memory_space<vmem>>, vector<8x1xf32>
    %cst_49 = arith.constant dense<0.000000e+00> : vector<8x512xf32>
    %101 = tpu.matmul %99, %98, %cst_49 {dimension_numbers = #tpu.dot_dimension_numbers<[1], [0], [0], [1], [0, 0, 1, 1], [], []>} : vector<8x8xbf16>, vector<8x512xbf16>, vector<8x512xf32> -> vector<8x512xf32>
    %102 = vector.broadcast %100 : vector<8x1xf32> to vector<8x512xf32>
    %103 = arith.addf %101, %102 : vector<8x512xf32>
    %c0_50 = arith.constant 0 : index
    %c0_51 = arith.constant 0 : index
    %104 = vector.load %arg5[%c0_50, %c0_51] : memref<8x512xf32, #tpu.memory_space<vmem>>, vector<8x512xf32>
    tpu.vector_store %arg5[%c0_50, %c0_51], %103 {strides = array<i32>} : memref<8x512xf32, #tpu.memory_space<vmem>>, vector<8x512xf32>,
    return
  }
  func.func @transform_0(%arg0: i32) -> (i32, i32) {
    %c0_i32 = arith.constant 0 : i32
    %c0_i32_0 = arith.constant 0 : i32
    return %c0_i32, %arg0 : i32, i32
  }
  func.func @transform_1(%arg0: i32) -> (i32, i32) {
    %c0_i32 = arith.constant 0 : i32
    %c0_i32_0 = arith.constant 0 : i32
    %c0_i32_1 = arith.constant 0 : i32
    return %c0_i32, %c0_i32_0 : i32, i32
  }
  func.func @transform_2(%arg0: i32) -> (i32, i32) {
    %c0_i32 = arith.constant 0 : i32
    %c0_i32_0 = arith.constant 0 : i32
    %c0_i32_1 = arith.constant 0 : i32
    return %c0_i32, %c0_i32_0 : i32, i32
  }
  func.func @transform_3(%arg0: i32) -> (i32, i32) {
    %c0_i32 = arith.constant 0 : i32
    %c0_i32_0 = arith.constant 0 : i32
    %c0_i32_1 = arith.constant 0 : i32
    return %c0_i32, %c0_i32_0 : i32, i32
  }
  func.func @transform_4(%arg0: i32) -> (i32, i32) {
    %c0_i32 = arith.constant 0 : i32
    %c0_i32_0 = arith.constant 0 : i32
    return %c0_i32, %arg0 : i32, i32
  }
}

</mosaic_0001>

<bundles_post_ra>
// kernel: angle2_forward.1
= control target key start
LH: loop header
LB: loop body
LE: loop exit
PB: predicated region body
PF: predicated region fallthrough
CT: control target
= control target key end

     0   :  { %s3871_s15 = smov 0   ;;  %s4481_s0 = inlined_call_operand.vmem [shape: f32[2,1024], index: 0, kind: input, shape index: {}]   ;;  %s4482_s1 = inlined_call_operand.vmem [shape: f32[8,2], index: 1, kind: input, shape index: {}]   ;;  %s4483_s2 = inlined_call_operand.vmem [shape: bf16[752,256], index: 2, kind: input, shape index: {}]   ;;  %s4484_s3 = inlined_call_operand.vmem [shape: f32[760,1], index: 3, kind: input, shape index: {}]   ;;  %s4485_s4 = inlined_call_operand.vmem [shape: f32[8,1024], index: 4, kind: output, shape index: {}]  }
   0x1 LB: > { %s3651_s16 = sadd.s32 4294967295, %s3842_s15   ;;  %p3655_p0 = scmp.ge.s32.totalorder %s3842_s15, 1  ;;  %s3842_s15 = sphi %s3871_s15, %s14_s15  }
   0x2   : > { %p163_p1 = scmp.lt.s32.totalorder %s3842_s15, 3 }
   0x4   : > { %p164_p2 = pnand %p3655_p0, %p163_p1 }
   0x5   : > { %v204_v0 = vld [vmem:[%s4484_s3] sm:$0xff] (!%p164_p2)  ;;  %v3844_v2 = vmov (!%p164_p2), 0   ;;  %v318_v3 = vld [vmem:[%s4484_s3 + $0x8] sm:$0xff] (!%p164_p2)  ;;  %v3845_v4 = vmov (!%p164_p2), 1   ;;  %v319_v5 = vld [vmem:[%s4484_s3 + $0x10] sm:$0xff] (!%p164_p2)  ;;  %s3656_s25 = sshll.u32 (!%p164_p2), %s3651_s16, 2  ;;  %v211_v32 = vlaneseq (!%p164_p2) }
   0x6   : > { %167 = sbr.rel (%p164_p2) target bundleno = 2915 (0xb63), region = 36  ;;  %v203_v1 = vld [vmem:[%s4482_s1] sm:$0xff] (!%p164_p2)  ;;  %3772 = vset.pattern.permute.xlu1 (!%p164_p2), %v3844_v2  ;;  %3770 = vset.pattern.permute.xlu0 (!%p164_p2), %v3844_v2  ;;  %v456_v7 = vld [vmem:[%s4484_s3 + $0x28] sm:$0xff] (!%p164_p2)  ;;  %v633_v8 = vld [vmem:[%s4484_s3 + $0x38] sm:$0xff] (!%p164_p2)  ;;  %p190_p3 = scmp.lt.s32.totalorder (!%p164_p2), %s3656_s25, 7  ;;  %vm339_vm0 = vcmask (!%p164_p2), 1043456  }
   0x7   : > { %301 = vperm.xlu1 (!%p164_p2), %3772, %v204_v0   ;;  %207 = vperm.xlu0 (!%p164_p2), %3770, %v203_v1   ;;  %v455_v6 = vld [vmem:[%s4484_s3 + $0x20] sm:$0xff] (!%p164_p2)  ;;  %v635_v9 = vld [vmem:[%s4484_s3 + $0x48] sm:$0xff] (!%p164_p2)  ;;  %v637_v10 = vld [vmem:[%s4484_s3 + $0x58] sm:$0xff] (!%p164_p2)  ;;  %v212_v34 = vshrl.u32 (!%p164_p2), %v211_v32, 7  ;;  %vm335_vm1 = vcmask (!%p164_p2), 64512   ;;  %vm488_vm2 = vcmask (!%p164_p2), 130048  }
   0x8   : > { %384 = vmatprep.mubr.bf16.mxu0 (!%p164_p2), %v3844_v2  ;;  %427 = vmatprep.mubr.bf16.mxu1 (!%p164_p2), %v3844_v2  ;;  %v639_v11 = vld [vmem:[%s4484_s3 + $0x68] sm:$0xff] (!%p164_p2)  ;;  %v924_v12 = vld [vmem:[%s4484_s3 + $0x78] sm:$0xff] (!%p164_p2)  ;;  %vm701_vm3 = vcmask (!%p164_p2), 261120   ;;  %vm1060_vm4 = vcmask (!%p164_p2), 523264  }
   0x9   : > { %v926_v13 = vld [vmem:[%s4484_s3 + $0x88] sm:$0xff] (!%p164_p2)  ;;  %v928_v14 = vld [vmem:[%s4484_s3 + $0x98] sm:$0xff] (!%p164_p2)  ;;  %v213_v36 = vsub.s32 (!%p164_p2), 0, %v212_v34  ;;  %v217_v37 = vsub.s32 (!%p164_p2), 2, %v212_v34  ;;  %v221_v38 = vsub.s32 (!%p164_p2), 4, %v212_v34  ;;  %v225_v39 = vsub.s32 (!%p164_p2), 6, %v212_v34 }
   0xa   : > { %v930_v15 = vld [vmem:[%s4484_s3 + $0xa8] sm:$0xff] (!%p164_p2)  ;;  %v932_v16 = vld [vmem:[%s4484_s3 + $0xb8] sm:$0xff] (!%p164_p2)  ;;  %v257_v42 = vsub.s32 (!%p164_p2), 1, %v212_v34  ;;  %v261_v43 = vsub.s32 (!%p164_p2), 3, %v212_v34  ;;  %v265_v44 = vsub.s32 (!%p164_p2), 5, %v212_v34  ;;  %v269_v45 = vsub.s32 (!%p164_p2), 7, %v212_v34 }
   0xb   : > { %322 = vperm.xlu1 (!%p164_p2), %3772, %v318_v3   ;;  %3771 = vset.pattern.permute.xlu0 (!%p164_p2), %v3845_v4  ;;  %v934_v17 = vld [vmem:[%s4484_s3 + $0xc8] sm:$0xff] (!%p164_p2)  ;;  %v936_v18 = vld [vmem:[%s4484_s3 + $0xd8] sm:$0xff] (!%p164_p2) }
   0xc   : > { %252 = vperm.xlu0 (!%p164_p2), %3771, %v203_v1   ;;  %v938_v19 = vld [vmem:[%s4484_s3 + $0xe8] sm:$0xff] (!%p164_p2)  ;;  %v1439_v20 = vld [vmem:[%s4484_s3 + $0xf8] sm:$0xff] (!%p164_p2) }
   0xd   : > { %v1441_v21 = vld [vmem:[%s4484_s3 + $0x108] sm:$0xff]  ;;  %v1443_v22 = vld [vmem:[%s4484_s3 + $0x118] sm:$0xff]  ;;  %s4487_s25 = smov (!%p190_p3, %s3656_s25), 7 }
   0xe   : > { %v1445_v23 = vld [vmem:[%s4484_s3 + $0x128] sm:$0xff]  ;;  %v1447_v24 = vld [vmem:[%s4484_s3 + $0x138] sm:$0xff]  ;;  %s3657_s16 = sshll.u32 %s4487_s25, 1  ;;  %s3659_s11 = sshll.u32 %s4487_s25, 3 }
   0xf   : > { %327 = vperm.xlu1 %3772, %v319_v5   ;;  %v1449_v25 = vld [vmem:[%s4484_s3 + $0x148] sm:$0xff]  ;;  %v1451_v26 = vld [vmem:[%s4484_s3 + $0x158] sm:$0xff]  ;;  %s193_s10 = scalar_lea.vmem %s4481_s0, %s3657_s16  ;;  %s199_s14 = scalar_lea.vmem %s4485_s4, %s3659_s11 }
  0x10   : > { %3773 = vset.pattern.permute.xlu0 %v3844_v2  ;;  %v1453_v27 = vld [vmem:[%s4484_s3 + $0x168] sm:$0xff]  ;;  %v1455_v28 = vld [vmem:[%s4484_s3 + $0x178] sm:$0xff]  ;;  %v202_v41 = vld [vmem:[%s193_s10] sm:$0xff] }
  0x11   : > { %v1457_v29 = vld [vmem:[%s4484_s3 + $0x188] sm:$0xff]  ;;  %v1459_v30 = vld [vmem:[%s4484_s3 + $0x198] sm:$0xff]  ;;  %v214_v46 = vrot.slane %v202_v41, %v213_v36  ;;  %v218_v47 = vrot.slane %v202_v41, %v217_v37  ;;  %v222_v48 = vrot.slane %v202_v41, %v221_v38  ;;  %v226_v49 = vrot.slane %v202_v41, %v225_v39  ;;  %v457_v38 = vld [vmem:[%s4484_s3 + $0x30] sm:$0xff] }
  0x12   : > { %v1461_v31 = vld [vmem:[%s4484_s3 + $0x1a8] sm:$0xff]  ;;  %v1463_v33 = vld [vmem:[%s4484_s3 + $0x1b8] sm:$0xff]  ;;  %v258_v51 = vrot.slane %v202_v41, %v257_v42  ;;  %v262_v52 = vrot.slane %v202_v41, %v261_v43  ;;  %v266_v53 = vrot.slane %v202_v41, %v265_v44  ;;  %v270_v54 = vrot.slane %v202_v41, %v269_v45  ;;  %v638_v44 = vld [vmem:[%s4484_s3 + $0x60] sm:$0xff] }
  0x13   : > { %465 = vperm.xlu1 %3772, %v455_v6   ;;  %v1465_v35 = vld [vmem:[%s4484_s3 + $0x1c8] sm:$0xff]  ;;  %v1467_v40 = vld [vmem:[%s4484_s3 + $0x1d8] sm:$0xff]  ;;  %v234_v56 = vrot.slane %v214_v46, %v213_v36  ;;  %v238_v57 = vrot.slane %v218_v47, %v213_v36  ;;  %v242_v58 = vrot.slane %v222_v48, %v213_v36  ;;  %v246_v59 = vrot.slane %v226_v49, %v213_v36  ;;  %v640_v46 = vld [vmem:[%s4484_s3 + $0x70] sm:$0xff] }
  0x14   : > { %v1469_v50 = vld [vmem:[%s4484_s3 + $0x1e8] sm:$0xff]  ;;  %v2321_v60 = vld [vmem:[%s4484_s3 + $0x1f8] sm:$0xff]  ;;  %v278_v61 = vrot.slane %v258_v51, %v257_v42  ;;  %v282_v62 = vrot.slane %v262_v52, %v257_v42  ;;  %v286_v63 = vrot.slane %v266_v53, %v257_v42  ;;  %v290_v0 = vrot.slane %v270_v54, %v257_v42  ;;  %v636_v42 = vld [vmem:[%s4484_s3 + $0x50] sm:$0xff] }
  0x15   : > { %v2329_v34 = vld [vmem:[%s4484_s3 + $0x238] sm:$0xff]  ;;  %v2335_v39 = vld [vmem:[%s4484_s3 + $0x268] sm:$0xff]  ;;  %v925_v48 = vld [vmem:[%s4484_s3 + $0x80] sm:$0xff] }
  0x16   : > { %v454_v36 = vld [vmem:[%s4484_s3 + $0x18] sm:$0xff]  ;;  %v2829_v43 = vld [vmem:[%s4484_s3 + $0x288] sm:$0xff]  ;;  %v929_v52 = vld [vmem:[%s4484_s3 + $0xa0] sm:$0xff] }
  0x17   : > { %470 = vperm.xlu1 %3772, %v456_v7   ;;  %460 = vperm.xlu0 %3773, %v454_v36   ;;  %v2333_v37 = vld [vmem:[%s4484_s3 + $0x258] sm:$0xff]  ;;  %v2833_v47 = vld [vmem:[%s4484_s3 + $0x2a8] sm:$0xff]  ;;  %v931_v54 = vld [vmem:[%s4484_s3 + $0xb0] sm:$0xff] }
  0x18   : > { %v2827_v41 = vld [vmem:[%s4484_s3 + $0x278] sm:$0xff]  ;;  %v3099_v51 = vld [vmem:[%s4484_s3 + $0x2c8] sm:$0xff] }
  0x19   : > { %v2831_v45 = vld [vmem:[%s4484_s3 + $0x298] sm:$0xff] }
  0x1a   : > { %v3097_v49 = vld [vmem:[%s4484_s3 + $0x2b8] sm:$0xff] }
  0x1b   : > { %643 = vperm.xlu1 %3772, %v633_v8   ;;  %475 = vperm.xlu0 %3773, %v457_v38   ;;  %v3269_v53 = vld [vmem:[%s4484_s3 + $0x2d8] sm:$0xff] }
  0x1f   : > { %653 = vperm.xlu1 %3772, %v635_v9  }
  0x23   : > { %663 = vperm.xlu1 %3772, %v637_v10  }
  0x27   : > { %673 = vperm.xlu1 %3772, %v639_v11   ;;  %v2323_v11 = vld [vmem:[%s4484_s3 + $0x208] sm:$0xff] }
  0x2b   : > { %942 = vperm.xlu1 %3772, %v924_v12  }
  0x2f   : > { %952 = vperm.xlu1 %3772, %v926_v13  }
  0x33   : > { %962 = vperm.xlu1 %3772, %v928_v14  }
  0x37   : > { %972 = vperm.xlu1 %3772, %v930_v15  }
  0x3b   : > { %982 = vperm.xlu1 %3772, %v932_v16  }
  0x3f   : > { %992 = vperm.xlu1 %3772, %v934_v17   ;;  %v2325_v17 = vld [vmem:[%s4484_s3 + $0x218] sm:$0xff] }
  0x43   : > { %1002 = vperm.xlu1 %3772, %v936_v18  }
  0x47   : > { %1012 = vperm.xlu1 %3772, %v938_v19  }
  0x4b   : > { %1473 = vperm.xlu1 %3772, %v1439_v20  }
  0x4f   : > { %1483 = vperm.xlu1 %3772, %v1441_v21  }
  0x53   : > { %1493 = vperm.xlu1 %3772, %v1443_v22  }
  0x57   : > { %1503 = vperm.xlu1 %3772, %v1445_v23  }
  0x5b   : > { %1513 = vperm.xlu1 %3772, %v1447_v24  }
  0x5f   : > { %1523 = vperm.xlu1 %3772, %v1449_v25  }
  0x63   : > { %1533 = vperm.xlu1 %3772, %v1451_v26  }
  0x67   : > { %1543 = vperm.xlu1 %3772, %v1453_v27  }
  0x6b   : > { %1553 = vperm.xlu1 %3772, %v1455_v28   ;;  %v2327_v28 = vld [vmem:[%s4484_s3 + $0x228] sm:$0xff] }
  0x6f   : > { %1563 = vperm.xlu1 %3772, %v1457_v29  }
  0x73   : > { %1573 = vperm.xlu1 %3772, %v1459_v30  }
  0x77   : > { %1583 = vperm.xlu1 %3772, %v1461_v31  }
  0x7b   : > { %1593 = vperm.xlu1 %3772, %v1463_v33   ;;  %v3774_v33 = vld [vmem:[%s4483_s2] ss:$8 sps:$4 sm:$0xff]  }
  0x7f   : > { %1603 = vperm.xlu1 %3772, %v1465_v35   ;;  %v2331_v35 = vld [vmem:[%s4484_s3 + $0x248] sm:$0xff] }
  0x83   : > { %1613 = vperm.xlu1 %3772, %v1467_v40   ;;  %v634_v40 = vld [vmem:[%s4484_s3 + $0x40] sm:$0xff] }
  0x84   : > { %648 = vperm.xlu0 %3773, %v634_v40  }
  0x86   : > { %v208_v55 = vpop.permute.xlu0 %207  ;;  %v302_v16 = vpop.permute.xlu1 %301 }
  0x87   : > { %1623 = vperm.xlu1 %3772, %v1469_v50   ;;  %v247_v1 = vmul.f32 %v234_v56, %v208_v55  ;;  %v248_v3 = vmul.f32 %v238_v57, %v208_v55  ;;  %v249_v4 = vmul.f32 %v242_v58, %v208_v55  ;;  %v250_v5 = vmul.f32 %v246_v59, %v208_v55  ;;  %v927_v50 = vld [vmem:[%s4484_s3 + $0x90] sm:$0xff]  ;;  %v3388_v55 = vld [vmem:[%s4484_s3 + $0x2e8] sm:$0xff]  ;;  %v933_v56 = vld [vmem:[%s4484_s3 + $0xc0] sm:$0xff] }
  0x88   : > { %658 = vperm.xlu0 %3773, %v636_v42   ;;  %v935_v57 = vld [vmem:[%s4484_s3 + $0xd0] sm:$0xff]  ;;  %v937_v58 = vld [vmem:[%s4484_s3 + $0xe0] sm:$0xff] }
  0x89   : > { %v939_v59 = vld [vmem:[%s4484_s3 + $0xf0] sm:$0xff] }
  0x8b   : > { %2339 = vperm.xlu1 %3772, %v2321_v60   ;;  %v253_v6 = vpop.permute.xlu0 %252  ;;  %v1440_v60 = vld [vmem:[%s4484_s3 + $0x100] sm:$0xff] }
  0x8c   : > { %v291_v7 = vmul.f32 %v278_v61, %v253_v6  ;;  %v292_v8 = vmul.f32 %v282_v62, %v253_v6  ;;  %v293_v9 = vmul.f32 %v286_v63, %v253_v6  ;;  %v294_v10 = vmul.f32 %v290_v0, %v253_v6  ;;  %668 = vperm.xlu0 %3773, %v638_v44   ;;  %v1442_v61 = vld [vmem:[%s4484_s3 + $0x110] sm:$0xff]  ;;  %v1444_v62 = vld [vmem:[%s4484_s3 + $0x120] sm:$0xff] }
  0x8d   : > { %v1446_v63 = vld [vmem:[%s4484_s3 + $0x130] sm:$0xff]  ;;  %v1448_v0 = vld [vmem:[%s4484_s3 + $0x140] sm:$0xff] }
  0x8e   : > { %v296_v12 = vadd.f32 %v292_v8, %v248_v3  ;;  %v298_v13 = vadd.f32 %v294_v10, %v250_v5  ;;  %v295_v14 = vadd.f32 %v291_v7, %v247_v1  ;;  %v297_v15 = vadd.f32 %v293_v9, %v249_v4  ;;  %v1450_v1 = vld [vmem:[%s4484_s3 + $0x150] sm:$0xff]  ;;  %v1452_v3 = vld [vmem:[%s4484_s3 + $0x160] sm:$0xff] }
  0x8f   : > { %2349 = vperm.xlu1 %3772, %v2323_v11   ;;  %v1454_v4 = vld [vmem:[%s4484_s3 + $0x170] sm:$0xff]  ;;  %v1456_v5 = vld [vmem:[%s4484_s3 + $0x180] sm:$0xff] }
  0x90   : > { %v305_v18 = vadd.f32 %v302_v16, %v296_v12  ;;  %v307_v19 = vadd.f32 %v302_v16, %v298_v13  ;;  %v304_v20 = vadd.f32 %v302_v16, %v295_v14  ;;  %v306_v21 = vadd.f32 %v302_v16, %v297_v15  ;;  %678 = vperm.xlu0 %3773, %v640_v46   ;;  %v1458_v6 = vld [vmem:[%s4484_s3 + $0x190] sm:$0xff]  ;;  %v1460_v7 = vld [vmem:[%s4484_s3 + $0x1a0] sm:$0xff] }
  0x91   : > { %v1462_v8 = vld [vmem:[%s4484_s3 + $0x1b0] sm:$0xff]  ;;  %v1464_v9 = vld [vmem:[%s4484_s3 + $0x1c0] sm:$0xff] }
  0x92   : > { %v309_v22 = vmax.f32 %v305_v18, 0.0  ;;  %v311_v23 = vmax.f32 %v307_v19, 0.0  ;;  %v308_v24 = vmax.f32 %v304_v20, 0.0  ;;  %v310_v25 = vmax.f32 %v306_v21, 0.0  ;;  %v1466_v10 = vld [vmem:[%s4484_s3 + $0x1d0] sm:$0xff]  ;;  %v1468_v11 = vld [vmem:[%s4484_s3 + $0x1e0] sm:$0xff] }
  0x93   : > { %2359 = vperm.xlu1 %3772, %v2325_v17   ;;  %v1470_v12 = vld [vmem:[%s4484_s3 + $0x1f0] sm:$0xff]  ;;  %v2322_v13 = vld [vmem:[%s4484_s3 + $0x200] sm:$0xff] }
  0x94   : > { %v313_v26 = vpack.c.bf16 %v309_v22, %v309_v22  ;;  %v315_v27 = vpack.c.bf16 %v311_v23, %v311_v23  ;;  %v312_v29 = vpack.c.bf16 %v308_v24, %v308_v24  ;;  %v314_v30 = vpack.c.bf16 %v310_v25, %v310_v25  ;;  %947 = vperm.xlu0 %3773, %v925_v48   ;;  %v2324_v14 = vld [vmem:[%s4484_s3 + $0x210] sm:$0xff]  ;;  %v2326_v15 = vld [vmem:[%s4484_s3 + $0x220] sm:$0xff] }
  0x95   : > { %v2328_v16 = vld [vmem:[%s4484_s3 + $0x230] sm:$0xff]  ;;  %v2330_v17 = vld [vmem:[%s4484_s3 + $0x240] sm:$0xff] }
  0x96   : > { %3661 = vmatprep.subr.msk.bf16.mxu0 %vm339_vm0, %v313_v26  ;;  %3663 = vmatprep.subr.msk.bf16.mxu1 %vm339_vm0, %v315_v27  ;;  %v341_v31 = vsel %vm339_vm0, %v312_v29, 0  ;;  %v347_v32 = vsel %vm339_vm0, %v314_v30, 0  ;;  %v2332_v18 = vld [vmem:[%s4484_s3 + $0x250] sm:$0xff]  ;;  %v2334_v19 = vld [vmem:[%s4484_s3 + $0x260] sm:$0xff]  ;;  %v323_v29 = vpop.permute.xlu1 %322 }
  0x97   : > { %2369 = vperm.xlu1 %3772, %v2327_v28   ;;  %353 = vmatpush1.bf16.msra.mxu0 %v341_v31  ;;  %v2336_v20 = vld [vmem:[%s4484_s3 + $0x270] sm:$0xff]  ;;  %v2828_v21 = vld [vmem:[%s4484_s3 + $0x280] sm:$0xff] }
  0x98   : > { %396 = vmatpush1.bf16.msra.mxu1 %v347_v32  ;;  %957 = vperm.xlu0 %3773, %v927_v50   ;;  %v2830_v22 = vld [vmem:[%s4484_s3 + $0x290] sm:$0xff]  ;;  %v2832_v23 = vld [vmem:[%s4484_s3 + $0x2a0] sm:$0xff] }
  0x99   : > { %v2834_v24 = vld [vmem:[%s4484_s3 + $0x2b0] sm:$0xff]  ;;  %v3098_v25 = vld [vmem:[%s4484_s3 + $0x2c0] sm:$0xff] }
  0x9a   : > { %3662 = vmatmul.mubr.msk.bf16.vlgmr.msra.gmra.mrb[0].mxu0 %vm335_vm1, %v3774_v33  ;;  %v3100_v26 = vld [vmem:[%s4484_s3 + $0x2d0] sm:$0xff]  ;;  %v3270_v27 = vld [vmem:[%s4484_s3 + $0x2e0] sm:$0xff]  ;;  %v328_v30 = vpop.permute.xlu1 %327 }
  0x9b   : > { %3664 = vmatmul.mubr.msk.bf16.vlgmr.msra.gmra.mrb[0].mxu1 %vm335_vm1, %v3774_v33  ;;  %2379 = vperm.xlu1 %3772, %v2329_v34   ;;  %v3488_v28 = vld [vmem:[%s4484_s3 + $0x2f0] sm:$0xff] }
  0x9c   : > { %527 = vmatprep.mubr.bf16.mxu0 %v3844_v2  ;;  %580 = vmatprep.mubr.bf16.mxu1 %v3844_v2 }
  0x9d   : > { %967 = vperm.xlu0 %3773, %v929_v52  }
  0x9f   : > { %2389 = vperm.xlu1 %3772, %v2331_v35  }
  0xa1   : > { %977 = vperm.xlu0 %3773, %v931_v54  }
  0xa3   : > { %2399 = vperm.xlu1 %3772, %v2333_v37  }
  0xa5   : > { %987 = vperm.xlu0 %3773, %v933_v56  }
  0xa7   : > { %2409 = vperm.xlu1 %3772, %v2335_v39  }
  0xa9   : > { %997 = vperm.xlu0 %3773, %v935_v57  }
  0xab   : > { %2837 = vperm.xlu1 %3772, %v2827_v41  }
  0xad   : > { %1007 = vperm.xlu0 %3773, %v937_v58  }
  0xaf   : > { %2847 = vperm.xlu1 %3772, %v2829_v43  }
  0xb1   : > { %1017 = vperm.xlu0 %3773, %v939_v59   ;;  %v3775_v59 = vld [vmem:[%s4483_s2 + $0x10] ss:$8 sps:$4 sm:$0xff]  }
  0xb3   : > { %2857 = vperm.xlu1 %3772, %v2831_v45  }
  0xb5   : > { %1478 = vperm.xlu0 %3773, %v1440_v60   ;;  %v3776_v60 = vld [vmem:[%s4483_s2 + $0x20] ss:$8 sps:$4 sm:$0xff]  }
  0xb7   : > { %2867 = vperm.xlu1 %3772, %v2833_v47  }
  0xb9   : > { %1488 = vperm.xlu0 %3773, %v1442_v61   ;;  %v466_v61 = vpop.permute.xlu1 %465 }
  0xbb   : > { %3103 = vperm.xlu1 %3772, %v3097_v49  }
  0xbd   : > { %1498 = vperm.xlu0 %3773, %v1444_v62   ;;  %v461_v62 = vpop.permute.xlu0 %460 }
  0xbf   : > { %3113 = vperm.xlu1 %3772, %v3099_v51  }
  0xc1   : > { %1508 = vperm.xlu0 %3773, %v1446_v63  }
  0xc3   : > { %3273 = vperm.xlu1 %3772, %v3269_v53  }
  0xc5   : > { %1518 = vperm.xlu0 %3773, %v1448_v0  }
  0xc7   : > { %3391 = vperm.xlu1 %3772, %v3388_v55  }
  0xc9   : > { %1528 = vperm.xlu0 %3773, %v1450_v1  }
  0xcd   : > { %1538 = vperm.xlu0 %3773, %v1452_v3  }
  0xd1   : > { %1548 = vperm.xlu0 %3773, %v1454_v4  }
  0xd5   : > { %1558 = vperm.xlu0 %3773, %v1456_v5  }
  0xd9   : > { %1568 = vperm.xlu0 %3773, %v1458_v6  }
  0xdd   : > { %1578 = vperm.xlu0 %3773, %v1460_v7  }
  0xe1   : > { %1588 = vperm.xlu0 %3773, %v1462_v8  }
  0xe5   : > { %1598 = vperm.xlu0 %3773, %v1464_v9  }
  0xe9   : > { %1608 = vperm.xlu0 %3773, %v1466_v10  }
  0xed   : > { %1618 = vperm.xlu0 %3773, %v1468_v11  }
  0xf1   : > { %1628 = vperm.xlu0 %3773, %v1470_v12  }
  0xf5   : > { %2344 = vperm.xlu0 %3773, %v2322_v13  }
  0xf9   : > { %2354 = vperm.xlu0 %3773, %v2324_v14  }
  0xfd   : > { %2364 = vperm.xlu0 %3773, %v2326_v15  }
 0x101   : > { %2374 = vperm.xlu0 %3773, %v2328_v16  }
 0x105   : > { %2384 = vperm.xlu0 %3773, %v2330_v17  }
 0x109   : > { %2394 = vperm.xlu0 %3773, %v2332_v18  }
 0x10d   : > { %2404 = vperm.xlu0 %3773, %v2334_v19  }
 0x111   : > { %2414 = vperm.xlu0 %3773, %v2336_v20  }
 0x115   : > { %2842 = vperm.xlu0 %3773, %v2828_v21  }
 0x119   : > { %2852 = vperm.xlu0 %3773, %v2830_v22  }
 0x11d   : > { %2862 = vperm.xlu0 %3773, %v2832_v23   ;;  %v471_v23 = vpop.permute.xlu1 %470 }
 0x121   : > { %2872 = vperm.xlu0 %3773, %v2834_v24  }
 0x125   : > { %3108 = vperm.xlu0 %3773, %v3098_v25  }
 0x129   : > { %3118 = vperm.xlu0 %3773, %v3100_v26   ;;  %v476_v26 = vpop.permute.xlu0 %475 }
 0x12d   : > { %3278 = vperm.xlu0 %3773, %v3270_v27  }
 0x131   : > { %3491 = vperm.xlu0 %3773, %v3488_v28  }
 0x16d   : > { %v386_v31 = vpop.f32.mrb[0].mxu0 }
 0x16e   : > { %v387_v32 = vadd.f32 %v386_v31, %v323_v29  ;;  %v429_v33 = vpop.f32.mrb[0].mxu1  ;;  %v388_v34 = vpop.f32.mrb[1].mxu0 }
 0x16f   : > { %v430_v35 = vadd.f32 %v429_v33, %v323_v29  ;;  %v389_v36 = vadd.f32 %v388_v34, %v323_v29  ;;  %v431_v37 = vpop.f32.mrb[1].mxu1  ;;  %v390_v38 = vpop.f32.mrb[2].mxu0 }
 0x170   : > { %v432_v39 = vadd.f32 %v431_v37, %v323_v29  ;;  %v391_v40 = vadd.f32 %v390_v38, %v328_v30  ;;  %v433_v41 = vpop.f32.mrb[2].mxu1  ;;  %v392_v42 = vpop.f32.mrb[3].mxu0  ;;  %v438_v46 = vmax.f32 %v387_v32, 0.0 }
 0x171   : > { %v434_v43 = vadd.f32 %v433_v41, %v328_v30  ;;  %v393_v44 = vadd.f32 %v392_v42, %v328_v30  ;;  %v435_v45 = vpop.f32.mrb[3].mxu1  ;;  %v440_v49 = vmax.f32 %v430_v35, 0.0  ;;  %v439_v50 = vmax.f32 %v389_v36, 0.0 }
 0x172   : > { %v442_v47 = vmax.f32 %v391_v40, 0.0  ;;  %v436_v48 = vadd.f32 %v435_v45, %v328_v30  ;;  %v441_v53 = vmax.f32 %v432_v39, 0.0 }
 0x173   : > { %v444_v51 = vmax.f32 %v434_v43, 0.0  ;;  %v443_v52 = vmax.f32 %v393_v44, 0.0 }
 0x174   : > { %v446_v54 = vpack.c.bf16 %v442_v47, %v438_v46  ;;  %v445_v55 = vmax.f32 %v436_v48, 0.0 }
 0x175   : > { %v448_v56 = vpack.c.bf16 %v444_v51, %v440_v49  ;;  %v447_v57 = vpack.c.bf16 %v443_v52, %v439_v50 }
 0x176   : > { %v449_v58 = vpack.c.bf16 %v445_v55, %v441_v53 }
 0x177   : > { %495 = vmatprep.subr.bf16.mxu0 %v447_v57 }
 0x178   : > { %548 = vmatprep.subr.bf16.mxu1 %v449_v58  ;;  %496 = vmatpush1.bf16.msra.mxu0 %v446_v54  ;;  %v3777_v58 = vld [vmem:[%s4483_s2 + $0x30] ss:$8 sps:$4 sm:$0xff]  }
 0x179   : > { %549 = vmatpush1.bf16.msra.mxu1 %v448_v56 }
 0x17b   : > { %3667 = vmatmul.mubr.msk.bf16.vlgmr.msra.gmra.mrb[4].mxu0 %vm488_vm2, %v3775_v59 }
 0x17c   : > { %3669 = vmatmul.mubr.msk.bf16.vlgmr.msra.gmra.mrb[4].mxu1 %vm488_vm2, %v3775_v59  ;;  %537 = vmatprep.mubr.bf16.mxu0 %v3844_v2  ;;  %v3778_v59 = vld [vmem:[%s4483_s2 + $0x40] ss:$8 sps:$4 sm:$0xff]  }
 0x17d   : > { %590 = vmatprep.mubr.bf16.mxu1 %v3844_v2 }
 0x183   : > { %3668 = vmatmul.mubr.msk.bf16.gmra.mrb[8].mxu0 %vm488_vm2, %v3776_v60 }
 0x184   : > { %3670 = vmatmul.mubr.msk.bf16.gmra.mrb[8].mxu1 %vm488_vm2, %v3776_v60  ;;  %746 = vmatprep.mubr.bf16.mxu0 %v3844_v2  ;;  %v3779_v60 = vld [vmem:[%s4483_s2 + $0x50] ss:$8 sps:$4 sm:$0xff]  }
 0x185   : > { %819 = vmatprep.mubr.bf16.mxu1 %v3844_v2 }
 0x24e   : > { %v529_v63 = vpop.f32.mrb[4].mxu0 }
 0x24f   : > { %v530_v0 = vadd.f32 %v529_v63, %v461_v62  ;;  %v582_v1 = vpop.f32.mrb[4].mxu1  ;;  %v531_v3 = vpop.f32.mrb[5].mxu0 }
 0x250   : > { %v583_v4 = vadd.f32 %v582_v1, %v461_v62  ;;  %v532_v5 = vadd.f32 %v531_v3, %v461_v62  ;;  %v584_v6 = vpop.f32.mrb[5].mxu1  ;;  %v533_v7 = vpop.f32.mrb[6].mxu0 }
 0x251   : > { %v585_v8 = vadd.f32 %v584_v6, %v461_v62  ;;  %v534_v9 = vadd.f32 %v533_v7, %v466_v61  ;;  %v586_v10 = vpop.f32.mrb[6].mxu1  ;;  %v535_v11 = vpop.f32.mrb[7].mxu0  ;;  %v601_v16 = vmax.f32 %v530_v0, 0.0 }
 0x252   : > { %v603_v12 = vmax.f32 %v583_v4, 0.0  ;;  %v587_v13 = vadd.f32 %v586_v10, %v466_v61  ;;  %v536_v14 = vadd.f32 %v535_v11, %v466_v61  ;;  %v588_v15 = vpop.f32.mrb[7].mxu1  ;;  %v602_v20 = vmax.f32 %v532_v5, 0.0  ;;  %v644_v62 = vpop.permute.xlu1 %643 }
 0x253   : > { %v604_v17 = vmax.f32 %v585_v8, 0.0  ;;  %v605_v18 = vmax.f32 %v534_v9, 0.0  ;;  %v589_v19 = vadd.f32 %v588_v15, %v466_v61  ;;  %v3780_v61 = vld [vmem:[%s4483_s2 + $0x60] ss:$8 sps:$4 sm:$0xff]   ;;  %v649_v63 = vpop.permute.xlu0 %648 }
 0x254   : > { %v607_v21 = vmax.f32 %v587_v13, 0.0  ;;  %v606_v22 = vmax.f32 %v536_v14, 0.0 }
 0x255   : > { %v617_v24 = vpack.c.bf16 %v605_v18, %v601_v16  ;;  %v608_v25 = vmax.f32 %v589_v19, 0.0 }
 0x256   : > { %v619_v27 = vpack.c.bf16 %v607_v21, %v603_v12  ;;  %v618_v28 = vpack.c.bf16 %v606_v22, %v602_v20  ;;  %v539_v29 = vpop.f32.mrb[8].mxu0 }
 0x257   : > { %v620_v30 = vpack.c.bf16 %v608_v25, %v604_v17  ;;  %v540_v31 = vadd.f32 %v539_v29, %v471_v23  ;;  %v592_v32 = vpop.f32.mrb[8].mxu1  ;;  %v541_v33 = vpop.f32.mrb[9].mxu0 }
 0x258   : > { %v593_v34 = vadd.f32 %v592_v32, %v471_v23  ;;  %v542_v35 = vadd.f32 %v541_v33, %v471_v23  ;;  %v594_v36 = vpop.f32.mrb[9].mxu1  ;;  %v543_v37 = vpop.f32.mrb[10].mxu0  ;;  %714 = vmatprep.subr.bf16.mxu0 %v618_v28 }
 0x259   : > { %v595_v38 = vadd.f32 %v594_v36, %v471_v23  ;;  %v544_v39 = vadd.f32 %v543_v37, %v476_v26  ;;  %v596_v40 = vpop.f32.mrb[10].mxu1  ;;  %787 = vmatprep.subr.bf16.mxu1 %v620_v30  ;;  %v545_v41 = vpop.f32.mrb[11].mxu0  ;;  %715 = vmatpush1.bf16.msra.mxu0 %v617_v24  ;;  %v609_v45 = vmax.f32 %v540_v31, 0.0 }
 0x25a   : > { %v597_v42 = vadd.f32 %v596_v40, %v476_v26  ;;  %v546_v43 = vadd.f32 %v545_v41, %v476_v26  ;;  %v598_v44 = vpop.f32.mrb[11].mxu1  ;;  %788 = vmatpush1.bf16.msra.mxu1 %v619_v27  ;;  %v611_v48 = vmax.f32 %v593_v34, 0.0  ;;  %v610_v49 = vmax.f32 %v542_v35, 0.0  ;;  %v654_v23 = vpop.permute.xlu1 %653 }
 0x25b   : > { %v613_v46 = vmax.f32 %v544_v39, 0.0  ;;  %v599_v47 = vadd.f32 %v598_v44, %v476_v26  ;;  %v612_v52 = vmax.f32 %v595_v38, 0.0  ;;  %v659_v27 = vpop.permute.xlu0 %658 }
 0x25c   : > { %v615_v50 = vmax.f32 %v597_v42, 0.0  ;;  %v614_v51 = vmax.f32 %v546_v43, 0.0 }
 0x25d   : > { %v621_v53 = vpack.c.bf16 %v613_v46, %v609_v45  ;;  %v616_v54 = vmax.f32 %v599_v47, 0.0 }
 0x25e   : > { %v623_v55 = vpack.c.bf16 %v615_v50, %v611_v48  ;;  %v622_v56 = vpack.c.bf16 %v614_v51, %v610_v49 }
 0x25f   : > { %v624_v57 = vpack.c.bf16 %v616_v54, %v612_v52 }
 0x260   : > { %716 = vmatprep.subr.bf16.mxu0 %v622_v56 }
 0x261   : > { %789 = vmatprep.subr.bf16.mxu1 %v624_v57  ;;  %717 = vmatpush1.bf16.msra.mxu0 %v621_v53  ;;  %v664_v53 = vpop.permute.xlu1 %663  ;;  %v669_v57 = vpop.permute.xlu0 %668 }
 0x262   : > { %790 = vmatpush1.bf16.msra.mxu1 %v623_v55 }
 0x264   : > { %3675 = vmatmul.mubr.msk.bf16.vlgmr.msra.gmra.mrb[12].mxu0 %vm701_vm3, %v3777_v58 }
 0x265   : > { %3679 = vmatmul.mubr.msk.bf16.vlgmr.msra.gmra.mrb[12].mxu1 %vm701_vm3, %v3777_v58  ;;  %756 = vmatprep.mubr.bf16.mxu0 %v3844_v2 }
 0x266   : > { %829 = vmatprep.mubr.bf16.mxu1 %v3844_v2 }
 0x26c   : > { %3676 = vmatmul.mubr.msk.bf16.gmra.mrb[16].mxu0 %vm701_vm3, %v3778_v59 }
 0x26d   : > { %3680 = vmatmul.mubr.msk.bf16.gmra.mrb[16].mxu1 %vm701_vm3, %v3778_v59  ;;  %766 = vmatprep.mubr.bf16.mxu0 %v3844_v2 }
 0x26e   : > { %839 = vmatprep.mubr.bf16.mxu1 %v3844_v2 }
 0x274   : > { %3677 = vmatmul.mubr.msk.bf16.gmra.mrb[20].mxu0 %vm701_vm3, %v3779_v60 }
 0x275   : > { %3681 = vmatmul.mubr.msk.bf16.gmra.mrb[20].mxu1 %vm701_vm3, %v3779_v60  ;;  %776 = vmatprep.mubr.bf16.mxu0 %v3844_v2 }
 0x276   : > { %849 = vmatprep.mubr.bf16.mxu1 %v3844_v2 }
 0x27c   : > { %3678 = vmatmul.mubr.msk.bf16.gmra.mrb[24].mxu0 %vm701_vm3, %v3780_v61 }
 0x27d   : > { %3682 = vmatmul.mubr.msk.bf16.gmra.mrb[24].mxu1 %vm701_vm3, %v3780_v61  ;;  %1117 = vmatprep.mubr.bf16.mxu0 %v3844_v2 }
 0x27e   : > { %1230 = vmatprep.mubr.bf16.mxu1 %v3844_v2 }
 0x337   : > { %v748_v0 = vpop.f32.mrb[12].mxu0 }
 0x338   : > { %v749_v1 = vadd.f32 %v748_v0, %v644_v62  ;;  %v821_v3 = vpop.f32.mrb[12].mxu1  ;;  %v750_v4 = vpop.f32.mrb[13].mxu0 }
 0x339   : > { %v822_v5 = vadd.f32 %v821_v3, %v644_v62  ;;  %v751_v6 = vadd.f32 %v750_v4, %v644_v62  ;;  %v823_v7 = vpop.f32.mrb[13].mxu1  ;;  %v752_v8 = vpop.f32.mrb[14].mxu0 }
 0x33a   : > { %v824_v9 = vadd.f32 %v823_v7, %v644_v62  ;;  %v753_v10 = vadd.f32 %v752_v8, %v649_v63  ;;  %v825_v11 = vpop.f32.mrb[14].mxu1  ;;  %v754_v12 = vpop.f32.mrb[15].mxu0  ;;  %v860_v16 = vmax.f32 %v749_v1, 0.0 }
 0x33b   : > { %v826_v13 = vadd.f32 %v825_v11, %v649_v63  ;;  %v755_v14 = vadd.f32 %v754_v12, %v649_v63  ;;  %v827_v15 = vpop.f32.mrb[15].mxu1  ;;  %v862_v19 = vmax.f32 %v822_v5, 0.0  ;;  %v861_v20 = vmax.f32 %v751_v6, 0.0 }
 0x33c   : > { %v864_v17 = vmax.f32 %v753_v10, 0.0  ;;  %v828_v18 = vadd.f32 %v827_v15, %v649_v63  ;;  %v863_v24 = vmax.f32 %v824_v9, 0.0 }
 0x33d   : > { %v866_v21 = vmax.f32 %v826_v13, 0.0  ;;  %v865_v22 = vmax.f32 %v755_v14, 0.0 }
 0x33e   : > { %v892_v25 = vpack.c.bf16 %v864_v17, %v860_v16  ;;  %v867_v26 = vmax.f32 %v828_v18, 0.0 }
 0x33f   : > { %v894_v28 = vpack.c.bf16 %v866_v21, %v862_v19  ;;  %v893_v29 = vpack.c.bf16 %v865_v22, %v861_v20  ;;  %v758_v30 = vpop.f32.mrb[16].mxu0  ;;  %v674_v20 = vpop.permute.xlu1 %673 }
 0x340   : > { %v895_v31 = vpack.c.bf16 %v867_v26, %v863_v24  ;;  %v759_v32 = vadd.f32 %v758_v30, %v654_v23  ;;  %v831_v33 = vpop.f32.mrb[16].mxu1  ;;  %v760_v34 = vpop.f32.mrb[17].mxu0 }
 0x341   : > { %v832_v35 = vadd.f32 %v831_v33, %v654_v23  ;;  %v761_v36 = vadd.f32 %v760_v34, %v654_v23  ;;  %v833_v37 = vpop.f32.mrb[17].mxu1  ;;  %v762_v38 = vpop.f32.mrb[18].mxu0  ;;  %1085 = vmatprep.subr.bf16.mxu0 %v893_v29 }
 0x342   : > { %v834_v39 = vadd.f32 %v833_v37, %v654_v23  ;;  %v763_v40 = vadd.f32 %v762_v38, %v659_v27  ;;  %v835_v41 = vpop.f32.mrb[18].mxu1  ;;  %1198 = vmatprep.subr.bf16.mxu1 %v895_v31  ;;  %v764_v42 = vpop.f32.mrb[19].mxu0  ;;  %1086 = vmatpush1.bf16.msra.mxu0 %v892_v25  ;;  %v868_v46 = vmax.f32 %v759_v32, 0.0 }
 0x343   : > { %v836_v43 = vadd.f32 %v835_v41, %v659_v27  ;;  %v765_v44 = vadd.f32 %v764_v42, %v659_v27  ;;  %v837_v45 = vpop.f32.mrb[19].mxu1  ;;  %1199 = vmatpush1.bf16.msra.mxu1 %v894_v28  ;;  %v870_v49 = vmax.f32 %v832_v35, 0.0  ;;  %v869_v50 = vmax.f32 %v761_v36, 0.0  ;;  %v679_v24 = vpop.permute.xlu0 %678 }
 0x344   : > { %v872_v47 = vmax.f32 %v763_v40, 0.0  ;;  %v838_v48 = vadd.f32 %v837_v45, %v659_v27  ;;  %v871_v54 = vmax.f32 %v834_v39, 0.0 }
 0x345   : > { %v874_v51 = vmax.f32 %v836_v43, 0.0  ;;  %v873_v52 = vmax.f32 %v765_v44, 0.0 }
 0x346   : > { %v896_v55 = vpack.c.bf16 %v872_v47, %v868_v46  ;;  %v875_v56 = vmax.f32 %v838_v48, 0.0 }
 0x347   : > { %v898_v58 = vpack.c.bf16 %v874_v51, %v870_v49  ;;  %v897_v59 = vpack.c.bf16 %v873_v52, %v869_v50  ;;  %v768_v60 = vpop.f32.mrb[20].mxu0 }
 0x348   : > { %v899_v61 = vpack.c.bf16 %v875_v56, %v871_v54  ;;  %v769_v62 = vadd.f32 %v768_v60, %v664_v53  ;;  %v841_v63 = vpop.f32.mrb[20].mxu1  ;;  %v770_v0 = vpop.f32.mrb[21].mxu0  ;;  %v3781_v56 = vld [vmem:[%s4483_s2 + $0x70] ss:$8 sps:$4 sm:$0xff]  }
 0x349   : > { %v842_v1 = vadd.f32 %v841_v63, %v664_v53  ;;  %v771_v3 = vadd.f32 %v770_v0, %v664_v53  ;;  %v843_v4 = vpop.f32.mrb[21].mxu1  ;;  %v772_v5 = vpop.f32.mrb[22].mxu0  ;;  %1087 = vmatprep.subr.bf16.mxu0 %v897_v59  ;;  %v3784_v59 = vld [vmem:[%s4483_s2 + $0xa0] ss:$8 sps:$4 sm:$0xff]   ;;  %v3785_v60 = vld [vmem:[%s4483_s2 + $0xb0] ss:$8 sps:$4 sm:$0xff]  }
 0x34a   : > { %v844_v6 = vadd.f32 %v843_v4, %v664_v53  ;;  %v773_v7 = vadd.f32 %v772_v5, %v669_v57  ;;  %v845_v8 = vpop.f32.mrb[22].mxu1  ;;  %1200 = vmatprep.subr.bf16.mxu1 %v899_v61  ;;  %v774_v9 = vpop.f32.mrb[23].mxu0  ;;  %1088 = vmatpush1.bf16.msra.mxu0 %v896_v55  ;;  %v876_v13 = vmax.f32 %v769_v62, 0.0  ;;  %v3786_v61 = vld [vmem:[%s4483_s2 + $0xc0] ss:$8 sps:$4 sm:$0xff]  }
 0x34b   : > { %v846_v10 = vadd.f32 %v845_v8, %v669_v57  ;;  %v775_v11 = vadd.f32 %v774_v9, %v669_v57  ;;  %v847_v12 = vpop.f32.mrb[23].mxu1  ;;  %1201 = vmatpush1.bf16.msra.mxu1 %v898_v58  ;;  %v878_v16 = vmax.f32 %v842_v1, 0.0  ;;  %v877_v17 = vmax.f32 %v771_v3, 0.0  ;;  %v3783_v58 = vld [vmem:[%s4483_s2 + $0x90] ss:$8 sps:$4 sm:$0xff]   ;;  %v943_v0 = vpop.permute.xlu1 %942 }
 0x34c   : > { %v880_v14 = vmax.f32 %v773_v7, 0.0  ;;  %v848_v15 = vadd.f32 %v847_v12, %v669_v57  ;;  %v879_v21 = vmax.f32 %v844_v6, 0.0  ;;  %v3782_v57 = vld [vmem:[%s4483_s2 + $0x80] ss:$8 sps:$4 sm:$0xff]   ;;  %v3787_v62 = vld [vmem:[%s4483_s2 + $0xd0] ss:$8 sps:$4 sm:$0xff]   ;;  %v948_v1 = vpop.permute.xlu0 %947 }
 0x34d   : > { %v882_v18 = vmax.f32 %v846_v10, 0.0  ;;  %v881_v19 = vmax.f32 %v775_v11, 0.0  ;;  %v3788_v63 = vld [vmem:[%s4483_s2 + $0xe0] ss:$8 sps:$4 sm:$0xff]  }
 0x34e   : > { %v900_v22 = vpack.c.bf16 %v880_v14, %v876_v13  ;;  %v883_v23 = vmax.f32 %v848_v15, 0.0 }
 0x34f   : > { %v902_v25 = vpack.c.bf16 %v882_v18, %v878_v16  ;;  %v901_v26 = vpack.c.bf16 %v881_v19, %v877_v17  ;;  %v778_v27 = vpop.f32.mrb[24].mxu0 }
 0x350   : > { %v903_v28 = vpack.c.bf16 %v883_v23, %v879_v21  ;;  %v779_v29 = vadd.f32 %v778_v27, %v674_v20  ;;  %v851_v30 = vpop.f32.mrb[24].mxu1  ;;  %v780_v31 = vpop.f32.mrb[25].mxu0 }
 0x351   : > { %v852_v32 = vadd.f32 %v851_v30, %v674_v20  ;;  %v781_v33 = vadd.f32 %v780_v31, %v674_v20  ;;  %v853_v34 = vpop.f32.mrb[25].mxu1  ;;  %v782_v35 = vpop.f32.mrb[26].mxu0  ;;  %1089 = vmatprep.subr.bf16.mxu0 %v901_v26 }
 0x352   : > { %v854_v36 = vadd.f32 %v853_v34, %v674_v20  ;;  %v783_v37 = vadd.f32 %v782_v35, %v679_v24  ;;  %v855_v38 = vpop.f32.mrb[26].mxu1  ;;  %1202 = vmatprep.subr.bf16.mxu1 %v903_v28  ;;  %v784_v39 = vpop.f32.mrb[27].mxu0  ;;  %1090 = vmatpush1.bf16.msra.mxu0 %v900_v22  ;;  %v884_v43 = vmax.f32 %v779_v29, 0.0 }
 0x353   : > { %v856_v40 = vadd.f32 %v855_v38, %v679_v24  ;;  %v785_v41 = vadd.f32 %v784_v39, %v679_v24  ;;  %v857_v42 = vpop.f32.mrb[27].mxu1  ;;  %1203 = vmatpush1.bf16.msra.mxu1 %v902_v25  ;;  %v886_v46 = vmax.f32 %v852_v32, 0.0  ;;  %v885_v47 = vmax.f32 %v781_v33, 0.0  ;;  %v953_v25 = vpop.permute.xlu1 %952 }
 0x354   : > { %v888_v44 = vmax.f32 %v783_v37, 0.0  ;;  %v858_v45 = vadd.f32 %v857_v42, %v679_v24  ;;  %v887_v50 = vmax.f32 %v854_v36, 0.0  ;;  %v958_v29 = vpop.permute.xlu0 %957 }
 0x355   : > { %v890_v48 = vmax.f32 %v856_v40, 0.0  ;;  %v889_v49 = vmax.f32 %v785_v41, 0.0 }
 0x356   : > { %v904_v51 = vpack.c.bf16 %v888_v44, %v884_v43  ;;  %v891_v52 = vmax.f32 %v858_v45, 0.0 }
 0x357   : > { %v906_v53 = vpack.c.bf16 %v890_v48, %v886_v46  ;;  %v905_v54 = vpack.c.bf16 %v889_v49, %v885_v47 }
 0x358   : > { %v907_v55 = vpack.c.bf16 %v891_v52, %v887_v50 }
 0x359   : > { %1091 = vmatprep.subr.bf16.mxu0 %v905_v54 }
 0x35a   : > { %1204 = vmatprep.subr.bf16.mxu1 %v907_v55  ;;  %1092 = vmatpush1.bf16.msra.mxu0 %v904_v51  ;;  %v963_v55 = vpop.permute.xlu1 %962 }
 0x35b   : > { %1205 = vmatpush1.bf16.msra.mxu1 %v906_v53 }
 0x35d   : > { %3691 = vmatmul.mubr.msk.bf16.vlgmr.msra.gmra.mrb[28].mxu0 %vm1060_vm4, %v3781_v56 }
 0x35e   : > { %3699 = vmatmul.mubr.msk.bf16.vlgmr.msra.gmra.mrb[28].mxu1 %vm1060_vm4, %v3781_v56  ;;  %1127 = vmatprep.mubr.bf16.mxu0 %v3844_v2 }
 0x35f   : > { %1240 = vmatprep.mubr.bf16.mxu1 %v3844_v2 }
 0x365   : > { %3692 = vmatmul.mubr.msk.bf16.gmra.mrb[32].mxu0 %vm1060_vm4, %v3782_v57 }
 0x366   : > { %3700 = vmatmul.mubr.msk.bf16.gmra.mrb[32].mxu1 %vm1060_vm4, %v3782_v57  ;;  %1137 = vmatprep.mubr.bf16.mxu0 %v3844_v2 }
 0x367   : > { %1250 = vmatprep.mubr.bf16.mxu1 %v3844_v2 }
 0x36d   : > { %3693 = vmatmul.mubr.msk.bf16.gmra.mrb[36].mxu0 %vm1060_vm4, %v3783_v58 }
 0x36e   : > { %3701 = vmatmul.mubr.msk.bf16.gmra.mrb[36].mxu1 %vm1060_vm4, %v3783_v58  ;;  %1147 = vmatprep.mubr.bf16.mxu0 %v3844_v2 }
 0x36f   : > { %1260 = vmatprep.mubr.bf16.mxu1 %v3844_v2 }
 0x375   : > { %3694 = vmatmul.mubr.msk.bf16.gmra.mrb[40].mxu0 %vm1060_vm4, %v3784_v59 }
 0x376   : > { %3702 = vmatmul.mubr.msk.bf16.gmra.mrb[40].mxu1 %vm1060_vm4, %v3784_v59  ;;  %1157 = vmatprep.mubr.bf16.mxu0 %v3844_v2  ;;  %v968_v59 = vpop.permute.xlu0 %967 }
 0x377   : > { %1270 = vmatprep.mubr.bf16.mxu1 %v3844_v2 }
 0x37d   : > { %3695 = vmatmul.mubr.msk.bf16.gmra.mrb[44].mxu0 %vm1060_vm4, %v3785_v60 }
 0x37e   : > { %3703 = vmatmul.mubr.msk.bf16.gmra.mrb[44].mxu1 %vm1060_vm4, %v3785_v60  ;;  %1167 = vmatprep.mubr.bf16.mxu0 %v3844_v2 }
 0x37f   : > { %1280 = vmatprep.mubr.bf16.mxu1 %v3844_v2 }
 0x385   : > { %3696 = vmatmul.mubr.msk.bf16.gmra.mrb[48].mxu0 %vm1060_vm4, %v3786_v61 }
 0x386   : > { %3704 = vmatmul.mubr.msk.bf16.gmra.mrb[48].mxu1 %vm1060_vm4, %v3786_v61  ;;  %1177 = vmatprep.mubr.bf16.mxu0 %v3844_v2 }
 0x387   : > { %1290 = vmatprep.mubr.bf16.mxu1 %v3844_v2 }
 0x38d   : > { %3697 = vmatmul.mubr.msk.bf16.gmra.mrb[52].mxu0 %vm1060_vm4, %v3787_v62 }
 0x38e   : > { %3705 = vmatmul.mubr.msk.bf16.gmra.mrb[52].mxu1 %vm1060_vm4, %v3787_v62  ;;  %1187 = vmatprep.mubr.bf16.mxu0 %v3844_v2 }
 0x38f   : > { %1300 = vmatprep.mubr.bf16.mxu1 %v3844_v2 }
 0x395   : > { %3698 = vmatmul.mubr.msk.bf16.gmra.mrb[56].mxu0 %vm1060_vm4, %v3788_v63 }
 0x396   : > { %3706 = vmatmul.mubr.msk.bf16.gmra.mrb[56].mxu1 %vm1060_vm4, %v3788_v63  ;;  %1759 = vmatprep.mubr.bf16.mxu0 %v3844_v2 }
 0x397   : > { %1952 = vmatprep.mubr.bf16.mxu1 %v3844_v2 }
 0x430   : > { %v1119_v3 = vpop.f32.mrb[28].mxu0 }
 0x431   : > { %v1120_v4 = vadd.f32 %v1119_v3, %v943_v0  ;;  %v1232_v5 = vpop.f32.mrb[28].mxu1  ;;  %v1121_v6 = vpop.f32.mrb[29].mxu0 }
 0x432   : > { %v1233_v7 = vadd.f32 %v1232_v5, %v943_v0  ;;  %v1122_v8 = vadd.f32 %v1121_v6, %v943_v0  ;;  %v1234_v9 = vpop.f32.mrb[29].mxu1  ;;  %v1123_v10 = vpop.f32.mrb[30].mxu0 }
 0x433   : > { %v1235_v11 = vadd.f32 %v1234_v9, %v943_v0  ;;  %v1124_v12 = vadd.f32 %v1123_v10, %v948_v1  ;;  %v1236_v13 = vpop.f32.mrb[30].mxu1  ;;  %v1125_v14 = vpop.f32.mrb[31].mxu0  ;;  %v1311_v18 = vmax.f32 %v1120_v4, 0.0 }
 0x434   : > { %v1237_v15 = vadd.f32 %v1236_v13, %v948_v1  ;;  %v1126_v16 = vadd.f32 %v1125_v14, %v948_v1  ;;  %v1238_v17 = vpop.f32.mrb[31].mxu1  ;;  %v1313_v21 = vmax.f32 %v1233_v7, 0.0  ;;  %v1312_v22 = vmax.f32 %v1122_v8, 0.0 }
 0x435   : > { %v1315_v19 = vmax.f32 %v1124_v12, 0.0  ;;  %v1239_v20 = vadd.f32 %v1238_v17, %v948_v1  ;;  %v1314_v26 = vmax.f32 %v1235_v11, 0.0 }
 0x436   : > { %v1317_v23 = vmax.f32 %v1237_v15, 0.0  ;;  %v1316_v24 = vmax.f32 %v1126_v16, 0.0 }
 0x437   : > { %v1375_v27 = vpack.c.bf16 %v1315_v19, %v1311_v18  ;;  %v1318_v28 = vmax.f32 %v1239_v20, 0.0 }
 0x438   : > { %v1377_v30 = vpack.c.bf16 %v1317_v23, %v1313_v21  ;;  %v1376_v31 = vpack.c.bf16 %v1316_v24, %v1312_v22  ;;  %v1129_v32 = vpop.f32.mrb[32].mxu0  ;;  %v973_v22 = vpop.permute.xlu1 %972 }
 0x439   : > { %v1378_v33 = vpack.c.bf16 %v1318_v28, %v1314_v26  ;;  %v1130_v34 = vadd.f32 %v1129_v32, %v953_v25  ;;  %v1242_v35 = vpop.f32.mrb[32].mxu1  ;;  %v1131_v36 = vpop.f32.mrb[33].mxu0 }
 0x43a   : > { %v1243_v37 = vadd.f32 %v1242_v35, %v953_v25  ;;  %v1132_v38 = vadd.f32 %v1131_v36, %v953_v25  ;;  %v1244_v39 = vpop.f32.mrb[33].mxu1  ;;  %v1133_v40 = vpop.f32.mrb[34].mxu0  ;;  %1727 = vmatprep.subr.bf16.mxu0 %v1376_v31 }
 0x43b   : > { %v1245_v41 = vadd.f32 %v1244_v39, %v953_v25  ;;  %v1134_v42 = vadd.f32 %v1133_v40, %v958_v29  ;;  %v1246_v43 = vpop.f32.mrb[34].mxu1  ;;  %1920 = vmatprep.subr.bf16.mxu1 %v1378_v33  ;;  %v1135_v44 = vpop.f32.mrb[35].mxu0  ;;  %1728 = vmatpush1.bf16.msra.mxu0 %v1375_v27  ;;  %v1319_v48 = vmax.f32 %v1130_v34, 0.0 }
 0x43c   : > { %v1247_v45 = vadd.f32 %v1246_v43, %v958_v29  ;;  %v1136_v46 = vadd.f32 %v1135_v44, %v958_v29  ;;  %v1248_v47 = vpop.f32.mrb[35].mxu1  ;;  %1921 = vmatpush1.bf16.msra.mxu1 %v1377_v30  ;;  %v1321_v51 = vmax.f32 %v1243_v37, 0.0  ;;  %v1320_v52 = vmax.f32 %v1132_v38, 0.0  ;;  %v978_v26 = vpop.permute.xlu0 %977 }
 0x43d   : > { %v1323_v49 = vmax.f32 %v1134_v42, 0.0  ;;  %v1249_v50 = vadd.f32 %v1248_v47, %v958_v29  ;;  %v1322_v56 = vmax.f32 %v1245_v41, 0.0 }
 0x43e   : > { %v1325_v53 = vmax.f32 %v1247_v45, 0.0  ;;  %v1324_v54 = vmax.f32 %v1136_v46, 0.0 }
 0x43f   : > { %v1379_v57 = vpack.c.bf16 %v1323_v49, %v1319_v48  ;;  %v1326_v58 = vmax.f32 %v1249_v50, 0.0 }
 0x440   : > { %v1381_v60 = vpack.c.bf16 %v1325_v53, %v1321_v51  ;;  %v1380_v61 = vpack.c.bf16 %v1324_v54, %v1320_v52  ;;  %v1139_v62 = vpop.f32.mrb[36].mxu0  ;;  %v983_v52 = vpop.permute.xlu1 %982 }
 0x441   : > { %v1382_v63 = vpack.c.bf16 %v1326_v58, %v1322_v56  ;;  %v1140_v0 = vadd.f32 %v1139_v62, %v963_v55  ;;  %v1252_v1 = vpop.f32.mrb[36].mxu1  ;;  %v1141_v3 = vpop.f32.mrb[37].mxu0 }
 0x442   : > { %v1253_v4 = vadd.f32 %v1252_v1, %v963_v55  ;;  %v1142_v5 = vadd.f32 %v1141_v3, %v963_v55  ;;  %v1254_v6 = vpop.f32.mrb[37].mxu1  ;;  %v1143_v7 = vpop.f32.mrb[38].mxu0  ;;  %1729 = vmatprep.subr.bf16.mxu0 %v1380_v61 }
 0x443   : > { %v1255_v8 = vadd.f32 %v1254_v6, %v963_v55  ;;  %v1144_v9 = vadd.f32 %v1143_v7, %v968_v59  ;;  %v1256_v10 = vpop.f32.mrb[38].mxu1  ;;  %1922 = vmatprep.subr.bf16.mxu1 %v1382_v63  ;;  %v1145_v11 = vpop.f32.mrb[39].mxu0  ;;  %1730 = vmatpush1.bf16.msra.mxu0 %v1379_v57  ;;  %v1327_v15 = vmax.f32 %v1140_v0, 0.0 }
 0x444   : > { %v1257_v12 = vadd.f32 %v1256_v10, %v968_v59  ;;  %v1146_v13 = vadd.f32 %v1145_v11, %v968_v59  ;;  %v1258_v14 = vpop.f32.mrb[39].mxu1  ;;  %1923 = vmatpush1.bf16.msra.mxu1 %v1381_v60  ;;  %v1329_v18 = vmax.f32 %v1253_v4, 0.0  ;;  %v1328_v19 = vmax.f32 %v1142_v5, 0.0  ;;  %v988_v56 = vpop.permute.xlu0 %987 }
 0x445   : > { %v1331_v16 = vmax.f32 %v1144_v9, 0.0  ;;  %v1259_v17 = vadd.f32 %v1258_v14, %v968_v59  ;;  %v1330_v23 = vmax.f32 %v1255_v8, 0.0 }
 0x446   : > { %v1333_v20 = vmax.f32 %v1257_v12, 0.0  ;;  %v1332_v21 = vmax.f32 %v1146_v13, 0.0 }
 0x447   : > { %v1383_v24 = vpack.c.bf16 %v1331_v16, %v1327_v15  ;;  %v1334_v25 = vmax.f32 %v1259_v17, 0.0 }
 0x448   : > { %v1385_v27 = vpack.c.bf16 %v1333_v20, %v1329_v18  ;;  %v1384_v28 = vpack.c.bf16 %v1332_v21, %v1328_v19  ;;  %v1149_v29 = vpop.f32.mrb[40].mxu0  ;;  %v993_v19 = vpop.permute.xlu1 %992 }
 0x449   : > { %v1386_v30 = vpack.c.bf16 %v1334_v25, %v1330_v23  ;;  %v1150_v31 = vadd.f32 %v1149_v29, %v973_v22  ;;  %v1262_v32 = vpop.f32.mrb[40].mxu1  ;;  %v1151_v33 = vpop.f32.mrb[41].mxu0 }
 0x44a   : > { %v1263_v34 = vadd.f32 %v1262_v32, %v973_v22  ;;  %v1152_v35 = vadd.f32 %v1151_v33, %v973_v22  ;;  %v1264_v36 = vpop.f32.mrb[41].mxu1  ;;  %v1153_v37 = vpop.f32.mrb[42].mxu0  ;;  %1731 = vmatprep.subr.bf16.mxu0 %v1384_v28 }
 0x44b   : > { %v1265_v38 = vadd.f32 %v1264_v36, %v973_v22  ;;  %v1154_v39 = vadd.f32 %v1153_v37, %v978_v26  ;;  %v1266_v40 = vpop.f32.mrb[42].mxu1  ;;  %1924 = vmatprep.subr.bf16.mxu1 %v1386_v30  ;;  %v1155_v41 = vpop.f32.mrb[43].mxu0  ;;  %1732 = vmatpush1.bf16.msra.mxu0 %v1383_v24  ;;  %v1335_v45 = vmax.f32 %v1150_v31, 0.0 }
 0x44c   : > { %v1267_v42 = vadd.f32 %v1266_v40, %v978_v26  ;;  %v1156_v43 = vadd.f32 %v1155_v41, %v978_v26  ;;  %v1268_v44 = vpop.f32.mrb[43].mxu1  ;;  %1925 = vmatpush1.bf16.msra.mxu1 %v1385_v27  ;;  %v1337_v48 = vmax.f32 %v1263_v34, 0.0  ;;  %v1336_v49 = vmax.f32 %v1152_v35, 0.0  ;;  %v998_v23 = vpop.permute.xlu0 %997 }
 0x44d   : > { %v1339_v46 = vmax.f32 %v1154_v39, 0.0  ;;  %v1269_v47 = vadd.f32 %v1268_v44, %v978_v26  ;;  %v1338_v53 = vmax.f32 %v1265_v38, 0.0 }
 0x44e   : > { %v1341_v50 = vmax.f32 %v1267_v42, 0.0  ;;  %v1340_v51 = vmax.f32 %v1156_v43, 0.0 }
 0x44f   : > { %v1387_v54 = vpack.c.bf16 %v1339_v46, %v1335_v45  ;;  %v1342_v55 = vmax.f32 %v1269_v47, 0.0 }
 0x450   : > { %v1389_v57 = vpack.c.bf16 %v1341_v50, %v1337_v48  ;;  %v1388_v58 = vpack.c.bf16 %v1340_v51, %v1336_v49  ;;  %v1159_v59 = vpop.f32.mrb[44].mxu0  ;;  %v1003_v49 = vpop.permute.xlu1 %1002 }
 0x451   : > { %v1390_v60 = vpack.c.bf16 %v1342_v55, %v1338_v53  ;;  %v1160_v61 = vadd.f32 %v1159_v59, %v983_v52  ;;  %v1272_v62 = vpop.f32.mrb[44].mxu1  ;;  %v1161_v63 = vpop.f32.mrb[45].mxu0 }
 0x452   : > { %v1273_v0 = vadd.f32 %v1272_v62, %v983_v52  ;;  %v1162_v1 = vadd.f32 %v1161_v63, %v983_v52  ;;  %v1274_v3 = vpop.f32.mrb[45].mxu1  ;;  %v1163_v4 = vpop.f32.mrb[46].mxu0  ;;  %1733 = vmatprep.subr.bf16.mxu0 %v1388_v58 }
 0x453   : > { %v1275_v5 = vadd.f32 %v1274_v3, %v983_v52  ;;  %v1164_v6 = vadd.f32 %v1163_v4, %v988_v56  ;;  %v1276_v7 = vpop.f32.mrb[46].mxu1  ;;  %1926 = vmatprep.subr.bf16.mxu1 %v1390_v60  ;;  %v1165_v8 = vpop.f32.mrb[47].mxu0  ;;  %1734 = vmatpush1.bf16.msra.mxu0 %v1387_v54  ;;  %v1343_v12 = vmax.f32 %v1160_v61, 0.0 }
 0x454   : > { %v1277_v9 = vadd.f32 %v1276_v7, %v988_v56  ;;  %v1166_v10 = vadd.f32 %v1165_v8, %v988_v56  ;;  %v1278_v11 = vpop.f32.mrb[47].mxu1  ;;  %1927 = vmatpush1.bf16.msra.mxu1 %v1389_v57  ;;  %v1345_v15 = vmax.f32 %v1273_v0, 0.0  ;;  %v1344_v16 = vmax.f32 %v1162_v1, 0.0  ;;  %v1008_v53 = vpop.permute.xlu0 %1007 }
 0x455   : > { %v1347_v13 = vmax.f32 %v1164_v6, 0.0  ;;  %v1279_v14 = vadd.f32 %v1278_v11, %v988_v56  ;;  %v1346_v20 = vmax.f32 %v1275_v5, 0.0 }
 0x456   : > { %v1349_v17 = vmax.f32 %v1277_v9, 0.0  ;;  %v1348_v18 = vmax.f32 %v1166_v10, 0.0 }
 0x457   : > { %v1391_v21 = vpack.c.bf16 %v1347_v13, %v1343_v12  ;;  %v1350_v22 = vmax.f32 %v1279_v14, 0.0 }
 0x458   : > { %v1393_v24 = vpack.c.bf16 %v1349_v17, %v1345_v15  ;;  %v1392_v25 = vpack.c.bf16 %v1348_v18, %v1344_v16  ;;  %v1169_v26 = vpop.f32.mrb[48].mxu0  ;;  %v1013_v16 = vpop.permute.xlu1 %1012 }
 0x459   : > { %v1394_v27 = vpack.c.bf16 %v1350_v22, %v1346_v20  ;;  %v1170_v28 = vadd.f32 %v1169_v26, %v993_v19  ;;  %v1282_v29 = vpop.f32.mrb[48].mxu1  ;;  %v1171_v30 = vpop.f32.mrb[49].mxu0 }
 0x45a   : > { %v1283_v31 = vadd.f32 %v1282_v29, %v993_v19  ;;  %v1172_v32 = vadd.f32 %v1171_v30, %v993_v19  ;;  %v1284_v33 = vpop.f32.mrb[49].mxu1  ;;  %v1173_v34 = vpop.f32.mrb[50].mxu0  ;;  %1735 = vmatprep.subr.bf16.mxu0 %v1392_v25 }
 0x45b   : > { %v1285_v35 = vadd.f32 %v1284_v33, %v993_v19  ;;  %v1174_v36 = vadd.f32 %v1173_v34, %v998_v23  ;;  %v1286_v37 = vpop.f32.mrb[50].mxu1  ;;  %1928 = vmatprep.subr.bf16.mxu1 %v1394_v27  ;;  %v1175_v38 = vpop.f32.mrb[51].mxu0  ;;  %1736 = vmatpush1.bf16.msra.mxu0 %v1391_v21  ;;  %v1351_v42 = vmax.f32 %v1170_v28, 0.0 }
 0x45c   : > { %v1287_v39 = vadd.f32 %v1286_v37, %v998_v23  ;;  %v1176_v40 = vadd.f32 %v1175_v38, %v998_v23  ;;  %v1288_v41 = vpop.f32.mrb[51].mxu1  ;;  %1929 = vmatpush1.bf16.msra.mxu1 %v1393_v24  ;;  %v1353_v45 = vmax.f32 %v1283_v31, 0.0  ;;  %v1352_v46 = vmax.f32 %v1172_v32, 0.0  ;;  %v1018_v20 = vpop.permute.xlu0 %1017 }
 0x45d   : > { %v1355_v43 = vmax.f32 %v1174_v36, 0.0  ;;  %v1289_v44 = vadd.f32 %v1288_v41, %v998_v23  ;;  %v1354_v50 = vmax.f32 %v1285_v35, 0.0 }
 0x45e   : > { %v1357_v47 = vmax.f32 %v1287_v39, 0.0  ;;  %v1356_v48 = vmax.f32 %v1176_v40, 0.0 }
 0x45f   : > { %v1395_v51 = vpack.c.bf16 %v1355_v43, %v1351_v42  ;;  %v1358_v52 = vmax.f32 %v1289_v44, 0.0 }
 0x460   : > { %v1397_v54 = vpack.c.bf16 %v1357_v47, %v1353_v45  ;;  %v1396_v55 = vpack.c.bf16 %v1356_v48, %v1352_v46  ;;  %v1179_v56 = vpop.f32.mrb[52].mxu0 }
 0x461   : > { %v1398_v57 = vpack.c.bf16 %v1358_v52, %v1354_v50  ;;  %v1180_v58 = vadd.f32 %v1179_v56, %v1003_v49  ;;  %v1292_v59 = vpop.f32.mrb[52].mxu1  ;;  %v1181_v60 = vpop.f32.mrb[53].mxu0  ;;  %v3789_v52 = vld [vmem:[%s4483_s2 + $0xf0] ss:$8 sps:$4 sm:$0xff]  }
 0x462   : > { %v1293_v61 = vadd.f32 %v1292_v59, %v1003_v49  ;;  %v1182_v62 = vadd.f32 %v1181_v60, %v1003_v49  ;;  %v1294_v63 = vpop.f32.mrb[53].mxu1  ;;  %v1183_v0 = vpop.f32.mrb[54].mxu0  ;;  %1737 = vmatprep.subr.bf16.mxu0 %v1396_v55  ;;  %v3792_v55 = vld [vmem:[%s4483_s2 + $0x120] ss:$8 sps:$4 sm:$0xff]   ;;  %v3793_v56 = vld [vmem:[%s4483_s2 + $0x130] ss:$8 sps:$4 sm:$0xff]  }
 0x463   : > { %v1295_v1 = vadd.f32 %v1294_v63, %v1003_v49  ;;  %v1184_v3 = vadd.f32 %v1183_v0, %v1008_v53  ;;  %v1296_v4 = vpop.f32.mrb[54].mxu1  ;;  %1930 = vmatprep.subr.bf16.mxu1 %v1398_v57  ;;  %v1185_v5 = vpop.f32.mrb[55].mxu0  ;;  %1738 = vmatpush1.bf16.msra.mxu0 %v1395_v51  ;;  %v1359_v9 = vmax.f32 %v1180_v58, 0.0  ;;  %v3794_v57 = vld [vmem:[%s4483_s2 + $0x140] ss:$8 sps:$4 sm:$0xff]  }
 0x464   : > { %v1297_v6 = vadd.f32 %v1296_v4, %v1008_v53  ;;  %v1186_v7 = vadd.f32 %v1185_v5, %v1008_v53  ;;  %v1298_v8 = vpop.f32.mrb[55].mxu1  ;;  %1931 = vmatpush1.bf16.msra.mxu1 %v1397_v54  ;;  %v1361_v12 = vmax.f32 %v1293_v61, 0.0  ;;  %v1360_v13 = vmax.f32 %v1182_v62, 0.0  ;;  %v3791_v54 = vld [vmem:[%s4483_s2 + $0x110] ss:$8 sps:$4 sm:$0xff]   ;;  %v1474_v5 = vpop.permute.xlu1 %1473 }
 0x465   : > { %v1363_v10 = vmax.f32 %v1184_v3, 0.0  ;;  %v1299_v11 = vadd.f32 %v1298_v8, %v1008_v53  ;;  %v1362_v17 = vmax.f32 %v1295_v1, 0.0  ;;  %v3790_v53 = vld [vmem:[%s4483_s2 + $0x100] ss:$8 sps:$4 sm:$0xff]   ;;  %v3795_v58 = vld [vmem:[%s4483_s2 + $0x150] ss:$8 sps:$4 sm:$0xff]  }
 0x466   : > { %v1365_v14 = vmax.f32 %v1297_v6, 0.0  ;;  %v1364_v15 = vmax.f32 %v1186_v7, 0.0  ;;  %v3796_v59 = vld [vmem:[%s4483_s2 + $0x160] ss:$8 sps:$4 sm:$0xff]   ;;  %v3797_v60 = vld [vmem:[%s4483_s2 + $0x170] ss:$8 sps:$4 sm:$0xff]   ;;  %v1479_v6 = vpop.permute.xlu0 %1478 }
 0x467   : > { %v1399_v18 = vpack.c.bf16 %v1363_v10, %v1359_v9  ;;  %v1366_v19 = vmax.f32 %v1299_v11, 0.0  ;;  %v3798_v61 = vld [vmem:[%s4483_s2 + $0x180] ss:$8 sps:$4 sm:$0xff]   ;;  %v3799_v62 = vld [vmem:[%s4483_s2 + $0x190] ss:$8 sps:$4 sm:$0xff]  }
 0x468   : > { %v1401_v21 = vpack.c.bf16 %v1365_v14, %v1361_v12  ;;  %v1400_v22 = vpack.c.bf16 %v1364_v15, %v1360_v13  ;;  %v1189_v23 = vpop.f32.mrb[56].mxu0  ;;  %v3800_v63 = vld [vmem:[%s4483_s2 + $0x1a0] ss:$8 sps:$4 sm:$0xff]   ;;  %v3801_v0 = vld [vmem:[%s4483_s2 + $0x1b0] ss:$8 sps:$4 sm:$0xff]  }
 0x469   : > { %v1402_v24 = vpack.c.bf16 %v1366_v19, %v1362_v17  ;;  %v1190_v25 = vadd.f32 %v1189_v23, %v1013_v16  ;;  %v1302_v26 = vpop.f32.mrb[56].mxu1  ;;  %v1191_v27 = vpop.f32.mrb[57].mxu0  ;;  %v3802_v1 = vld [vmem:[%s4483_s2 + $0x1c0] ss:$8 sps:$4 sm:$0xff]   ;;  %v3803_v3 = vld [vmem:[%s4483_s2 + $0x1d0] ss:$8 sps:$4 sm:$0xff]  }
 0x46a   : > { %v1303_v28 = vadd.f32 %v1302_v26, %v1013_v16  ;;  %v1192_v29 = vadd.f32 %v1191_v27, %v1013_v16  ;;  %v1304_v30 = vpop.f32.mrb[57].mxu1  ;;  %v1193_v31 = vpop.f32.mrb[58].mxu0  ;;  %1739 = vmatprep.subr.bf16.mxu0 %v1400_v22  ;;  %v3804_v4 = vld [vmem:[%s4483_s2 + $0x1e0] ss:$8 sps:$4 sm:$0xff]  }
 0x46b   : > { %v1305_v32 = vadd.f32 %v1304_v30, %v1013_v16  ;;  %v1194_v33 = vadd.f32 %v1193_v31, %v1018_v20  ;;  %v1306_v34 = vpop.f32.mrb[58].mxu1  ;;  %1932 = vmatprep.subr.bf16.mxu1 %v1402_v24  ;;  %v1195_v35 = vpop.f32.mrb[59].mxu0  ;;  %1740 = vmatpush1.bf16.msra.mxu0 %v1399_v18  ;;  %v1367_v39 = vmax.f32 %v1190_v25, 0.0  ;;  %v3807_v25 = vld [vmem:[%s4483_s2 + $0x1f4] ss:$8 sps:$4 sm:$0xff]  }
 0x46c   : > { %v1307_v36 = vadd.f32 %v1306_v34, %v1018_v20  ;;  %v1196_v37 = vadd.f32 %v1195_v35, %v1018_v20  ;;  %v1308_v38 = vpop.f32.mrb[59].mxu1  ;;  %1933 = vmatpush1.bf16.msra.mxu1 %v1401_v21  ;;  %v1369_v42 = vmax.f32 %v1303_v28, 0.0  ;;  %v1368_v43 = vmax.f32 %v1192_v29, 0.0  ;;  %v1484_v30 = vpop.permute.xlu1 %1483 }
 0x46d   : > { %v1371_v40 = vmax.f32 %v1194_v33, 0.0  ;;  %v1309_v41 = vadd.f32 %v1308_v38, %v1018_v20  ;;  %v1370_v46 = vmax.f32 %v1305_v32, 0.0  ;;  %v1489_v34 = vpop.permute.xlu0 %1488 }
 0x46e   : > { %v1373_v44 = vmax.f32 %v1307_v36, 0.0  ;;  %v1372_v45 = vmax.f32 %v1196_v37, 0.0 }
 0x46f   : > { %v1403_v47 = vpack.c.bf16 %v1371_v40, %v1367_v39  ;;  %v1374_v48 = vmax.f32 %v1309_v41, 0.0 }
 0x470   : > { %v1405_v49 = vpack.c.bf16 %v1373_v44, %v1369_v42  ;;  %v1404_v50 = vpack.c.bf16 %v1372_v45, %v1368_v43 }
 0x471   : > { %v1406_v51 = vpack.c.bf16 %v1374_v48, %v1370_v46 }
 0x472   : > { %1741 = vmatprep.subr.bf16.mxu0 %v1404_v50 }
 0x473   : > { %1934 = vmatprep.subr.bf16.mxu1 %v1406_v51  ;;  %1742 = vmatpush1.bf16.msra.mxu0 %v1403_v47 }
 0x474   : > { %1935 = vmatpush1.bf16.msra.mxu1 %v1405_v49 }
 0x476   : > { %1760 = vmatmul.mubr.bf16.vlgmr.msra.gmra.mrb[60].mxu0 %v3789_v52 }
 0x477   : > { %1953 = vmatmul.mubr.bf16.vlgmr.msra.gmra.mrb[60].mxu1 %v3789_v52  ;;  %1769 = vmatprep.mubr.bf16.mxu0 %v3844_v2 }
 0x478   : > { %1962 = vmatprep.mubr.bf16.mxu1 %v3844_v2 }
 0x47e   : > { %1770 = vmatmul.mubr.bf16.gmra.mrb[64].mxu0 %v3790_v53 }
 0x47f   : > { %1963 = vmatmul.mubr.bf16.gmra.mrb[64].mxu1 %v3790_v53  ;;  %1779 = vmatprep.mubr.bf16.mxu0 %v3844_v2 }
 0x480   : > { %1972 = vmatprep.mubr.bf16.mxu1 %v3844_v2 }
 0x486   : > { %1780 = vmatmul.mubr.bf16.gmra.mrb[68].mxu0 %v3791_v54 }
 0x487   : > { %1973 = vmatmul.mubr.bf16.gmra.mrb[68].mxu1 %v3791_v54  ;;  %1789 = vmatprep.mubr.bf16.mxu0 %v3844_v2 }
 0x488   : > { %1982 = vmatprep.mubr.bf16.mxu1 %v3844_v2 }
 0x48e   : > { %1790 = vmatmul.mubr.bf16.gmra.mrb[72].mxu0 %v3792_v55 }
 0x48f   : > { %1983 = vmatmul.mubr.bf16.gmra.mrb[72].mxu1 %v3792_v55  ;;  %1799 = vmatprep.mubr.bf16.mxu0 %v3844_v2 }
 0x490   : > { %1992 = vmatprep.mubr.bf16.mxu1 %v3844_v2 }
 0x496   : > { %1800 = vmatmul.mubr.bf16.gmra.mrb[76].mxu0 %v3793_v56 }
 0x497   : > { %1993 = vmatmul.mubr.bf16.gmra.mrb[76].mxu1 %v3793_v56  ;;  %1809 = vmatprep.mubr.bf16.mxu0 %v3844_v2 }
 0x498   : > { %2002 = vmatprep.mubr.bf16.mxu1 %v3844_v2 }
 0x49e   : > { %1810 = vmatmul.mubr.bf16.gmra.mrb[80].mxu0 %v3794_v57 }
 0x49f   : > { %2003 = vmatmul.mubr.bf16.gmra.mrb[80].mxu1 %v3794_v57  ;;  %1819 = vmatprep.mubr.bf16.mxu0 %v3844_v2 }
 0x4a0   : > { %2012 = vmatprep.mubr.bf16.mxu1 %v3844_v2 }
 0x4a6   : > { %1820 = vmatmul.mubr.bf16.gmra.mrb[84].mxu0 %v3795_v58 }
 0x4a7   : > { %2013 = vmatmul.mubr.bf16.gmra.mrb[84].mxu1 %v3795_v58  ;;  %1829 = vmatprep.mubr.bf16.mxu0 %v3844_v2 }
 0x4a8   : > { %2022 = vmatprep.mubr.bf16.mxu1 %v3844_v2 }
 0x4ae   : > { %1830 = vmatmul.mubr.bf16.gmra.mrb[88].mxu0 %v3796_v59 }
 0x4af   : > { %2023 = vmatmul.mubr.bf16.gmra.mrb[88].mxu1 %v3796_v59  ;;  %1839 = vmatprep.mubr.bf16.mxu0 %v3844_v2 }
 0x4b0   : > { %2032 = vmatprep.mubr.bf16.mxu1 %v3844_v2 }
 0x4b6   : > { %1840 = vmatmul.mubr.bf16.gmra.mrb[92].mxu0 %v3797_v60 }
 0x4b7   : > { %2033 = vmatmul.mubr.bf16.gmra.mrb[92].mxu1 %v3797_v60  ;;  %1849 = vmatprep.mubr.bf16.mxu0 %v3844_v2  ;;  %v1494_v60 = vpop.permute.xlu1 %1493 }
 0x4b8   : > { %2042 = vmatprep.mubr.bf16.mxu1 %v3844_v2 }
 0x4be   : > { %1850 = vmatmul.mubr.bf16.gmra.mrb[96].mxu0 %v3798_v61 }
 0x4bf   : > { %2043 = vmatmul.mubr.bf16.gmra.mrb[96].mxu1 %v3798_v61  ;;  %1859 = vmatprep.mubr.bf16.mxu0 %v3844_v2 }
 0x4c0   : > { %2052 = vmatprep.mubr.bf16.mxu1 %v3844_v2 }
 0x4c6   : > { %1860 = vmatmul.mubr.bf16.gmra.mrb[100].mxu0 %v3799_v62 }
 0x4c7   : > { %2053 = vmatmul.mubr.bf16.gmra.mrb[100].mxu1 %v3799_v62  ;;  %1869 = vmatprep.mubr.bf16.mxu0 %v3844_v2 }
 0x4c8   : > { %2062 = vmatprep.mubr.bf16.mxu1 %v3844_v2 }
 0x4ce   : > { %1870 = vmatmul.mubr.bf16.gmra.mrb[104].mxu0 %v3800_v63 }
 0x4cf   : > { %2063 = vmatmul.mubr.bf16.gmra.mrb[104].mxu1 %v3800_v63  ;;  %1879 = vmatprep.mubr.bf16.mxu0 %v3844_v2 }
 0x4d0   : > { %2072 = vmatprep.mubr.bf16.mxu1 %v3844_v2 }
 0x4d6   : > { %1880 = vmatmul.mubr.bf16.gmra.mrb[108].mxu0 %v3801_v0 }
 0x4d7   : > { %2073 = vmatmul.mubr.bf16.gmra.mrb[108].mxu1 %v3801_v0  ;;  %1889 = vmatprep.mubr.bf16.mxu0 %v3844_v2  ;;  %v1499_v0 = vpop.permute.xlu0 %1498 }
 0x4d8   : > { %2082 = vmatprep.mubr.bf16.mxu1 %v3844_v2 }
 0x4de   : > { %1890 = vmatmul.mubr.bf16.gmra.mrb[112].mxu0 %v3802_v1 }
 0x4df   : > { %2083 = vmatmul.mubr.bf16.gmra.mrb[112].mxu1 %v3802_v1  ;;  %1899 = vmatprep.mubr.bf16.mxu0 %v3844_v2 }
 0x4e0   : > { %2092 = vmatprep.mubr.bf16.mxu1 %v3844_v2 }
 0x4e6   : > { %1900 = vmatmul.mubr.bf16.gmra.mrb[116].mxu0 %v3803_v3 }
 0x4e7   : > { %2093 = vmatmul.mubr.bf16.gmra.mrb[116].mxu1 %v3803_v3  ;;  %1909 = vmatprep.mubr.bf16.mxu0 %v3844_v2 }
 0x4e8   : > { %2102 = vmatprep.mubr.bf16.mxu1 %v3844_v2 }
 0x4ee   : > { %1910 = vmatmul.mubr.bf16.gmra.mrb[120].mxu0 %v3804_v4 }
 0x4ef   : > { %2103 = vmatmul.mubr.bf16.gmra.mrb[120].mxu1 %v3804_v4  ;;  %2529 = vmatprep.mubr.bf16.mxu0 %v3807_v25 }
 0x4f0   : > { %2642 = vmatprep.mubr.bf16.mxu1 %v3807_v25 }
 0x549   : > { %v1761_v7 = vpop.f32.mrb[60].mxu0 }
 0x54a   : > { %v1762_v8 = vadd.f32 %v1761_v7, %v1474_v5  ;;  %v1954_v9 = vpop.f32.mrb[60].mxu1  ;;  %v1763_v10 = vpop.f32.mrb[61].mxu0 }
 0x54b   : > { %v1955_v11 = vadd.f32 %v1954_v9, %v1474_v5  ;;  %v1764_v12 = vadd.f32 %v1763_v10, %v1474_v5  ;;  %v1956_v13 = vpop.f32.mrb[61].mxu1  ;;  %v1765_v14 = vpop.f32.mrb[62].mxu0 }
 0x54c   : > { %v1957_v15 = vadd.f32 %v1956_v13, %v1474_v5  ;;  %v1766_v16 = vadd.f32 %v1765_v14, %v1479_v6  ;;  %v1958_v17 = vpop.f32.mrb[62].mxu1  ;;  %v1767_v18 = vpop.f32.mrb[63].mxu0  ;;  %v2113_v22 = vmax.f32 %v1762_v8, 0.0 }
 0x54d   : > { %v1959_v19 = vadd.f32 %v1958_v17, %v1479_v6  ;;  %v1768_v20 = vadd.f32 %v1767_v18, %v1479_v6  ;;  %v1960_v21 = vpop.f32.mrb[63].mxu1  ;;  %v2115_v26 = vmax.f32 %v1955_v11, 0.0  ;;  %v2114_v27 = vmax.f32 %v1764_v12, 0.0 }
 0x54e   : > { %v2117_v23 = vmax.f32 %v1766_v16, 0.0  ;;  %v1961_v24 = vadd.f32 %v1960_v21, %v1479_v6  ;;  %v2116_v31 = vmax.f32 %v1957_v15, 0.0 }
 0x54f   : > { %v2119_v28 = vmax.f32 %v1959_v19, 0.0  ;;  %v2118_v29 = vmax.f32 %v1768_v20, 0.0 }
 0x550   : > { %v2241_v32 = vpack.c.bf16 %v2117_v23, %v2113_v22  ;;  %v2120_v33 = vmax.f32 %v1961_v24, 0.0 }
 0x551   : > { %v2243_v35 = vpack.c.bf16 %v2119_v28, %v2115_v26  ;;  %v2242_v36 = vpack.c.bf16 %v2118_v29, %v2114_v27  ;;  %v1771_v37 = vpop.f32.mrb[64].mxu0  ;;  %v1504_v27 = vpop.permute.xlu1 %1503 }
 0x552   : > { %v2244_v38 = vpack.c.bf16 %v2120_v33, %v2116_v31  ;;  %v1772_v39 = vadd.f32 %v1771_v37, %v1484_v30  ;;  %v1964_v40 = vpop.f32.mrb[64].mxu1  ;;  %v1773_v41 = vpop.f32.mrb[65].mxu0 }
 0x553   : > { %v1965_v42 = vadd.f32 %v1964_v40, %v1484_v30  ;;  %v1774_v43 = vadd.f32 %v1773_v41, %v1484_v30  ;;  %v1966_v44 = vpop.f32.mrb[65].mxu1  ;;  %v1775_v45 = vpop.f32.mrb[66].mxu0  ;;  %2497 = vmatprep.subr.bf16.mxu0 %v2242_v36 }
 0x554   : > { %v1967_v46 = vadd.f32 %v1966_v44, %v1484_v30  ;;  %v1776_v47 = vadd.f32 %v1775_v45, %v1489_v34  ;;  %v1968_v48 = vpop.f32.mrb[66].mxu1  ;;  %2610 = vmatprep.subr.bf16.mxu1 %v2244_v38  ;;  %v1777_v49 = vpop.f32.mrb[67].mxu0  ;;  %2498 = vmatpush1.bf16.msra.mxu0 %v2241_v32  ;;  %v2121_v53 = vmax.f32 %v1772_v39, 0.0 }
 0x555   : > { %v1969_v50 = vadd.f32 %v1968_v48, %v1489_v34  ;;  %v1778_v51 = vadd.f32 %v1777_v49, %v1489_v34  ;;  %v1970_v52 = vpop.f32.mrb[67].mxu1  ;;  %2611 = vmatpush1.bf16.msra.mxu1 %v2243_v35  ;;  %v2123_v56 = vmax.f32 %v1965_v42, 0.0  ;;  %v2122_v57 = vmax.f32 %v1774_v43, 0.0  ;;  %v1509_v31 = vpop.permute.xlu0 %1508 }
 0x556   : > { %v2125_v54 = vmax.f32 %v1776_v47, 0.0  ;;  %v1971_v55 = vadd.f32 %v1970_v52, %v1489_v34  ;;  %v2124_v61 = vmax.f32 %v1967_v46, 0.0 }
 0x557   : > { %v2127_v58 = vmax.f32 %v1969_v50, 0.0  ;;  %v2126_v59 = vmax.f32 %v1778_v51, 0.0 }
 0x558   : > { %v2245_v62 = vpack.c.bf16 %v2125_v54, %v2121_v53  ;;  %v2128_v63 = vmax.f32 %v1971_v55, 0.0 }
 0x559   : > { %v2247_v1 = vpack.c.bf16 %v2127_v58, %v2123_v56  ;;  %v2246_v3 = vpack.c.bf16 %v2126_v59, %v2122_v57  ;;  %v1781_v4 = vpop.f32.mrb[68].mxu0  ;;  %v1514_v57 = vpop.permute.xlu1 %1513 }
 0x55a   : > { %v2248_v5 = vpack.c.bf16 %v2128_v63, %v2124_v61  ;;  %v1782_v6 = vadd.f32 %v1781_v4, %v1494_v60  ;;  %v1974_v7 = vpop.f32.mrb[68].mxu1  ;;  %v1783_v8 = vpop.f32.mrb[69].mxu0 }
 0x55b   : > { %v1975_v9 = vadd.f32 %v1974_v7, %v1494_v60  ;;  %v1784_v10 = vadd.f32 %v1783_v8, %v1494_v60  ;;  %v1976_v11 = vpop.f32.mrb[69].mxu1  ;;  %v1785_v12 = vpop.f32.mrb[70].mxu0  ;;  %2499 = vmatprep.subr.bf16.mxu0 %v2246_v3 }
 0x55c   : > { %v1977_v13 = vadd.f32 %v1976_v11, %v1494_v60  ;;  %v1786_v14 = vadd.f32 %v1785_v12, %v1499_v0  ;;  %v1978_v15 = vpop.f32.mrb[70].mxu1  ;;  %2612 = vmatprep.subr.bf16.mxu1 %v2248_v5  ;;  %v1787_v16 = vpop.f32.mrb[71].mxu0  ;;  %2500 = vmatpush1.bf16.msra.mxu0 %v2245_v62  ;;  %v2129_v20 = vmax.f32 %v1782_v6, 0.0 }
 0x55d   : > { %v1979_v17 = vadd.f32 %v1978_v15, %v1499_v0  ;;  %v1788_v18 = vadd.f32 %v1787_v16, %v1499_v0  ;;  %v1980_v19 = vpop.f32.mrb[71].mxu1  ;;  %2613 = vmatpush1.bf16.msra.mxu1 %v2247_v1  ;;  %v2131_v23 = vmax.f32 %v1975_v9, 0.0  ;;  %v2130_v24 = vmax.f32 %v1784_v10, 0.0  ;;  %v1519_v61 = vpop.permute.xlu0 %1518 }
 0x55e   : > { %v2133_v21 = vmax.f32 %v1786_v14, 0.0  ;;  %v1981_v22 = vadd.f32 %v1980_v19, %v1499_v0  ;;  %v2132_v28 = vmax.f32 %v1977_v13, 0.0 }
 0x55f   : > { %v2135_v25 = vmax.f32 %v1979_v17, 0.0  ;;  %v2134_v26 = vmax.f32 %v1788_v18, 0.0 }
 0x560   : > { %v2249_v29 = vpack.c.bf16 %v2133_v21, %v2129_v20  ;;  %v2136_v30 = vmax.f32 %v1981_v22, 0.0 }
 0x561   : > { %v2251_v32 = vpack.c.bf16 %v2135_v25, %v2131_v23  ;;  %v2250_v33 = vpack.c.bf16 %v2134_v26, %v2130_v24  ;;  %v1791_v34 = vpop.f32.mrb[72].mxu0  ;;  %v1524_v24 = vpop.permute.xlu1 %1523 }
 0x562   : > { %v2252_v35 = vpack.c.bf16 %v2136_v30, %v2132_v28  ;;  %v1792_v36 = vadd.f32 %v1791_v34, %v1504_v27  ;;  %v1984_v37 = vpop.f32.mrb[72].mxu1  ;;  %v1793_v38 = vpop.f32.mrb[73].mxu0 }
 0x563   : > { %v1985_v39 = vadd.f32 %v1984_v37, %v1504_v27  ;;  %v1794_v40 = vadd.f32 %v1793_v38, %v1504_v27  ;;  %v1986_v41 = vpop.f32.mrb[73].mxu1  ;;  %v1795_v42 = vpop.f32.mrb[74].mxu0  ;;  %2501 = vmatprep.subr.bf16.mxu0 %v2250_v33 }
 0x564   : > { %v1987_v43 = vadd.f32 %v1986_v41, %v1504_v27  ;;  %v1796_v44 = vadd.f32 %v1795_v42, %v1509_v31  ;;  %v1988_v45 = vpop.f32.mrb[74].mxu1  ;;  %2614 = vmatprep.subr.bf16.mxu1 %v2252_v35  ;;  %v1797_v46 = vpop.f32.mrb[75].mxu0  ;;  %2502 = vmatpush1.bf16.msra.mxu0 %v2249_v29  ;;  %v2137_v50 = vmax.f32 %v1792_v36, 0.0 }
 0x565   : > { %v1989_v47 = vadd.f32 %v1988_v45, %v1509_v31  ;;  %v1798_v48 = vadd.f32 %v1797_v46, %v1509_v31  ;;  %v1990_v49 = vpop.f32.mrb[75].mxu1  ;;  %2615 = vmatpush1.bf16.msra.mxu1 %v2251_v32  ;;  %v2139_v53 = vmax.f32 %v1985_v39, 0.0  ;;  %v2138_v54 = vmax.f32 %v1794_v40, 0.0  ;;  %v1529_v28 = vpop.permute.xlu0 %1528 }
 0x566   : > { %v2141_v51 = vmax.f32 %v1796_v44, 0.0  ;;  %v1991_v52 = vadd.f32 %v1990_v49, %v1509_v31  ;;  %v2140_v58 = vmax.f32 %v1987_v43, 0.0 }
 0x567   : > { %v2143_v55 = vmax.f32 %v1989_v47, 0.0  ;;  %v2142_v56 = vmax.f32 %v1798_v48, 0.0 }
 0x568   : > { %v2253_v59 = vpack.c.bf16 %v2141_v51, %v2137_v50  ;;  %v2144_v60 = vmax.f32 %v1991_v52, 0.0 }
 0x569   : > { %v2255_v62 = vpack.c.bf16 %v2143_v55, %v2139_v53  ;;  %v2254_v63 = vpack.c.bf16 %v2142_v56, %v2138_v54  ;;  %v1801_v0 = vpop.f32.mrb[76].mxu0  ;;  %v1534_v54 = vpop.permute.xlu1 %1533 }
 0x56a   : > { %v2256_v1 = vpack.c.bf16 %v2144_v60, %v2140_v58  ;;  %v1802_v3 = vadd.f32 %v1801_v0, %v1514_v57  ;;  %v1994_v4 = vpop.f32.mrb[76].mxu1  ;;  %v1803_v5 = vpop.f32.mrb[77].mxu0 }
 0x56b   : > { %v1995_v6 = vadd.f32 %v1994_v4, %v1514_v57  ;;  %v1804_v7 = vadd.f32 %v1803_v5, %v1514_v57  ;;  %v1996_v8 = vpop.f32.mrb[77].mxu1  ;;  %v1805_v9 = vpop.f32.mrb[78].mxu0  ;;  %2503 = vmatprep.subr.bf16.mxu0 %v2254_v63 }
 0x56c   : > { %v1997_v10 = vadd.f32 %v1996_v8, %v1514_v57  ;;  %v1806_v11 = vadd.f32 %v1805_v9, %v1519_v61  ;;  %v1998_v12 = vpop.f32.mrb[78].mxu1  ;;  %2616 = vmatprep.subr.bf16.mxu1 %v2256_v1  ;;  %v1807_v13 = vpop.f32.mrb[79].mxu0  ;;  %2504 = vmatpush1.bf16.msra.mxu0 %v2253_v59  ;;  %v2145_v17 = vmax.f32 %v1802_v3, 0.0 }
 0x56d   : > { %v1999_v14 = vadd.f32 %v1998_v12, %v1519_v61  ;;  %v1808_v15 = vadd.f32 %v1807_v13, %v1519_v61  ;;  %v2000_v16 = vpop.f32.mrb[79].mxu1  ;;  %2617 = vmatpush1.bf16.msra.mxu1 %v2255_v62  ;;  %v2147_v20 = vmax.f32 %v1995_v6, 0.0  ;;  %v2146_v21 = vmax.f32 %v1804_v7, 0.0  ;;  %v1539_v58 = vpop.permute.xlu0 %1538 }
 0x56e   : > { %v2149_v18 = vmax.f32 %v1806_v11, 0.0  ;;  %v2001_v19 = vadd.f32 %v2000_v16, %v1519_v61  ;;  %v2148_v25 = vmax.f32 %v1997_v10, 0.0 }
 0x56f   : > { %v2151_v22 = vmax.f32 %v1999_v14, 0.0  ;;  %v2150_v23 = vmax.f32 %v1808_v15, 0.0 }
 0x570   : > { %v2257_v26 = vpack.c.bf16 %v2149_v18, %v2145_v17  ;;  %v2152_v27 = vmax.f32 %v2001_v19, 0.0 }
 0x571   : > { %v2259_v29 = vpack.c.bf16 %v2151_v22, %v2147_v20  ;;  %v2258_v30 = vpack.c.bf16 %v2150_v23, %v2146_v21  ;;  %v1811_v31 = vpop.f32.mrb[80].mxu0  ;;  %v1544_v21 = vpop.permute.xlu1 %1543 }
 0x572   : > { %v2260_v32 = vpack.c.bf16 %v2152_v27, %v2148_v25  ;;  %v1812_v33 = vadd.f32 %v1811_v31, %v1524_v24  ;;  %v2004_v34 = vpop.f32.mrb[80].mxu1  ;;  %v1813_v35 = vpop.f32.mrb[81].mxu0 }
 0x573   : > { %v2005_v36 = vadd.f32 %v2004_v34, %v1524_v24  ;;  %v1814_v37 = vadd.f32 %v1813_v35, %v1524_v24  ;;  %v2006_v38 = vpop.f32.mrb[81].mxu1  ;;  %v1815_v39 = vpop.f32.mrb[82].mxu0  ;;  %2505 = vmatprep.subr.bf16.mxu0 %v2258_v30 }
 0x574   : > { %v2007_v40 = vadd.f32 %v2006_v38, %v1524_v24  ;;  %v1816_v41 = vadd.f32 %v1815_v39, %v1529_v28  ;;  %v2008_v42 = vpop.f32.mrb[82].mxu1  ;;  %2618 = vmatprep.subr.bf16.mxu1 %v2260_v32  ;;  %v1817_v43 = vpop.f32.mrb[83].mxu0  ;;  %2506 = vmatpush1.bf16.msra.mxu0 %v2257_v26  ;;  %v2153_v47 = vmax.f32 %v1812_v33, 0.0 }
 0x575   : > { %v2009_v44 = vadd.f32 %v2008_v42, %v1529_v28  ;;  %v1818_v45 = vadd.f32 %v1817_v43, %v1529_v28  ;;  %v2010_v46 = vpop.f32.mrb[83].mxu1  ;;  %2619 = vmatpush1.bf16.msra.mxu1 %v2259_v29  ;;  %v2155_v50 = vmax.f32 %v2005_v36, 0.0  ;;  %v2154_v51 = vmax.f32 %v1814_v37, 0.0  ;;  %v1549_v25 = vpop.permute.xlu0 %1548 }
 0x576   : > { %v2157_v48 = vmax.f32 %v1816_v41, 0.0  ;;  %v2011_v49 = vadd.f32 %v2010_v46, %v1529_v28  ;;  %v2156_v55 = vmax.f32 %v2007_v40, 0.0 }
 0x577   : > { %v2159_v52 = vmax.f32 %v2009_v44, 0.0  ;;  %v2158_v53 = vmax.f32 %v1818_v45, 0.0 }
 0x578   : > { %v2261_v56 = vpack.c.bf16 %v2157_v48, %v2153_v47  ;;  %v2160_v57 = vmax.f32 %v2011_v49, 0.0 }
 0x579   : > { %v2263_v59 = vpack.c.bf16 %v2159_v52, %v2155_v50  ;;  %v2262_v60 = vpack.c.bf16 %v2158_v53, %v2154_v51  ;;  %v1821_v61 = vpop.f32.mrb[84].mxu0  ;;  %v1554_v51 = vpop.permute.xlu1 %1553 }
 0x57a   : > { %v2264_v62 = vpack.c.bf16 %v2160_v57, %v2156_v55  ;;  %v1822_v63 = vadd.f32 %v1821_v61, %v1534_v54  ;;  %v2014_v0 = vpop.f32.mrb[84].mxu1  ;;  %v1823_v1 = vpop.f32.mrb[85].mxu0 }
 0x57b   : > { %v2015_v3 = vadd.f32 %v2014_v0, %v1534_v54  ;;  %v1824_v4 = vadd.f32 %v1823_v1, %v1534_v54  ;;  %v2016_v5 = vpop.f32.mrb[85].mxu1  ;;  %v1825_v6 = vpop.f32.mrb[86].mxu0  ;;  %2507 = vmatprep.subr.bf16.mxu0 %v2262_v60 }
 0x57c   : > { %v2017_v7 = vadd.f32 %v2016_v5, %v1534_v54  ;;  %v1826_v8 = vadd.f32 %v1825_v6, %v1539_v58  ;;  %v2018_v9 = vpop.f32.mrb[86].mxu1  ;;  %2620 = vmatprep.subr.bf16.mxu1 %v2264_v62  ;;  %v1827_v10 = vpop.f32.mrb[87].mxu0  ;;  %2508 = vmatpush1.bf16.msra.mxu0 %v2261_v56  ;;  %v2161_v14 = vmax.f32 %v1822_v63, 0.0 }
 0x57d   : > { %v2019_v11 = vadd.f32 %v2018_v9, %v1539_v58  ;;  %v1828_v12 = vadd.f32 %v1827_v10, %v1539_v58  ;;  %v2020_v13 = vpop.f32.mrb[87].mxu1  ;;  %2621 = vmatpush1.bf16.msra.mxu1 %v2263_v59  ;;  %v2163_v17 = vmax.f32 %v2015_v3, 0.0  ;;  %v2162_v18 = vmax.f32 %v1824_v4, 0.0  ;;  %v1559_v55 = vpop.permute.xlu0 %1558 }
 0x57e   : > { %v2165_v15 = vmax.f32 %v1826_v8, 0.0  ;;  %v2021_v16 = vadd.f32 %v2020_v13, %v1539_v58  ;;  %v2164_v22 = vmax.f32 %v2017_v7, 0.0 }
 0x57f   : > { %v2167_v19 = vmax.f32 %v2019_v11, 0.0  ;;  %v2166_v20 = vmax.f32 %v1828_v12, 0.0 }
 0x580   : > { %v2265_v23 = vpack.c.bf16 %v2165_v15, %v2161_v14  ;;  %v2168_v24 = vmax.f32 %v2021_v16, 0.0 }
 0x581   : > { %v2267_v26 = vpack.c.bf16 %v2167_v19, %v2163_v17  ;;  %v2266_v27 = vpack.c.bf16 %v2166_v20, %v2162_v18  ;;  %v1831_v28 = vpop.f32.mrb[88].mxu0  ;;  %v1564_v18 = vpop.permute.xlu1 %1563 }
 0x582   : > { %v2268_v29 = vpack.c.bf16 %v2168_v24, %v2164_v22  ;;  %v1832_v30 = vadd.f32 %v1831_v28, %v1544_v21  ;;  %v2024_v31 = vpop.f32.mrb[88].mxu1  ;;  %v1833_v32 = vpop.f32.mrb[89].mxu0 }
 0x583   : > { %v2025_v33 = vadd.f32 %v2024_v31, %v1544_v21  ;;  %v1834_v34 = vadd.f32 %v1833_v32, %v1544_v21  ;;  %v2026_v35 = vpop.f32.mrb[89].mxu1  ;;  %v1835_v36 = vpop.f32.mrb[90].mxu0  ;;  %2509 = vmatprep.subr.bf16.mxu0 %v2266_v27 }
 0x584   : > { %v2027_v37 = vadd.f32 %v2026_v35, %v1544_v21  ;;  %v1836_v38 = vadd.f32 %v1835_v36, %v1549_v25  ;;  %v2028_v39 = vpop.f32.mrb[90].mxu1  ;;  %2622 = vmatprep.subr.bf16.mxu1 %v2268_v29  ;;  %v1837_v40 = vpop.f32.mrb[91].mxu0  ;;  %2510 = vmatpush1.bf16.msra.mxu0 %v2265_v23  ;;  %v2169_v44 = vmax.f32 %v1832_v30, 0.0 }
 0x585   : > { %v2029_v41 = vadd.f32 %v2028_v39, %v1549_v25  ;;  %v1838_v42 = vadd.f32 %v1837_v40, %v1549_v25  ;;  %v2030_v43 = vpop.f32.mrb[91].mxu1  ;;  %2623 = vmatpush1.bf16.msra.mxu1 %v2267_v26  ;;  %v2171_v47 = vmax.f32 %v2025_v33, 0.0  ;;  %v2170_v48 = vmax.f32 %v1834_v34, 0.0  ;;  %v1569_v22 = vpop.permute.xlu0 %1568 }
 0x586   : > { %v2173_v45 = vmax.f32 %v1836_v38, 0.0  ;;  %v2031_v46 = vadd.f32 %v2030_v43, %v1549_v25  ;;  %v2172_v52 = vmax.f32 %v2027_v37, 0.0 }
 0x587   : > { %v2175_v49 = vmax.f32 %v2029_v41, 0.0  ;;  %v2174_v50 = vmax.f32 %v1838_v42, 0.0 }
 0x588   : > { %v2269_v53 = vpack.c.bf16 %v2173_v45, %v2169_v44  ;;  %v2176_v54 = vmax.f32 %v2031_v46, 0.0 }
 0x589   : > { %v2271_v56 = vpack.c.bf16 %v2175_v49, %v2171_v47  ;;  %v2270_v57 = vpack.c.bf16 %v2174_v50, %v2170_v48  ;;  %v1841_v58 = vpop.f32.mrb[92].mxu0  ;;  %v1574_v48 = vpop.permute.xlu1 %1573 }
 0x58a   : > { %v2272_v59 = vpack.c.bf16 %v2176_v54, %v2172_v52  ;;  %v1842_v60 = vadd.f32 %v1841_v58, %v1554_v51  ;;  %v2034_v61 = vpop.f32.mrb[92].mxu1  ;;  %v1843_v62 = vpop.f32.mrb[93].mxu0 }
 0x58b   : > { %v2035_v63 = vadd.f32 %v2034_v61, %v1554_v51  ;;  %v1844_v0 = vadd.f32 %v1843_v62, %v1554_v51  ;;  %v2036_v1 = vpop.f32.mrb[93].mxu1  ;;  %v1845_v3 = vpop.f32.mrb[94].mxu0  ;;  %2511 = vmatprep.subr.bf16.mxu0 %v2270_v57 }
 0x58c   : > { %v2037_v4 = vadd.f32 %v2036_v1, %v1554_v51  ;;  %v1846_v5 = vadd.f32 %v1845_v3, %v1559_v55  ;;  %v2038_v6 = vpop.f32.mrb[94].mxu1  ;;  %2624 = vmatprep.subr.bf16.mxu1 %v2272_v59  ;;  %v1847_v7 = vpop.f32.mrb[95].mxu0  ;;  %2512 = vmatpush1.bf16.msra.mxu0 %v2269_v53  ;;  %v2177_v11 = vmax.f32 %v1842_v60, 0.0 }
 0x58d   : > { %v2039_v8 = vadd.f32 %v2038_v6, %v1559_v55  ;;  %v1848_v9 = vadd.f32 %v1847_v7, %v1559_v55  ;;  %v2040_v10 = vpop.f32.mrb[95].mxu1  ;;  %2625 = vmatpush1.bf16.msra.mxu1 %v2271_v56  ;;  %v2179_v14 = vmax.f32 %v2035_v63, 0.0  ;;  %v2178_v15 = vmax.f32 %v1844_v0, 0.0  ;;  %v1579_v52 = vpop.permute.xlu0 %1578 }
 0x58e   : > { %v2181_v12 = vmax.f32 %v1846_v5, 0.0  ;;  %v2041_v13 = vadd.f32 %v2040_v10, %v1559_v55  ;;  %v2180_v19 = vmax.f32 %v2037_v4, 0.0 }
 0x58f   : > { %v2183_v16 = vmax.f32 %v2039_v8, 0.0  ;;  %v2182_v17 = vmax.f32 %v1848_v9, 0.0 }
 0x590   : > { %v2273_v20 = vpack.c.bf16 %v2181_v12, %v2177_v11  ;;  %v2184_v21 = vmax.f32 %v2041_v13, 0.0 }
 0x591   : > { %v2275_v23 = vpack.c.bf16 %v2183_v16, %v2179_v14  ;;  %v2274_v24 = vpack.c.bf16 %v2182_v17, %v2178_v15  ;;  %v1851_v25 = vpop.f32.mrb[96].mxu0  ;;  %v1584_v15 = vpop.permute.xlu1 %1583 }
 0x592   : > { %v2276_v26 = vpack.c.bf16 %v2184_v21, %v2180_v19  ;;  %v1852_v27 = vadd.f32 %v1851_v25, %v1564_v18  ;;  %v2044_v28 = vpop.f32.mrb[96].mxu1  ;;  %v1853_v29 = vpop.f32.mrb[97].mxu0 }
 0x593   : > { %v2045_v30 = vadd.f32 %v2044_v28, %v1564_v18  ;;  %v1854_v31 = vadd.f32 %v1853_v29, %v1564_v18  ;;  %v2046_v32 = vpop.f32.mrb[97].mxu1  ;;  %v1855_v33 = vpop.f32.mrb[98].mxu0  ;;  %2513 = vmatprep.subr.bf16.mxu0 %v2274_v24 }
 0x594   : > { %v2047_v34 = vadd.f32 %v2046_v32, %v1564_v18  ;;  %v1856_v35 = vadd.f32 %v1855_v33, %v1569_v22  ;;  %v2048_v36 = vpop.f32.mrb[98].mxu1  ;;  %2626 = vmatprep.subr.bf16.mxu1 %v2276_v26  ;;  %v1857_v37 = vpop.f32.mrb[99].mxu0  ;;  %2514 = vmatpush1.bf16.msra.mxu0 %v2273_v20  ;;  %v2185_v41 = vmax.f32 %v1852_v27, 0.0 }
 0x595   : > { %v2049_v38 = vadd.f32 %v2048_v36, %v1569_v22  ;;  %v1858_v39 = vadd.f32 %v1857_v37, %v1569_v22  ;;  %v2050_v40 = vpop.f32.mrb[99].mxu1  ;;  %2627 = vmatpush1.bf16.msra.mxu1 %v2275_v23  ;;  %v2187_v44 = vmax.f32 %v2045_v30, 0.0  ;;  %v2186_v45 = vmax.f32 %v1854_v31, 0.0  ;;  %v1589_v19 = vpop.permute.xlu0 %1588 }
 0x596   : > { %v2189_v42 = vmax.f32 %v1856_v35, 0.0  ;;  %v2051_v43 = vadd.f32 %v2050_v40, %v1569_v22  ;;  %v2188_v49 = vmax.f32 %v2047_v34, 0.0 }
 0x597   : > { %v2191_v46 = vmax.f32 %v2049_v38, 0.0  ;;  %v2190_v47 = vmax.f32 %v1858_v39, 0.0 }
 0x598   : > { %v2277_v50 = vpack.c.bf16 %v2189_v42, %v2185_v41  ;;  %v2192_v51 = vmax.f32 %v2051_v43, 0.0 }
 0x599   : > { %v2279_v53 = vpack.c.bf16 %v2191_v46, %v2187_v44  ;;  %v2278_v54 = vpack.c.bf16 %v2190_v47, %v2186_v45  ;;  %v1861_v55 = vpop.f32.mrb[100].mxu0  ;;  %v1594_v45 = vpop.permute.xlu1 %1593 }
 0x59a   : > { %v2280_v56 = vpack.c.bf16 %v2192_v51, %v2188_v49  ;;  %v1862_v57 = vadd.f32 %v1861_v55, %v1574_v48  ;;  %v2054_v58 = vpop.f32.mrb[100].mxu1  ;;  %v1863_v59 = vpop.f32.mrb[101].mxu0 }
 0x59b   : > { %v2055_v60 = vadd.f32 %v2054_v58, %v1574_v48  ;;  %v1864_v61 = vadd.f32 %v1863_v59, %v1574_v48  ;;  %v2056_v62 = vpop.f32.mrb[101].mxu1  ;;  %v1865_v63 = vpop.f32.mrb[102].mxu0  ;;  %2515 = vmatprep.subr.bf16.mxu0 %v2278_v54 }
 0x59c   : > { %v2057_v0 = vadd.f32 %v2056_v62, %v1574_v48  ;;  %v1866_v1 = vadd.f32 %v1865_v63, %v1579_v52  ;;  %v2058_v3 = vpop.f32.mrb[102].mxu1  ;;  %2628 = vmatprep.subr.bf16.mxu1 %v2280_v56  ;;  %v1867_v4 = vpop.f32.mrb[103].mxu0  ;;  %2516 = vmatpush1.bf16.msra.mxu0 %v2277_v50  ;;  %v2193_v8 = vmax.f32 %v1862_v57, 0.0 }
 0x59d   : > { %v2059_v5 = vadd.f32 %v2058_v3, %v1579_v52  ;;  %v1868_v6 = vadd.f32 %v1867_v4, %v1579_v52  ;;  %v2060_v7 = vpop.f32.mrb[103].mxu1  ;;  %2629 = vmatpush1.bf16.msra.mxu1 %v2279_v53  ;;  %v2195_v11 = vmax.f32 %v2055_v60, 0.0  ;;  %v2194_v12 = vmax.f32 %v1864_v61, 0.0  ;;  %v1599_v49 = vpop.permute.xlu0 %1598 }
 0x59e   : > { %v2197_v9 = vmax.f32 %v1866_v1, 0.0  ;;  %v2061_v10 = vadd.f32 %v2060_v7, %v1579_v52  ;;  %v2196_v16 = vmax.f32 %v2057_v0, 0.0 }
 0x59f   : > { %v2199_v13 = vmax.f32 %v2059_v5, 0.0  ;;  %v2198_v14 = vmax.f32 %v1868_v6, 0.0 }
 0x5a0   : > { %v2281_v17 = vpack.c.bf16 %v2197_v9, %v2193_v8  ;;  %v2200_v18 = vmax.f32 %v2061_v10, 0.0 }
 0x5a1   : > { %v2283_v20 = vpack.c.bf16 %v2199_v13, %v2195_v11  ;;  %v2282_v21 = vpack.c.bf16 %v2198_v14, %v2194_v12  ;;  %v1871_v22 = vpop.f32.mrb[104].mxu0  ;;  %v1604_v12 = vpop.permute.xlu1 %1603 }
 0x5a2   : > { %v2284_v23 = vpack.c.bf16 %v2200_v18, %v2196_v16  ;;  %v1872_v24 = vadd.f32 %v1871_v22, %v1584_v15  ;;  %v2064_v25 = vpop.f32.mrb[104].mxu1  ;;  %v1873_v26 = vpop.f32.mrb[105].mxu0 }
 0x5a3   : > { %v2065_v27 = vadd.f32 %v2064_v25, %v1584_v15  ;;  %v1874_v28 = vadd.f32 %v1873_v26, %v1584_v15  ;;  %v2066_v29 = vpop.f32.mrb[105].mxu1  ;;  %v1875_v30 = vpop.f32.mrb[106].mxu0  ;;  %2517 = vmatprep.subr.bf16.mxu0 %v2282_v21 }
 0x5a4   : > { %v2067_v31 = vadd.f32 %v2066_v29, %v1584_v15  ;;  %v1876_v32 = vadd.f32 %v1875_v30, %v1589_v19  ;;  %v2068_v33 = vpop.f32.mrb[106].mxu1  ;;  %2630 = vmatprep.subr.bf16.mxu1 %v2284_v23  ;;  %v1877_v34 = vpop.f32.mrb[107].mxu0  ;;  %2518 = vmatpush1.bf16.msra.mxu0 %v2281_v17  ;;  %v2201_v38 = vmax.f32 %v1872_v24, 0.0 }
 0x5a5   : > { %v2069_v35 = vadd.f32 %v2068_v33, %v1589_v19  ;;  %v1878_v36 = vadd.f32 %v1877_v34, %v1589_v19  ;;  %v2070_v37 = vpop.f32.mrb[107].mxu1  ;;  %2631 = vmatpush1.bf16.msra.mxu1 %v2283_v20  ;;  %v2203_v41 = vmax.f32 %v2065_v27, 0.0  ;;  %v2202_v42 = vmax.f32 %v1874_v28, 0.0  ;;  %v1609_v16 = vpop.permute.xlu0 %1608 }
 0x5a6   : > { %v2205_v39 = vmax.f32 %v1876_v32, 0.0  ;;  %v2071_v40 = vadd.f32 %v2070_v37, %v1589_v19  ;;  %v2204_v46 = vmax.f32 %v2067_v31, 0.0 }
 0x5a7   : > { %v2207_v43 = vmax.f32 %v2069_v35, 0.0  ;;  %v2206_v44 = vmax.f32 %v1878_v36, 0.0 }
 0x5a8   : > { %v2285_v47 = vpack.c.bf16 %v2205_v39, %v2201_v38  ;;  %v2208_v48 = vmax.f32 %v2071_v40, 0.0 }
 0x5a9   : > { %v2287_v50 = vpack.c.bf16 %v2207_v43, %v2203_v41  ;;  %v2286_v51 = vpack.c.bf16 %v2206_v44, %v2202_v42  ;;  %v1881_v52 = vpop.f32.mrb[108].mxu0  ;;  %v1614_v42 = vpop.permute.xlu1 %1613 }
 0x5aa   : > { %v2288_v53 = vpack.c.bf16 %v2208_v48, %v2204_v46  ;;  %v1882_v54 = vadd.f32 %v1881_v52, %v1594_v45  ;;  %v2074_v55 = vpop.f32.mrb[108].mxu1  ;;  %v1883_v56 = vpop.f32.mrb[109].mxu0 }
 0x5ab   : > { %v2075_v57 = vadd.f32 %v2074_v55, %v1594_v45  ;;  %v1884_v58 = vadd.f32 %v1883_v56, %v1594_v45  ;;  %v2076_v59 = vpop.f32.mrb[109].mxu1  ;;  %v1885_v60 = vpop.f32.mrb[110].mxu0  ;;  %2519 = vmatprep.subr.bf16.mxu0 %v2286_v51 }
 0x5ac   : > { %v2077_v61 = vadd.f32 %v2076_v59, %v1594_v45  ;;  %v1886_v62 = vadd.f32 %v1885_v60, %v1599_v49  ;;  %v2078_v63 = vpop.f32.mrb[110].mxu1  ;;  %2632 = vmatprep.subr.bf16.mxu1 %v2288_v53  ;;  %v1887_v0 = vpop.f32.mrb[111].mxu0  ;;  %2520 = vmatpush1.bf16.msra.mxu0 %v2285_v47  ;;  %v2209_v5 = vmax.f32 %v1882_v54, 0.0 }
 0x5ad   : > { %v2079_v1 = vadd.f32 %v2078_v63, %v1599_v49  ;;  %v1888_v3 = vadd.f32 %v1887_v0, %v1599_v49  ;;  %v2080_v4 = vpop.f32.mrb[111].mxu1  ;;  %2633 = vmatpush1.bf16.msra.mxu1 %v2287_v50  ;;  %v2211_v8 = vmax.f32 %v2075_v57, 0.0  ;;  %v2210_v9 = vmax.f32 %v1884_v58, 0.0  ;;  %v1619_v46 = vpop.permute.xlu0 %1618 }
 0x5ae   : > { %v2213_v6 = vmax.f32 %v1886_v62, 0.0  ;;  %v2081_v7 = vadd.f32 %v2080_v4, %v1599_v49  ;;  %v2212_v13 = vmax.f32 %v2077_v61, 0.0 }
 0x5af   : > { %v2215_v10 = vmax.f32 %v2079_v1, 0.0  ;;  %v2214_v11 = vmax.f32 %v1888_v3, 0.0 }
 0x5b0   : > { %v2289_v14 = vpack.c.bf16 %v2213_v6, %v2209_v5  ;;  %v2216_v15 = vmax.f32 %v2081_v7, 0.0 }
 0x5b1   : > { %v2291_v17 = vpack.c.bf16 %v2215_v10, %v2211_v8  ;;  %v2290_v18 = vpack.c.bf16 %v2214_v11, %v2210_v9  ;;  %v1891_v19 = vpop.f32.mrb[112].mxu0  ;;  %v1624_v9 = vpop.permute.xlu1 %1623 }
 0x5b2   : > { %v2292_v20 = vpack.c.bf16 %v2216_v15, %v2212_v13  ;;  %v1892_v21 = vadd.f32 %v1891_v19, %v1604_v12  ;;  %v2084_v22 = vpop.f32.mrb[112].mxu1  ;;  %v1893_v23 = vpop.f32.mrb[113].mxu0 }
 0x5b3   : > { %v2085_v24 = vadd.f32 %v2084_v22, %v1604_v12  ;;  %v1894_v25 = vadd.f32 %v1893_v23, %v1604_v12  ;;  %v2086_v26 = vpop.f32.mrb[113].mxu1  ;;  %v1895_v27 = vpop.f32.mrb[114].mxu0  ;;  %2521 = vmatprep.subr.bf16.mxu0 %v2290_v18 }
 0x5b4   : > { %v2087_v28 = vadd.f32 %v2086_v26, %v1604_v12  ;;  %v1896_v29 = vadd.f32 %v1895_v27, %v1609_v16  ;;  %v2088_v30 = vpop.f32.mrb[114].mxu1  ;;  %2634 = vmatprep.subr.bf16.mxu1 %v2292_v20  ;;  %v1897_v31 = vpop.f32.mrb[115].mxu0  ;;  %2522 = vmatpush1.bf16.msra.mxu0 %v2289_v14  ;;  %v2217_v35 = vmax.f32 %v1892_v21, 0.0 }
 0x5b5   : > { %v2089_v32 = vadd.f32 %v2088_v30, %v1609_v16  ;;  %v1898_v33 = vadd.f32 %v1897_v31, %v1609_v16  ;;  %v2090_v34 = vpop.f32.mrb[115].mxu1  ;;  %2635 = vmatpush1.bf16.msra.mxu1 %v2291_v17  ;;  %v2219_v38 = vmax.f32 %v2085_v24, 0.0  ;;  %v2218_v39 = vmax.f32 %v1894_v25, 0.0  ;;  %v1629_v13 = vpop.permute.xlu0 %1628 }
 0x5b6   : > { %v2221_v36 = vmax.f32 %v1896_v29, 0.0  ;;  %v2091_v37 = vadd.f32 %v2090_v34, %v1609_v16  ;;  %v2220_v43 = vmax.f32 %v2087_v28, 0.0 }
 0x5b7   : > { %v2223_v40 = vmax.f32 %v2089_v32, 0.0  ;;  %v2222_v41 = vmax.f32 %v1898_v33, 0.0 }
 0x5b8   : > { %v2293_v44 = vpack.c.bf16 %v2221_v36, %v2217_v35  ;;  %v2224_v45 = vmax.f32 %v2091_v37, 0.0 }
 0x5b9   : > { %v2295_v47 = vpack.c.bf16 %v2223_v40, %v2219_v38  ;;  %v2294_v48 = vpack.c.bf16 %v2222_v41, %v2218_v39  ;;  %v1901_v49 = vpop.f32.mrb[116].mxu0 }
 0x5ba   : > { %v2296_v50 = vpack.c.bf16 %v2224_v45, %v2220_v43  ;;  %v1902_v51 = vadd.f32 %v1901_v49, %v1614_v42  ;;  %v2094_v52 = vpop.f32.mrb[116].mxu1  ;;  %v1903_v53 = vpop.f32.mrb[117].mxu0  ;;  %v3805_v45 = vld [vmem:[%s4483_s2 + $0x1f0] ss:$8 sps:$4 sm:$0xff]  }
 0x5bb   : > { %v2095_v54 = vadd.f32 %v2094_v52, %v1614_v42  ;;  %v1904_v55 = vadd.f32 %v1903_v53, %v1614_v42  ;;  %v2096_v56 = vpop.f32.mrb[117].mxu1  ;;  %v1905_v57 = vpop.f32.mrb[118].mxu0  ;;  %2523 = vmatprep.subr.bf16.mxu0 %v2294_v48  ;;  %v3811_v48 = vld [vmem:[%s4483_s2 + $0x214] ss:$8 sps:$4 sm:$0xff]   ;;  %v3813_v49 = vld [vmem:[%s4483_s2 + $0x210] ss:$8 sps:$4 sm:$0xff]  }
 0x5bc   : > { %v2097_v58 = vadd.f32 %v2096_v56, %v1614_v42  ;;  %v1906_v59 = vadd.f32 %v1905_v57, %v1619_v46  ;;  %v2098_v60 = vpop.f32.mrb[118].mxu1  ;;  %2636 = vmatprep.subr.bf16.mxu1 %v2296_v50  ;;  %v1907_v61 = vpop.f32.mrb[119].mxu0  ;;  %2524 = vmatpush1.bf16.msra.mxu0 %v2293_v44  ;;  %v2225_v1 = vmax.f32 %v1902_v51, 0.0  ;;  %v3814_v50 = vld [vmem:[%s4483_s2 + $0x224] ss:$8 sps:$4 sm:$0xff]  }
 0x5bd   : > { %v2099_v62 = vadd.f32 %v2098_v60, %v1619_v46  ;;  %v1908_v63 = vadd.f32 %v1907_v61, %v1619_v46  ;;  %v2100_v0 = vpop.f32.mrb[119].mxu1  ;;  %2637 = vmatpush1.bf16.msra.mxu1 %v2295_v47  ;;  %v2227_v5 = vmax.f32 %v2095_v54, 0.0  ;;  %v2226_v6 = vmax.f32 %v1904_v55, 0.0  ;;  %v3810_v47 = vld [vmem:[%s4483_s2 + $0x200] ss:$8 sps:$4 sm:$0xff]   ;;  %v2340_v60 = vpop.permute.xlu1 %2339 }
 0x5be   : > { %v2229_v3 = vmax.f32 %v1906_v59, 0.0  ;;  %v2101_v4 = vadd.f32 %v2100_v0, %v1619_v46  ;;  %v2228_v10 = vmax.f32 %v2097_v58, 0.0  ;;  %v3808_v46 = vld [vmem:[%s4483_s2 + $0x204] ss:$8 sps:$4 sm:$0xff]   ;;  %v3816_v51 = vld [vmem:[%s4483_s2 + $0x220] ss:$8 sps:$4 sm:$0xff]   ;;  %v2345_v61 = vpop.permute.xlu0 %2344 }
 0x5bf   : > { %v2231_v7 = vmax.f32 %v2099_v62, 0.0  ;;  %v2230_v8 = vmax.f32 %v1908_v63, 0.0  ;;  %v3817_v52 = vld [vmem:[%s4483_s2 + $0x234] ss:$8 sps:$4 sm:$0xff]   ;;  %v3819_v53 = vld [vmem:[%s4483_s2 + $0x230] ss:$8 sps:$4 sm:$0xff]  }
 0x5c0   : > { %v2297_v11 = vpack.c.bf16 %v2229_v3, %v2225_v1  ;;  %v2232_v12 = vmax.f32 %v2101_v4, 0.0  ;;  %v3820_v54 = vld [vmem:[%s4483_s2 + $0x244] ss:$8 sps:$4 sm:$0xff]   ;;  %v3822_v55 = vld [vmem:[%s4483_s2 + $0x240] ss:$8 sps:$4 sm:$0xff]  }
 0x5c1   : > { %v2299_v14 = vpack.c.bf16 %v2231_v7, %v2227_v5  ;;  %v2298_v15 = vpack.c.bf16 %v2230_v8, %v2226_v6  ;;  %v1911_v16 = vpop.f32.mrb[120].mxu0  ;;  %v3823_v56 = vld [vmem:[%s4483_s2 + $0x254] ss:$8 sps:$4 sm:$0xff]   ;;  %v3825_v57 = vld [vmem:[%s4483_s2 + $0x250] ss:$8 sps:$4 sm:$0xff]  }
 0x5c2   : > { %v2300_v17 = vpack.c.bf16 %v2232_v12, %v2228_v10  ;;  %v1912_v18 = vadd.f32 %v1911_v16, %v1624_v9  ;;  %v2104_v19 = vpop.f32.mrb[120].mxu1  ;;  %v1913_v20 = vpop.f32.mrb[121].mxu0  ;;  %v3826_v58 = vld [vmem:[%s4483_s2 + $0x264] ss:$8 sps:$4 sm:$0xff]   ;;  %v3828_v59 = vld [vmem:[%s4483_s2 + $0x260] ss:$8 sps:$4 sm:$0xff]  }
 0x5c3   : > { %v2105_v21 = vadd.f32 %v2104_v19, %v1624_v9  ;;  %v1914_v22 = vadd.f32 %v1913_v20, %v1624_v9  ;;  %v2106_v23 = vpop.f32.mrb[121].mxu1  ;;  %v1915_v24 = vpop.f32.mrb[122].mxu0  ;;  %2525 = vmatprep.subr.bf16.mxu0 %v2298_v15 }
 0x5c4   : > { %v2107_v25 = vadd.f32 %v2106_v23, %v1624_v9  ;;  %v1916_v26 = vadd.f32 %v1915_v24, %v1629_v13  ;;  %v2108_v27 = vpop.f32.mrb[122].mxu1  ;;  %2638 = vmatprep.subr.bf16.mxu1 %v2300_v17  ;;  %v1917_v28 = vpop.f32.mrb[123].mxu0  ;;  %2526 = vmatpush1.bf16.msra.mxu0 %v2297_v11  ;;  %v2233_v32 = vmax.f32 %v1912_v18, 0.0 }
 0x5c5   : > { %v2109_v29 = vadd.f32 %v2108_v27, %v1629_v13  ;;  %v1918_v30 = vadd.f32 %v1917_v28, %v1629_v13  ;;  %v2110_v31 = vpop.f32.mrb[123].mxu1  ;;  %2639 = vmatpush1.bf16.msra.mxu1 %v2299_v14  ;;  %v2235_v35 = vmax.f32 %v2105_v21, 0.0  ;;  %v2234_v36 = vmax.f32 %v1914_v22, 0.0  ;;  %v2350_v21 = vpop.permute.xlu1 %2349 }
 0x5c6   : > { %v2237_v33 = vmax.f32 %v1916_v26, 0.0  ;;  %v2111_v34 = vadd.f32 %v2110_v31, %v1629_v13  ;;  %v2236_v39 = vmax.f32 %v2107_v25, 0.0  ;;  %v2355_v25 = vpop.permute.xlu0 %2354 }
 0x5c7   : > { %v2239_v37 = vmax.f32 %v2109_v29, 0.0  ;;  %v2238_v38 = vmax.f32 %v1918_v30, 0.0 }
 0x5c8   : > { %v2301_v40 = vpack.c.bf16 %v2237_v33, %v2233_v32  ;;  %v2240_v41 = vmax.f32 %v2111_v34, 0.0 }
 0x5c9   : > { %v2303_v42 = vpack.c.bf16 %v2239_v37, %v2235_v35  ;;  %v2302_v43 = vpack.c.bf16 %v2238_v38, %v2234_v36 }
 0x5ca   : > { %v2304_v44 = vpack.c.bf16 %v2240_v41, %v2236_v39 }
 0x5cb   : > { %2527 = vmatprep.subr.bf16.mxu0 %v2302_v43 }
 0x5cc   : > { %2640 = vmatprep.subr.bf16.mxu1 %v2304_v44  ;;  %2528 = vmatpush1.bf16.msra.mxu0 %v2301_v40 }
 0x5cd   : > { %2641 = vmatpush1.bf16.msra.mxu1 %v2303_v42 }
 0x5cf   : > { %2530 = vmatmul.mubr.bf16.vlgmr.msra.gmra.mrb[124].mxu0 %v3805_v45 }
 0x5d0   : > { %2643 = vmatmul.mubr.bf16.vlgmr.msra.gmra.mrb[124].mxu1 %v3805_v45  ;;  %2539 = vmatprep.mubr.bf16.mxu0 %v3808_v46 }
 0x5d1   : > { %2652 = vmatprep.mubr.bf16.mxu1 %v3808_v46 }
 0x5d7   : > { %2540 = vmatmul.mubr.bf16.gmra.mrb[128].mxu0 %v3810_v47 }
 0x5d8   : > { %2653 = vmatmul.mubr.bf16.gmra.mrb[128].mxu1 %v3810_v47  ;;  %2549 = vmatprep.mubr.bf16.mxu0 %v3811_v48 }
 0x5d9   : > { %2662 = vmatprep.mubr.bf16.mxu1 %v3811_v48 }
 0x5df   : > { %2550 = vmatmul.mubr.bf16.gmra.mrb[132].mxu0 %v3813_v49 }
 0x5e0   : > { %2663 = vmatmul.mubr.bf16.gmra.mrb[132].mxu1 %v3813_v49  ;;  %2559 = vmatprep.mubr.bf16.mxu0 %v3814_v50 }
 0x5e1   : > { %2672 = vmatprep.mubr.bf16.mxu1 %v3814_v50 }
 0x5e7   : > { %2560 = vmatmul.mubr.bf16.gmra.mrb[136].mxu0 %v3816_v51 }
 0x5e8   : > { %2673 = vmatmul.mubr.bf16.gmra.mrb[136].mxu1 %v3816_v51  ;;  %2569 = vmatprep.mubr.bf16.mxu0 %v3817_v52  ;;  %v2360_v51 = vpop.permute.xlu1 %2359 }
 0x5e9   : > { %2682 = vmatprep.mubr.bf16.mxu1 %v3817_v52 }
 0x5ef   : > { %2570 = vmatmul.mubr.bf16.gmra.mrb[140].mxu0 %v3819_v53 }
 0x5f0   : > { %2683 = vmatmul.mubr.bf16.gmra.mrb[140].mxu1 %v3819_v53  ;;  %2579 = vmatprep.mubr.bf16.mxu0 %v3820_v54 }
 0x5f1   : > { %2692 = vmatprep.mubr.bf16.mxu1 %v3820_v54 }
 0x5f7   : > { %2580 = vmatmul.mubr.bf16.gmra.mrb[144].mxu0 %v3822_v55 }
 0x5f8   : > { %2693 = vmatmul.mubr.bf16.gmra.mrb[144].mxu1 %v3822_v55  ;;  %2589 = vmatprep.mubr.bf16.mxu0 %v3823_v56  ;;  %v2365_v55 = vpop.permute.xlu0 %2364 }
 0x5f9   : > { %2702 = vmatprep.mubr.bf16.mxu1 %v3823_v56 }
 0x5ff   : > { %2590 = vmatmul.mubr.bf16.gmra.mrb[148].mxu0 %v3825_v57 }
 0x600   : > { %2703 = vmatmul.mubr.bf16.gmra.mrb[148].mxu1 %v3825_v57  ;;  %2599 = vmatprep.mubr.bf16.mxu0 %v3826_v58 }
 0x601   : > { %2712 = vmatprep.mubr.bf16.mxu1 %v3826_v58 }
 0x607   : > { %2600 = vmatmul.mubr.bf16.gmra.mrb[152].mxu0 %v3828_v59 }
 0x608   : > { %2713 = vmatmul.mubr.bf16.gmra.mrb[152].mxu1 %v3828_v59  ;;  %2931 = vmatprep.mubr.bf16.mxu0 %v3844_v2 }
 0x609   : > { %3004 = vmatprep.mubr.bf16.mxu1 %v3844_v2 }
 0x6a2   : > { %v2531_v62 = vpop.f32.mrb[124].mxu0 }
 0x6a3   : > { %v2532_v63 = vadd.f32 %v2531_v62, %v2340_v60  ;;  %v2644_v0 = vpop.f32.mrb[124].mxu1  ;;  %v2533_v1 = vpop.f32.mrb[125].mxu0 }
 0x6a4   : > { %v2645_v3 = vadd.f32 %v2644_v0, %v2340_v60  ;;  %v2534_v4 = vadd.f32 %v2533_v1, %v2340_v60  ;;  %v2646_v5 = vpop.f32.mrb[125].mxu1  ;;  %v2535_v6 = vpop.f32.mrb[126].mxu0 }
 0x6a5   : > { %v2647_v7 = vadd.f32 %v2646_v5, %v2340_v60  ;;  %v2536_v8 = vadd.f32 %v2535_v6, %v2345_v61  ;;  %v2648_v9 = vpop.f32.mrb[126].mxu1  ;;  %v2537_v10 = vpop.f32.mrb[127].mxu0  ;;  %v2723_v14 = vmax.f32 %v2532_v63, 0.0 }
 0x6a6   : > { %v2649_v11 = vadd.f32 %v2648_v9, %v2345_v61  ;;  %v2538_v12 = vadd.f32 %v2537_v10, %v2345_v61  ;;  %v2650_v13 = vpop.f32.mrb[127].mxu1  ;;  %v2725_v17 = vmax.f32 %v2645_v3, 0.0  ;;  %v2724_v18 = vmax.f32 %v2534_v4, 0.0 }
 0x6a7   : > { %v2727_v15 = vmax.f32 %v2536_v8, 0.0  ;;  %v2651_v16 = vadd.f32 %v2650_v13, %v2345_v61  ;;  %v2726_v22 = vmax.f32 %v2647_v7, 0.0 }
 0x6a8   : > { %v2729_v19 = vmax.f32 %v2649_v11, 0.0  ;;  %v2728_v20 = vmax.f32 %v2538_v12, 0.0 }
 0x6a9   : > { %v2787_v23 = vpack.c.bf16 %v2727_v15, %v2723_v14  ;;  %v2730_v24 = vmax.f32 %v2651_v16, 0.0 }
 0x6aa   : > { %v2789_v26 = vpack.c.bf16 %v2729_v19, %v2725_v17  ;;  %v2788_v27 = vpack.c.bf16 %v2728_v20, %v2724_v18  ;;  %v2541_v28 = vpop.f32.mrb[128].mxu0  ;;  %v2370_v18 = vpop.permute.xlu1 %2369 }
 0x6ab   : > { %v2790_v29 = vpack.c.bf16 %v2730_v24, %v2726_v22  ;;  %v2542_v30 = vadd.f32 %v2541_v28, %v2350_v21  ;;  %v2654_v31 = vpop.f32.mrb[128].mxu1  ;;  %v2543_v32 = vpop.f32.mrb[129].mxu0 }
 0x6ac   : > { %v2655_v33 = vadd.f32 %v2654_v31, %v2350_v21  ;;  %v2544_v34 = vadd.f32 %v2543_v32, %v2350_v21  ;;  %v2656_v35 = vpop.f32.mrb[129].mxu1  ;;  %v2545_v36 = vpop.f32.mrb[130].mxu0  ;;  %2899 = vmatprep.subr.bf16.mxu0 %v2788_v27 }
 0x6ad   : > { %v2657_v37 = vadd.f32 %v2656_v35, %v2350_v21  ;;  %v2546_v38 = vadd.f32 %v2545_v36, %v2355_v25  ;;  %v2658_v39 = vpop.f32.mrb[130].mxu1  ;;  %2972 = vmatprep.subr.bf16.mxu1 %v2790_v29  ;;  %v2547_v40 = vpop.f32.mrb[131].mxu0  ;;  %2900 = vmatpush1.bf16.msra.mxu0 %v2787_v23  ;;  %v2731_v44 = vmax.f32 %v2542_v30, 0.0 }
 0x6ae   : > { %v2659_v41 = vadd.f32 %v2658_v39, %v2355_v25  ;;  %v2548_v42 = vadd.f32 %v2547_v40, %v2355_v25  ;;  %v2660_v43 = vpop.f32.mrb[131].mxu1  ;;  %2973 = vmatpush1.bf16.msra.mxu1 %v2789_v26  ;;  %v2733_v47 = vmax.f32 %v2655_v33, 0.0  ;;  %v2732_v48 = vmax.f32 %v2544_v34, 0.0  ;;  %v2375_v22 = vpop.permute.xlu0 %2374 }
 0x6af   : > { %v2735_v45 = vmax.f32 %v2546_v38, 0.0  ;;  %v2661_v46 = vadd.f32 %v2660_v43, %v2355_v25  ;;  %v2734_v52 = vmax.f32 %v2657_v37, 0.0 }
 0x6b0   : > { %v2737_v49 = vmax.f32 %v2659_v41, 0.0  ;;  %v2736_v50 = vmax.f32 %v2548_v42, 0.0 }
 0x6b1   : > { %v2791_v53 = vpack.c.bf16 %v2735_v45, %v2731_v44  ;;  %v2738_v54 = vmax.f32 %v2661_v46, 0.0 }
 0x6b2   : > { %v2793_v56 = vpack.c.bf16 %v2737_v49, %v2733_v47  ;;  %v2792_v57 = vpack.c.bf16 %v2736_v50, %v2732_v48  ;;  %v2551_v58 = vpop.f32.mrb[132].mxu0  ;;  %v2380_v48 = vpop.permute.xlu1 %2379 }
 0x6b3   : > { %v2794_v59 = vpack.c.bf16 %v2738_v54, %v2734_v52  ;;  %v2552_v60 = vadd.f32 %v2551_v58, %v2360_v51  ;;  %v2664_v61 = vpop.f32.mrb[132].mxu1  ;;  %v2553_v62 = vpop.f32.mrb[133].mxu0 }
 0x6b4   : > { %v2665_v63 = vadd.f32 %v2664_v61, %v2360_v51  ;;  %v2554_v0 = vadd.f32 %v2553_v62, %v2360_v51  ;;  %v2666_v1 = vpop.f32.mrb[133].mxu1  ;;  %v2555_v3 = vpop.f32.mrb[134].mxu0  ;;  %2901 = vmatprep.subr.bf16.mxu0 %v2792_v57 }
 0x6b5   : > { %v2667_v4 = vadd.f32 %v2666_v1, %v2360_v51  ;;  %v2556_v5 = vadd.f32 %v2555_v3, %v2365_v55  ;;  %v2668_v6 = vpop.f32.mrb[134].mxu1  ;;  %2974 = vmatprep.subr.bf16.mxu1 %v2794_v59  ;;  %v2557_v7 = vpop.f32.mrb[135].mxu0  ;;  %2902 = vmatpush1.bf16.msra.mxu0 %v2791_v53  ;;  %v2739_v11 = vmax.f32 %v2552_v60, 0.0 }
 0x6b6   : > { %v2669_v8 = vadd.f32 %v2668_v6, %v2365_v55  ;;  %v2558_v9 = vadd.f32 %v2557_v7, %v2365_v55  ;;  %v2670_v10 = vpop.f32.mrb[135].mxu1  ;;  %2975 = vmatpush1.bf16.msra.mxu1 %v2793_v56  ;;  %v2741_v14 = vmax.f32 %v2665_v63, 0.0  ;;  %v2740_v15 = vmax.f32 %v2554_v0, 0.0  ;;  %v2385_v52 = vpop.permute.xlu0 %2384 }
 0x6b7   : > { %v2743_v12 = vmax.f32 %v2556_v5, 0.0  ;;  %v2671_v13 = vadd.f32 %v2670_v10, %v2365_v55  ;;  %v2742_v19 = vmax.f32 %v2667_v4, 0.0 }
 0x6b8   : > { %v2745_v16 = vmax.f32 %v2669_v8, 0.0  ;;  %v2744_v17 = vmax.f32 %v2558_v9, 0.0 }
 0x6b9   : > { %v2795_v20 = vpack.c.bf16 %v2743_v12, %v2739_v11  ;;  %v2746_v21 = vmax.f32 %v2671_v13, 0.0 }
 0x6ba   : > { %v2797_v23 = vpack.c.bf16 %v2745_v16, %v2741_v14  ;;  %v2796_v24 = vpack.c.bf16 %v2744_v17, %v2740_v15  ;;  %v2561_v25 = vpop.f32.mrb[136].mxu0  ;;  %v2390_v15 = vpop.permute.xlu1 %2389 }
 0x6bb   : > { %v2798_v26 = vpack.c.bf16 %v2746_v21, %v2742_v19  ;;  %v2562_v27 = vadd.f32 %v2561_v25, %v2370_v18  ;;  %v2674_v28 = vpop.f32.mrb[136].mxu1  ;;  %v2563_v29 = vpop.f32.mrb[137].mxu0 }
 0x6bc   : > { %v2675_v30 = vadd.f32 %v2674_v28, %v2370_v18  ;;  %v2564_v31 = vadd.f32 %v2563_v29, %v2370_v18  ;;  %v2676_v32 = vpop.f32.mrb[137].mxu1  ;;  %v2565_v33 = vpop.f32.mrb[138].mxu0  ;;  %2903 = vmatprep.subr.bf16.mxu0 %v2796_v24 }
 0x6bd   : > { %v2677_v34 = vadd.f32 %v2676_v32, %v2370_v18  ;;  %v2566_v35 = vadd.f32 %v2565_v33, %v2375_v22  ;;  %v2678_v36 = vpop.f32.mrb[138].mxu1  ;;  %2976 = vmatprep.subr.bf16.mxu1 %v2798_v26  ;;  %v2567_v37 = vpop.f32.mrb[139].mxu0  ;;  %2904 = vmatpush1.bf16.msra.mxu0 %v2795_v20  ;;  %v2747_v41 = vmax.f32 %v2562_v27, 0.0 }
 0x6be   : > { %v2679_v38 = vadd.f32 %v2678_v36, %v2375_v22  ;;  %v2568_v39 = vadd.f32 %v2567_v37, %v2375_v22  ;;  %v2680_v40 = vpop.f32.mrb[139].mxu1  ;;  %2977 = vmatpush1.bf16.msra.mxu1 %v2797_v23  ;;  %v2749_v44 = vmax.f32 %v2675_v30, 0.0  ;;  %v2748_v45 = vmax.f32 %v2564_v31, 0.0  ;;  %v2395_v19 = vpop.permute.xlu0 %2394 }
 0x6bf   : > { %v2751_v42 = vmax.f32 %v2566_v35, 0.0  ;;  %v2681_v43 = vadd.f32 %v2680_v40, %v2375_v22  ;;  %v2750_v49 = vmax.f32 %v2677_v34, 0.0 }
 0x6c0   : > { %v2753_v46 = vmax.f32 %v2679_v38, 0.0  ;;  %v2752_v47 = vmax.f32 %v2568_v39, 0.0 }
 0x6c1   : > { %v2799_v50 = vpack.c.bf16 %v2751_v42, %v2747_v41  ;;  %v2754_v51 = vmax.f32 %v2681_v43, 0.0 }
 0x6c2   : > { %v2801_v53 = vpack.c.bf16 %v2753_v46, %v2749_v44  ;;  %v2800_v54 = vpack.c.bf16 %v2752_v47, %v2748_v45  ;;  %v2571_v55 = vpop.f32.mrb[140].mxu0  ;;  %v2400_v45 = vpop.permute.xlu1 %2399 }
 0x6c3   : > { %v2802_v56 = vpack.c.bf16 %v2754_v51, %v2750_v49  ;;  %v2572_v57 = vadd.f32 %v2571_v55, %v2380_v48  ;;  %v2684_v58 = vpop.f32.mrb[140].mxu1  ;;  %v2573_v59 = vpop.f32.mrb[141].mxu0 }
 0x6c4   : > { %v2685_v60 = vadd.f32 %v2684_v58, %v2380_v48  ;;  %v2574_v61 = vadd.f32 %v2573_v59, %v2380_v48  ;;  %v2686_v62 = vpop.f32.mrb[141].mxu1  ;;  %v2575_v63 = vpop.f32.mrb[142].mxu0  ;;  %2905 = vmatprep.subr.bf16.mxu0 %v2800_v54 }
 0x6c5   : > { %v2687_v0 = vadd.f32 %v2686_v62, %v2380_v48  ;;  %v2576_v1 = vadd.f32 %v2575_v63, %v2385_v52  ;;  %v2688_v3 = vpop.f32.mrb[142].mxu1  ;;  %2978 = vmatprep.subr.bf16.mxu1 %v2802_v56  ;;  %v2577_v4 = vpop.f32.mrb[143].mxu0  ;;  %2906 = vmatpush1.bf16.msra.mxu0 %v2799_v50  ;;  %v2755_v8 = vmax.f32 %v2572_v57, 0.0 }
 0x6c6   : > { %v2689_v5 = vadd.f32 %v2688_v3, %v2385_v52  ;;  %v2578_v6 = vadd.f32 %v2577_v4, %v2385_v52  ;;  %v2690_v7 = vpop.f32.mrb[143].mxu1  ;;  %2979 = vmatpush1.bf16.msra.mxu1 %v2801_v53  ;;  %v2757_v11 = vmax.f32 %v2685_v60, 0.0  ;;  %v2756_v12 = vmax.f32 %v2574_v61, 0.0  ;;  %v2405_v49 = vpop.permute.xlu0 %2404 }
 0x6c7   : > { %v2759_v9 = vmax.f32 %v2576_v1, 0.0  ;;  %v2691_v10 = vadd.f32 %v2690_v7, %v2385_v52  ;;  %v2758_v16 = vmax.f32 %v2687_v0, 0.0 }
 0x6c8   : > { %v2761_v13 = vmax.f32 %v2689_v5, 0.0  ;;  %v2760_v14 = vmax.f32 %v2578_v6, 0.0 }
 0x6c9   : > { %v2803_v17 = vpack.c.bf16 %v2759_v9, %v2755_v8  ;;  %v2762_v18 = vmax.f32 %v2691_v10, 0.0 }
 0x6ca   : > { %v2805_v20 = vpack.c.bf16 %v2761_v13, %v2757_v11  ;;  %v2804_v21 = vpack.c.bf16 %v2760_v14, %v2756_v12  ;;  %v2581_v22 = vpop.f32.mrb[144].mxu0  ;;  %v2410_v12 = vpop.permute.xlu1 %2409 }
 0x6cb   : > { %v2806_v23 = vpack.c.bf16 %v2762_v18, %v2758_v16  ;;  %v2582_v24 = vadd.f32 %v2581_v22, %v2390_v15  ;;  %v2694_v25 = vpop.f32.mrb[144].mxu1  ;;  %v2583_v26 = vpop.f32.mrb[145].mxu0 }
 0x6cc   : > { %v2695_v27 = vadd.f32 %v2694_v25, %v2390_v15  ;;  %v2584_v28 = vadd.f32 %v2583_v26, %v2390_v15  ;;  %v2696_v29 = vpop.f32.mrb[145].mxu1  ;;  %v2585_v30 = vpop.f32.mrb[146].mxu0  ;;  %2907 = vmatprep.subr.bf16.mxu0 %v2804_v21 }
 0x6cd   : > { %v2697_v31 = vadd.f32 %v2696_v29, %v2390_v15  ;;  %v2586_v32 = vadd.f32 %v2585_v30, %v2395_v19  ;;  %v2698_v33 = vpop.f32.mrb[146].mxu1  ;;  %2980 = vmatprep.subr.bf16.mxu1 %v2806_v23  ;;  %v2587_v34 = vpop.f32.mrb[147].mxu0  ;;  %2908 = vmatpush1.bf16.msra.mxu0 %v2803_v17  ;;  %v2763_v38 = vmax.f32 %v2582_v24, 0.0 }
 0x6ce   : > { %v2699_v35 = vadd.f32 %v2698_v33, %v2395_v19  ;;  %v2588_v36 = vadd.f32 %v2587_v34, %v2395_v19  ;;  %v2700_v37 = vpop.f32.mrb[147].mxu1  ;;  %2981 = vmatpush1.bf16.msra.mxu1 %v2805_v20  ;;  %v2765_v41 = vmax.f32 %v2695_v27, 0.0  ;;  %v2764_v42 = vmax.f32 %v2584_v28, 0.0  ;;  %v2415_v16 = vpop.permute.xlu0 %2414 }
 0x6cf   : > { %v2767_v39 = vmax.f32 %v2586_v32, 0.0  ;;  %v2701_v40 = vadd.f32 %v2700_v37, %v2395_v19  ;;  %v2766_v46 = vmax.f32 %v2697_v31, 0.0 }
 0x6d0   : > { %v2769_v43 = vmax.f32 %v2699_v35, 0.0  ;;  %v2768_v44 = vmax.f32 %v2588_v36, 0.0 }
 0x6d1   : > { %v2807_v47 = vpack.c.bf16 %v2767_v39, %v2763_v38  ;;  %v2770_v48 = vmax.f32 %v2701_v40, 0.0 }
 0x6d2   : > { %v2809_v50 = vpack.c.bf16 %v2769_v43, %v2765_v41  ;;  %v2808_v51 = vpack.c.bf16 %v2768_v44, %v2764_v42  ;;  %v2591_v52 = vpop.f32.mrb[148].mxu0 }
 0x6d3   : > { %v2810_v53 = vpack.c.bf16 %v2770_v48, %v2766_v46  ;;  %v2592_v54 = vadd.f32 %v2591_v52, %v2400_v45  ;;  %v2704_v55 = vpop.f32.mrb[148].mxu1  ;;  %v2593_v56 = vpop.f32.mrb[149].mxu0  ;;  %v3829_v48 = vld [vmem:[%s4483_s2 + $0x270] ss:$8 sps:$4 sm:$0xff]  }
 0x6d4   : > { %v2705_v57 = vadd.f32 %v2704_v55, %v2400_v45  ;;  %v2594_v58 = vadd.f32 %v2593_v56, %v2400_v45  ;;  %v2706_v59 = vpop.f32.mrb[149].mxu1  ;;  %v2595_v60 = vpop.f32.mrb[150].mxu0  ;;  %2909 = vmatprep.subr.bf16.mxu0 %v2808_v51  ;;  %v3832_v51 = vld [vmem:[%s4483_s2 + $0x2a0] ss:$8 sps:$4 sm:$0xff]  }
 0x6d5   : > { %v2707_v61 = vadd.f32 %v2706_v59, %v2400_v45  ;;  %v2596_v62 = vadd.f32 %v2595_v60, %v2405_v49  ;;  %v2708_v63 = vpop.f32.mrb[150].mxu1  ;;  %2982 = vmatprep.subr.bf16.mxu1 %v2810_v53  ;;  %v2597_v0 = vpop.f32.mrb[151].mxu0  ;;  %2910 = vmatpush1.bf16.msra.mxu0 %v2807_v47  ;;  %v2771_v5 = vmax.f32 %v2592_v54, 0.0 }
 0x6d6   : > { %v2709_v1 = vadd.f32 %v2708_v63, %v2405_v49  ;;  %v2598_v3 = vadd.f32 %v2597_v0, %v2405_v49  ;;  %v2710_v4 = vpop.f32.mrb[151].mxu1  ;;  %2983 = vmatpush1.bf16.msra.mxu1 %v2809_v50  ;;  %v2773_v8 = vmax.f32 %v2705_v57, 0.0  ;;  %v2772_v9 = vmax.f32 %v2594_v58, 0.0  ;;  %v3831_v50 = vld [vmem:[%s4483_s2 + $0x290] ss:$8 sps:$4 sm:$0xff]   ;;  %v2838_v52 = vpop.permute.xlu1 %2837 }
 0x6d7   : > { %v2775_v6 = vmax.f32 %v2596_v62, 0.0  ;;  %v2711_v7 = vadd.f32 %v2710_v4, %v2405_v49  ;;  %v2774_v13 = vmax.f32 %v2707_v61, 0.0  ;;  %v3830_v49 = vld [vmem:[%s4483_s2 + $0x280] ss:$8 sps:$4 sm:$0xff]   ;;  %v2843_v53 = vpop.permute.xlu0 %2842 }
 0x6d8   : > { %v2777_v10 = vmax.f32 %v2709_v1, 0.0  ;;  %v2776_v11 = vmax.f32 %v2598_v3, 0.0 }
 0x6d9   : > { %v2811_v14 = vpack.c.bf16 %v2775_v6, %v2771_v5  ;;  %v2778_v15 = vmax.f32 %v2711_v7, 0.0 }
 0x6da   : > { %v2813_v17 = vpack.c.bf16 %v2777_v10, %v2773_v8  ;;  %v2812_v18 = vpack.c.bf16 %v2776_v11, %v2772_v9  ;;  %v2601_v19 = vpop.f32.mrb[152].mxu0 }
 0x6db   : > { %v2814_v20 = vpack.c.bf16 %v2778_v15, %v2774_v13  ;;  %v2602_v21 = vadd.f32 %v2601_v19, %v2410_v12  ;;  %v2714_v22 = vpop.f32.mrb[152].mxu1  ;;  %v2603_v23 = vpop.f32.mrb[153].mxu0 }
 0x6dc   : > { %v2715_v24 = vadd.f32 %v2714_v22, %v2410_v12  ;;  %v2604_v25 = vadd.f32 %v2603_v23, %v2410_v12  ;;  %v2716_v26 = vpop.f32.mrb[153].mxu1  ;;  %v2605_v27 = vpop.f32.mrb[154].mxu0  ;;  %2911 = vmatprep.subr.bf16.mxu0 %v2812_v18 }
 0x6dd   : > { %v2717_v28 = vadd.f32 %v2716_v26, %v2410_v12  ;;  %v2606_v29 = vadd.f32 %v2605_v27, %v2415_v16  ;;  %v2718_v30 = vpop.f32.mrb[154].mxu1  ;;  %2984 = vmatprep.subr.bf16.mxu1 %v2814_v20  ;;  %v2607_v31 = vpop.f32.mrb[155].mxu0  ;;  %2912 = vmatpush1.bf16.msra.mxu0 %v2811_v14  ;;  %v2779_v35 = vmax.f32 %v2602_v21, 0.0 }
 0x6de   : > { %v2719_v32 = vadd.f32 %v2718_v30, %v2415_v16  ;;  %v2608_v33 = vadd.f32 %v2607_v31, %v2415_v16  ;;  %v2720_v34 = vpop.f32.mrb[155].mxu1  ;;  %2985 = vmatpush1.bf16.msra.mxu1 %v2813_v17  ;;  %v2781_v38 = vmax.f32 %v2715_v24, 0.0  ;;  %v2780_v39 = vmax.f32 %v2604_v25, 0.0  ;;  %v2848_v13 = vpop.permute.xlu1 %2847 }
 0x6df   : > { %v2783_v36 = vmax.f32 %v2606_v29, 0.0  ;;  %v2721_v37 = vadd.f32 %v2720_v34, %v2415_v16  ;;  %v2782_v42 = vmax.f32 %v2717_v28, 0.0  ;;  %v2853_v17 = vpop.permute.xlu0 %2852 }
 0x6e0   : > { %v2785_v40 = vmax.f32 %v2719_v32, 0.0  ;;  %v2784_v41 = vmax.f32 %v2608_v33, 0.0 }
 0x6e1   : > { %v2815_v43 = vpack.c.bf16 %v2783_v36, %v2779_v35  ;;  %v2786_v44 = vmax.f32 %v2721_v37, 0.0 }
 0x6e2   : > { %v2817_v45 = vpack.c.bf16 %v2785_v40, %v2781_v38  ;;  %v2816_v46 = vpack.c.bf16 %v2784_v41, %v2780_v39 }
 0x6e3   : > { %v2818_v47 = vpack.c.bf16 %v2786_v44, %v2782_v42 }
 0x6e4   : > { %2913 = vmatprep.subr.bf16.mxu0 %v2816_v46 }
 0x6e5   : > { %2986 = vmatprep.subr.bf16.mxu1 %v2818_v47  ;;  %2914 = vmatpush1.bf16.msra.mxu0 %v2815_v43  ;;  %v2858_v43 = vpop.permute.xlu1 %2857  ;;  %v2863_v47 = vpop.permute.xlu0 %2862 }
 0x6e6   : > { %2987 = vmatpush1.bf16.msra.mxu1 %v2817_v45 }
 0x6e8   : > { %2932 = vmatmul.mubr.bf16.vlgmr.msra.gmra.mrb[156].mxu0 %v3829_v48 }
 0x6e9   : > { %3005 = vmatmul.mubr.bf16.vlgmr.msra.gmra.mrb[156].mxu1 %v3829_v48  ;;  %2941 = vmatprep.mubr.bf16.mxu0 %v3844_v2 }
 0x6ea   : > { %3014 = vmatprep.mubr.bf16.mxu1 %v3844_v2 }
 0x6f0   : > { %2942 = vmatmul.mubr.bf16.gmra.mrb[160].mxu0 %v3830_v49 }
 0x6f1   : > { %3015 = vmatmul.mubr.bf16.gmra.mrb[160].mxu1 %v3830_v49  ;;  %2951 = vmatprep.mubr.bf16.mxu0 %v3844_v2 }
 0x6f2   : > { %3024 = vmatprep.mubr.bf16.mxu1 %v3844_v2 }
 0x6f8   : > { %2952 = vmatmul.mubr.bf16.gmra.mrb[164].mxu0 %v3831_v50 }
 0x6f9   : > { %3025 = vmatmul.mubr.bf16.gmra.mrb[164].mxu1 %v3831_v50  ;;  %2961 = vmatprep.mubr.bf16.mxu0 %v3844_v2 }
 0x6fa   : > { %3034 = vmatprep.mubr.bf16.mxu1 %v3844_v2 }
 0x700   : > { %2962 = vmatmul.mubr.bf16.gmra.mrb[168].mxu0 %v3832_v51 }
 0x701   : > { %3035 = vmatmul.mubr.bf16.gmra.mrb[168].mxu1 %v3832_v51  ;;  %3169 = vmatprep.mubr.bf16.mxu0 %v3844_v2 }
 0x702   : > { %3222 = vmatprep.mubr.bf16.mxu1 %v3844_v2 }
 0x7bb   : > { %v2933_v54 = vpop.f32.mrb[156].mxu0 }
 0x7bc   : > { %v2934_v55 = vadd.f32 %v2933_v54, %v2838_v52  ;;  %v3006_v56 = vpop.f32.mrb[156].mxu1  ;;  %v2935_v57 = vpop.f32.mrb[157].mxu0 }
 0x7bd   : > { %v3007_v58 = vadd.f32 %v3006_v56, %v2838_v52  ;;  %v2936_v59 = vadd.f32 %v2935_v57, %v2838_v52  ;;  %v3008_v60 = vpop.f32.mrb[157].mxu1  ;;  %v2937_v61 = vpop.f32.mrb[158].mxu0 }
 0x7be   : > { %v3009_v62 = vadd.f32 %v3008_v60, %v2838_v52  ;;  %v2938_v63 = vadd.f32 %v2937_v61, %v2843_v53  ;;  %v3010_v0 = vpop.f32.mrb[158].mxu1  ;;  %v2939_v1 = vpop.f32.mrb[159].mxu0  ;;  %v3045_v6 = vmax.f32 %v2934_v55, 0.0 }
 0x7bf   : > { %v3011_v3 = vadd.f32 %v3010_v0, %v2843_v53  ;;  %v2940_v4 = vadd.f32 %v2939_v1, %v2843_v53  ;;  %v3012_v5 = vpop.f32.mrb[159].mxu1  ;;  %v3047_v9 = vmax.f32 %v3007_v58, 0.0  ;;  %v3046_v10 = vmax.f32 %v2936_v59, 0.0 }
 0x7c0   : > { %v3049_v7 = vmax.f32 %v2938_v63, 0.0  ;;  %v3013_v8 = vadd.f32 %v3012_v5, %v2843_v53  ;;  %v3048_v14 = vmax.f32 %v3009_v62, 0.0 }
 0x7c1   : > { %v3051_v11 = vmax.f32 %v3011_v3, 0.0  ;;  %v3050_v12 = vmax.f32 %v2940_v4, 0.0 }
 0x7c2   : > { %v3077_v15 = vpack.c.bf16 %v3049_v7, %v3045_v6  ;;  %v3052_v16 = vmax.f32 %v3013_v8, 0.0 }
 0x7c3   : > { %v3079_v18 = vpack.c.bf16 %v3051_v11, %v3047_v9  ;;  %v3078_v19 = vpack.c.bf16 %v3050_v12, %v3046_v10  ;;  %v2943_v20 = vpop.f32.mrb[160].mxu0  ;;  %v2868_v10 = vpop.permute.xlu1 %2867 }
 0x7c4   : > { %v3080_v21 = vpack.c.bf16 %v3052_v16, %v3048_v14  ;;  %v2944_v22 = vadd.f32 %v2943_v20, %v2848_v13  ;;  %v3016_v23 = vpop.f32.mrb[160].mxu1  ;;  %v2945_v24 = vpop.f32.mrb[161].mxu0 }
 0x7c5   : > { %v3017_v25 = vadd.f32 %v3016_v23, %v2848_v13  ;;  %v2946_v26 = vadd.f32 %v2945_v24, %v2848_v13  ;;  %v3018_v27 = vpop.f32.mrb[161].mxu1  ;;  %v2947_v28 = vpop.f32.mrb[162].mxu0  ;;  %3137 = vmatprep.subr.bf16.mxu0 %v3078_v19 }
 0x7c6   : > { %v3019_v29 = vadd.f32 %v3018_v27, %v2848_v13  ;;  %v2948_v30 = vadd.f32 %v2947_v28, %v2853_v17  ;;  %v3020_v31 = vpop.f32.mrb[162].mxu1  ;;  %3190 = vmatprep.subr.bf16.mxu1 %v3080_v21  ;;  %v2949_v32 = vpop.f32.mrb[163].mxu0  ;;  %3138 = vmatpush1.bf16.msra.mxu0 %v3077_v15  ;;  %v3053_v36 = vmax.f32 %v2944_v22, 0.0 }
 0x7c7   : > { %v3021_v33 = vadd.f32 %v3020_v31, %v2853_v17  ;;  %v2950_v34 = vadd.f32 %v2949_v32, %v2853_v17  ;;  %v3022_v35 = vpop.f32.mrb[163].mxu1  ;;  %3191 = vmatpush1.bf16.msra.mxu1 %v3079_v18  ;;  %v3055_v39 = vmax.f32 %v3017_v25, 0.0  ;;  %v3054_v40 = vmax.f32 %v2946_v26, 0.0  ;;  %v2873_v14 = vpop.permute.xlu0 %2872 }
 0x7c8   : > { %v3057_v37 = vmax.f32 %v2948_v30, 0.0  ;;  %v3023_v38 = vadd.f32 %v3022_v35, %v2853_v17  ;;  %v3056_v44 = vmax.f32 %v3019_v29, 0.0 }
 0x7c9   : > { %v3059_v41 = vmax.f32 %v3021_v33, 0.0  ;;  %v3058_v42 = vmax.f32 %v2950_v34, 0.0 }
 0x7ca   : > { %v3081_v45 = vpack.c.bf16 %v3057_v37, %v3053_v36  ;;  %v3060_v46 = vmax.f32 %v3023_v38, 0.0 }
 0x7cb   : > { %v3083_v48 = vpack.c.bf16 %v3059_v41, %v3055_v39  ;;  %v3082_v49 = vpack.c.bf16 %v3058_v42, %v3054_v40  ;;  %v2953_v50 = vpop.f32.mrb[164].mxu0 }
 0x7cc   : > { %v3084_v51 = vpack.c.bf16 %v3060_v46, %v3056_v44  ;;  %v2954_v52 = vadd.f32 %v2953_v50, %v2858_v43  ;;  %v3026_v53 = vpop.f32.mrb[164].mxu1  ;;  %v2955_v54 = vpop.f32.mrb[165].mxu0  ;;  %v3833_v46 = vld [vmem:[%s4483_s2 + $0x2b0] ss:$8 sps:$4 sm:$0xff]  }
 0x7cd   : > { %v3027_v55 = vadd.f32 %v3026_v53, %v2858_v43  ;;  %v2956_v56 = vadd.f32 %v2955_v54, %v2858_v43  ;;  %v3028_v57 = vpop.f32.mrb[165].mxu1  ;;  %v2957_v58 = vpop.f32.mrb[166].mxu0  ;;  %3139 = vmatprep.subr.bf16.mxu0 %v3082_v49 }
 0x7ce   : > { %v3029_v59 = vadd.f32 %v3028_v57, %v2858_v43  ;;  %v2958_v60 = vadd.f32 %v2957_v58, %v2863_v47  ;;  %v3030_v61 = vpop.f32.mrb[166].mxu1  ;;  %3192 = vmatprep.subr.bf16.mxu1 %v3084_v51  ;;  %v2959_v62 = vpop.f32.mrb[167].mxu0  ;;  %3140 = vmatpush1.bf16.msra.mxu0 %v3081_v45  ;;  %v3061_v3 = vmax.f32 %v2954_v52, 0.0 }
 0x7cf   : > { %v3031_v63 = vadd.f32 %v3030_v61, %v2863_v47  ;;  %v2960_v0 = vadd.f32 %v2959_v62, %v2863_v47  ;;  %v3032_v1 = vpop.f32.mrb[167].mxu1  ;;  %3193 = vmatpush1.bf16.msra.mxu1 %v3083_v48  ;;  %v3063_v6 = vmax.f32 %v3027_v55, 0.0  ;;  %v3062_v7 = vmax.f32 %v2956_v56, 0.0  ;;  %v3104_v48 = vpop.permute.xlu1 %3103 }
 0x7d0   : > { %v3065_v4 = vmax.f32 %v2958_v60, 0.0  ;;  %v3033_v5 = vadd.f32 %v3032_v1, %v2863_v47  ;;  %v3064_v11 = vmax.f32 %v3029_v59, 0.0  ;;  %v3834_v47 = vld [vmem:[%s4483_s2 + $0x2c0] ss:$8 sps:$4 sm:$0xff]   ;;  %v3109_v49 = vpop.permute.xlu0 %3108 }
 0x7d1   : > { %v3067_v8 = vmax.f32 %v3031_v63, 0.0  ;;  %v3066_v9 = vmax.f32 %v2960_v0, 0.0 }
 0x7d2   : > { %v3085_v12 = vpack.c.bf16 %v3065_v4, %v3061_v3  ;;  %v3068_v13 = vmax.f32 %v3033_v5, 0.0 }
 0x7d3   : > { %v3087_v15 = vpack.c.bf16 %v3067_v8, %v3063_v6  ;;  %v3086_v16 = vpack.c.bf16 %v3066_v9, %v3062_v7  ;;  %v2963_v17 = vpop.f32.mrb[168].mxu0  ;;  %v3114_v9 = vpop.permute.xlu1 %3113 }
 0x7d4   : > { %v3088_v18 = vpack.c.bf16 %v3068_v13, %v3064_v11  ;;  %v2964_v19 = vadd.f32 %v2963_v17, %v2868_v10  ;;  %v3036_v20 = vpop.f32.mrb[168].mxu1  ;;  %v2965_v21 = vpop.f32.mrb[169].mxu0 }
 0x7d5   : > { %v3037_v22 = vadd.f32 %v3036_v20, %v2868_v10  ;;  %v2966_v23 = vadd.f32 %v2965_v21, %v2868_v10  ;;  %v3038_v24 = vpop.f32.mrb[169].mxu1  ;;  %v2967_v25 = vpop.f32.mrb[170].mxu0  ;;  %3141 = vmatprep.subr.bf16.mxu0 %v3086_v16 }
 0x7d6   : > { %v3039_v26 = vadd.f32 %v3038_v24, %v2868_v10  ;;  %v2968_v27 = vadd.f32 %v2967_v25, %v2873_v14  ;;  %v3040_v28 = vpop.f32.mrb[170].mxu1  ;;  %3194 = vmatprep.subr.bf16.mxu1 %v3088_v18  ;;  %v2969_v29 = vpop.f32.mrb[171].mxu0  ;;  %3142 = vmatpush1.bf16.msra.mxu0 %v3085_v12  ;;  %v3069_v33 = vmax.f32 %v2964_v19, 0.0 }
 0x7d7   : > { %v3041_v30 = vadd.f32 %v3040_v28, %v2873_v14  ;;  %v2970_v31 = vadd.f32 %v2969_v29, %v2873_v14  ;;  %v3042_v32 = vpop.f32.mrb[171].mxu1  ;;  %3195 = vmatpush1.bf16.msra.mxu1 %v3087_v15  ;;  %v3071_v36 = vmax.f32 %v3037_v22, 0.0  ;;  %v3070_v37 = vmax.f32 %v2966_v23, 0.0  ;;  %v3119_v13 = vpop.permute.xlu0 %3118 }
 0x7d8   : > { %v3073_v34 = vmax.f32 %v2968_v27, 0.0  ;;  %v3043_v35 = vadd.f32 %v3042_v32, %v2873_v14  ;;  %v3072_v40 = vmax.f32 %v3039_v26, 0.0 }
 0x7d9   : > { %v3075_v38 = vmax.f32 %v3041_v30, 0.0  ;;  %v3074_v39 = vmax.f32 %v2970_v31, 0.0 }
 0x7da   : > { %v3089_v41 = vpack.c.bf16 %v3073_v34, %v3069_v33  ;;  %v3076_v42 = vmax.f32 %v3043_v35, 0.0 }
 0x7db   : > { %v3091_v43 = vpack.c.bf16 %v3075_v38, %v3071_v36  ;;  %v3090_v44 = vpack.c.bf16 %v3074_v39, %v3070_v37 }
 0x7dc   : > { %v3092_v45 = vpack.c.bf16 %v3076_v42, %v3072_v40 }
 0x7dd   : > { %3143 = vmatprep.subr.bf16.mxu0 %v3090_v44 }
 0x7de   : > { %3196 = vmatprep.subr.bf16.mxu1 %v3092_v45  ;;  %3144 = vmatpush1.bf16.msra.mxu0 %v3089_v41  ;;  %v3835_v45 = vld [vmem:[%s4483_s2 + $0x2d0] ss:$8 sps:$4 sm:$0xff]  }
 0x7df   : > { %3197 = vmatpush1.bf16.msra.mxu1 %v3091_v43 }
 0x7e1   : > { %3745 = vmatmul.mubr.msk.bf16.vlgmr.msra.gmra.mrb[172].mxu0 %vm1060_vm4, %v3833_v46 }
 0x7e2   : > { %3747 = vmatmul.mubr.msk.bf16.vlgmr.msra.gmra.mrb[172].mxu1 %vm1060_vm4, %v3833_v46  ;;  %3179 = vmatprep.mubr.bf16.mxu0 %v3844_v2  ;;  %v3274_v46 = vpop.permute.xlu1 %3273 }
 0x7e3   : > { %3232 = vmatprep.mubr.bf16.mxu1 %v3844_v2 }
 0x7e9   : > { %3746 = vmatmul.mubr.msk.bf16.gmra.mrb[176].mxu0 %vm1060_vm4, %v3834_v47 }
 0x7ea   : > { %3748 = vmatmul.mubr.msk.bf16.gmra.mrb[176].mxu1 %vm1060_vm4, %v3834_v47  ;;  %3321 = vmatprep.mubr.bf16.mxu0 %v3844_v2  ;;  %v3279_v47 = vpop.permute.xlu0 %3278 }
 0x7eb   : > { %3364 = vmatprep.mubr.bf16.mxu1 %v3844_v2 }
 0x8b4   : > { %v3171_v50 = vpop.f32.mrb[172].mxu0 }
 0x8b5   : > { %v3172_v51 = vadd.f32 %v3171_v50, %v3104_v48  ;;  %v3224_v52 = vpop.f32.mrb[172].mxu1  ;;  %v3173_v53 = vpop.f32.mrb[173].mxu0 }
 0x8b6   : > { %v3225_v54 = vadd.f32 %v3224_v52, %v3104_v48  ;;  %v3174_v55 = vadd.f32 %v3173_v53, %v3104_v48  ;;  %v3226_v56 = vpop.f32.mrb[173].mxu1  ;;  %v3175_v57 = vpop.f32.mrb[174].mxu0 }
 0x8b7   : > { %v3227_v58 = vadd.f32 %v3226_v56, %v3104_v48  ;;  %v3176_v59 = vadd.f32 %v3175_v57, %v3109_v49  ;;  %v3228_v60 = vpop.f32.mrb[174].mxu1  ;;  %v3177_v61 = vpop.f32.mrb[175].mxu0  ;;  %v3243_v1 = vmax.f32 %v3172_v51, 0.0 }
 0x8b8   : > { %v3229_v62 = vadd.f32 %v3228_v60, %v3109_v49  ;;  %v3178_v63 = vadd.f32 %v3177_v61, %v3109_v49  ;;  %v3230_v0 = vpop.f32.mrb[175].mxu1  ;;  %v3245_v5 = vmax.f32 %v3225_v54, 0.0  ;;  %v3244_v6 = vmax.f32 %v3174_v55, 0.0 }
 0x8b9   : > { %v3247_v3 = vmax.f32 %v3176_v59, 0.0  ;;  %v3231_v4 = vadd.f32 %v3230_v0, %v3109_v49  ;;  %v3246_v10 = vmax.f32 %v3227_v58, 0.0 }
 0x8ba   : > { %v3249_v7 = vmax.f32 %v3229_v62, 0.0  ;;  %v3248_v8 = vmax.f32 %v3178_v63, 0.0 }
 0x8bb   : > { %v3259_v11 = vpack.c.bf16 %v3247_v3, %v3243_v1  ;;  %v3250_v12 = vmax.f32 %v3231_v4, 0.0 }
 0x8bc   : > { %v3261_v14 = vpack.c.bf16 %v3249_v7, %v3245_v5  ;;  %v3260_v15 = vpack.c.bf16 %v3248_v8, %v3244_v6  ;;  %v3181_v16 = vpop.f32.mrb[176].mxu0 }
 0x8bd   : > { %v3262_v17 = vpack.c.bf16 %v3250_v12, %v3246_v10  ;;  %v3182_v18 = vadd.f32 %v3181_v16, %v3114_v9  ;;  %v3234_v19 = vpop.f32.mrb[176].mxu1  ;;  %v3183_v20 = vpop.f32.mrb[177].mxu0 }
 0x8be   : > { %v3235_v21 = vadd.f32 %v3234_v19, %v3114_v9  ;;  %v3184_v22 = vadd.f32 %v3183_v20, %v3114_v9  ;;  %v3236_v23 = vpop.f32.mrb[177].mxu1  ;;  %v3185_v24 = vpop.f32.mrb[178].mxu0  ;;  %3289 = vmatprep.subr.bf16.mxu0 %v3260_v15 }
 0x8bf   : > { %v3237_v25 = vadd.f32 %v3236_v23, %v3114_v9  ;;  %v3186_v26 = vadd.f32 %v3185_v24, %v3119_v13  ;;  %v3238_v27 = vpop.f32.mrb[178].mxu1  ;;  %3332 = vmatprep.subr.bf16.mxu1 %v3262_v17  ;;  %v3187_v28 = vpop.f32.mrb[179].mxu0  ;;  %3290 = vmatpush1.bf16.msra.mxu0 %v3259_v11  ;;  %v3251_v32 = vmax.f32 %v3182_v18, 0.0 }
 0x8c0   : > { %v3239_v29 = vadd.f32 %v3238_v27, %v3119_v13  ;;  %v3188_v30 = vadd.f32 %v3187_v28, %v3119_v13  ;;  %v3240_v31 = vpop.f32.mrb[179].mxu1  ;;  %3333 = vmatpush1.bf16.msra.mxu1 %v3261_v14  ;;  %v3253_v35 = vmax.f32 %v3235_v21, 0.0  ;;  %v3252_v36 = vmax.f32 %v3184_v22, 0.0  ;;  %v3392_v14 = vpop.permute.xlu1 %3391 }
 0x8c1   : > { %v3255_v33 = vmax.f32 %v3186_v26, 0.0  ;;  %v3241_v34 = vadd.f32 %v3240_v31, %v3119_v13  ;;  %v3254_v39 = vmax.f32 %v3237_v25, 0.0  ;;  %v3387_v13 = vld [vmem:[%s4483_s2 + $0x2e0] sm:$0xf] }
 0x8c2   : > { %v3257_v37 = vmax.f32 %v3239_v29, 0.0  ;;  %v3256_v38 = vmax.f32 %v3188_v30, 0.0 }
 0x8c3   : > { %v3263_v40 = vpack.c.bf16 %v3255_v33, %v3251_v32  ;;  %v3258_v41 = vmax.f32 %v3241_v34, 0.0 }
 0x8c4   : > { %v3265_v42 = vpack.c.bf16 %v3257_v37, %v3253_v35  ;;  %v3264_v43 = vpack.c.bf16 %v3256_v38, %v3252_v36  ;;  %v3487_v36 = vld [vmem:[%s4483_s2 + $0x2e8] sm:$0xf]  ;;  %v3492_v37 = vpop.permute.xlu0 %3491 }
 0x8c5   : > { %v3266_v44 = vpack.c.bf16 %v3258_v41, %v3254_v39 }
 0x8c6   : > { %3291 = vmatprep.subr.bf16.mxu0 %v3264_v43 }
 0x8c7   : > { %3334 = vmatprep.subr.bf16.mxu1 %v3266_v44  ;;  %3292 = vmatpush1.bf16.msra.mxu0 %v3263_v40 }
 0x8c8   : > { %3335 = vmatpush1.bf16.msra.mxu1 %v3265_v42 }
 0x8ca   : > { %3750 = vmatmul.mubr.msk.bf16.vlgmr.msra.gmra.mrb[180].mxu0 %vm701_vm3, %v3835_v45 }
 0x8cb   : > { %3751 = vmatmul.mubr.msk.bf16.vlgmr.msra.gmra.mrb[180].mxu1 %vm701_vm3, %v3835_v45  ;;  %3429 = vmatprep.mubr.bf16.mxu0 %v3844_v2 }
 0x8cc   : > { %3470 = vmatprep.mubr.bf16.mxu1 %v3844_v2 }
 0x99d   : > { %v3323_v48 = vpop.f32.mrb[180].mxu0 }
 0x99e   : > { %v3324_v49 = vadd.f32 %v3323_v48, %v3274_v46  ;;  %v3366_v50 = vpop.f32.mrb[180].mxu1  ;;  %v3325_v51 = vpop.f32.mrb[181].mxu0 }
 0x99f   : > { %v3367_v52 = vadd.f32 %v3366_v50, %v3274_v46  ;;  %v3326_v53 = vadd.f32 %v3325_v51, %v3274_v46  ;;  %v3368_v54 = vpop.f32.mrb[181].mxu1  ;;  %v3327_v55 = vpop.f32.mrb[182].mxu0 }
 0x9a0   : > { %v3369_v56 = vadd.f32 %v3368_v54, %v3274_v46  ;;  %v3328_v57 = vadd.f32 %v3327_v55, %v3279_v47  ;;  %v3370_v58 = vpop.f32.mrb[182].mxu1  ;;  %v3329_v59 = vpop.f32.mrb[183].mxu0  ;;  %v3375_v63 = vmax.f32 %v3324_v49, 0.0 }
 0x9a1   : > { %v3371_v60 = vadd.f32 %v3370_v58, %v3279_v47  ;;  %v3330_v61 = vadd.f32 %v3329_v59, %v3279_v47  ;;  %v3372_v62 = vpop.f32.mrb[183].mxu1  ;;  %v3377_v3 = vmax.f32 %v3367_v52, 0.0  ;;  %v3376_v4 = vmax.f32 %v3326_v53, 0.0 }
 0x9a2   : > { %v3379_v0 = vmax.f32 %v3328_v57, 0.0  ;;  %v3373_v1 = vadd.f32 %v3372_v62, %v3279_v47  ;;  %v3378_v7 = vmax.f32 %v3369_v56, 0.0 }
 0x9a3   : > { %v3381_v5 = vmax.f32 %v3371_v60, 0.0  ;;  %v3380_v6 = vmax.f32 %v3330_v61, 0.0 }
 0x9a4   : > { %v3383_v8 = vpack.c.bf16 %v3379_v0, %v3375_v63  ;;  %v3382_v9 = vmax.f32 %v3373_v1, 0.0 }
 0x9a5   : > { %v3385_v10 = vpack.c.bf16 %v3381_v5, %v3377_v3  ;;  %v3384_v11 = vpack.c.bf16 %v3380_v6, %v3376_v4 }
 0x9a6   : > { %v3386_v12 = vpack.c.bf16 %v3382_v9, %v3378_v7 }
 0x9a7   : > { %3397 = vmatprep.subr.bf16.mxu0 %v3384_v11 }
 0x9a8   : > { %3438 = vmatprep.subr.bf16.mxu1 %v3386_v12  ;;  %3398 = vmatpush1.bf16.msra.mxu0 %v3383_v8 }
 0x9a9   : > { %3439 = vmatpush1.bf16.msra.mxu1 %v3385_v10 }
 0x9ab   : > { %3752 = vmatmul.mubr.msk.bf16.vlgmr.msra.gmra.mrb[184].mxu0 %vm488_vm2, %v3387_v13 }
 0x9ac   : > { %3753 = vmatmul.mubr.msk.bf16.vlgmr.msra.gmra.mrb[184].mxu1 %vm488_vm2, %v3387_v13  ;;  %3541 = vmatprep.mubr.bf16.mxu0 %v3844_v2 }
 0x9ad   : > { %3582 = vmatprep.mubr.bf16.mxu1 %v3844_v2 }
 0xa7e   : > { %v3431_v15 = vpop.f32.mrb[184].mxu0 }
 0xa7f   : > { %v3432_v16 = vadd.f32 %v3431_v15, %v3392_v14  ;;  %v3472_v17 = vpop.f32.mrb[184].mxu1  ;;  %v3433_v18 = vpop.f32.mrb[185].mxu0 }
 0xa80   : > { %v3473_v19 = vadd.f32 %v3472_v17, %v3392_v14  ;;  %v3434_v20 = vadd.f32 %v3433_v18, %v3392_v14  ;;  %v3474_v21 = vpop.f32.mrb[185].mxu1  ;;  %v3435_v22 = vpop.f32.mrb[186].mxu0 }
 0xa81   : > { %v3479_v23 = vmax.f32 %v3432_v16, 0.0  ;;  %v3475_v24 = vadd.f32 %v3474_v21, %v3392_v14  ;;  %v3476_v25 = vpop.f32.mrb[186].mxu1  ;;  %v3436_v26 = vpop.f32.mrb[187].mxu0 }
 0xa82   : > { %v3481_v27 = vmax.f32 %v3473_v19, 0.0  ;;  %v3480_v28 = vmax.f32 %v3434_v20, 0.0  ;;  %v3477_v29 = vpop.f32.mrb[187].mxu1 }
 0xa83   : > { %v3483_v30 = vpack.c.bf16 %v3479_v23, %v3479_v23  ;;  %v3482_v31 = vmax.f32 %v3475_v24, 0.0 }
 0xa84   : > { %v3485_v2 = vpack.c.bf16 %v3481_v27, %v3481_v27  ;;  %v3484_v32 = vpack.c.bf16 %v3480_v28, %v3480_v28 }
 0xa85   : > { %v3486_v33 = vpack.c.bf16 %v3482_v31, %v3482_v31  ;;  %v3498_v34 = vsel %vm339_vm0, %v3483_v30, 0 }
 0xa86   : > { %3754 = vmatprep.subr.msk.bf16.mxu0 %vm339_vm0, %v3484_v32  ;;  %v3504_v35 = vsel %vm339_vm0, %v3485_v2, 0 }
 0xa87   : > { %3756 = vmatprep.subr.msk.bf16.mxu1 %vm339_vm0, %v3486_v33  ;;  %3510 = vmatpush1.bf16.msra.mxu0 %v3498_v34 }
 0xa88   : > { %3551 = vmatpush1.bf16.msra.mxu1 %v3504_v35 }
 0xa8a   : > { %3755 = vmatmul.mubr.msk.bf16.vlgmr.msra.gmra.mrb[188].mxu0 %vm335_vm1, %v3487_v36 }
 0xa8b   : > { %3757 = vmatmul.mubr.msk.bf16.vlgmr.msra.gmra.mrb[188].mxu1 %vm335_vm1, %v3487_v36 }
 0xb5d   : > { %v3543_v38 = vpop.f32.mrb[188].mxu0 }
 0xb5e   : > { %v3544_v39 = vadd.f32 %v3543_v38, %v3492_v37  ;;  %v3584_v40 = vpop.f32.mrb[188].mxu1  ;;  %v3545_v41 = vpop.f32.mrb[189].mxu0 }
 0xb5f   : > { %v3546_v42 = vadd.f32 %v3545_v41, %v3492_v37  ;;  %v3586_v43 = vpop.f32.mrb[189].mxu1  ;;  %v3547_v44 = vpop.f32.mrb[190].mxu0  ;;  %v3585_v45 = vadd.f32 %v3584_v40, %v3492_v37 }
 0xb60   : > { %3591 = vst [vmem:[%s199_s14] sm:$0xff] %v3544_v39  ;;  %v3548_v46 = vpop.f32.mrb[191].mxu0  ;;  %v3588_v47 = vpop.f32.mrb[190].mxu1  ;;  %v3587_v48 = vadd.f32 %v3586_v43, %v3492_v37 }
 0xb61   : > { %3592 = vst [vmem:[%s199_s14 + $0x8] sm:$0xff] %v3546_v42  ;;  %v3589_v49 = vpop.f32.mrb[191].mxu1  ;;  %3593 = vst [vmem:[%s199_s14 + $0x10] sm:$0xff] %v3585_v45 }
 0xb62   : > { %3594 = vst [vmem:[%s199_s14 + $0x18] sm:$0xff] %v3587_v48 }
 0xb63 PF: > { %s14_s15 = sadd.s32 1, %s3842_s15  }
 0xb64   : > { %p11_p4 = scmp.ge.s32.totalorder %s14_s15, 4  }
 0xb66   :  { %13 = sbr.rel (!%p11_p4) target bundleno = 1 (0x1), region = 66 }

</bundles_post_ra>
